<compile_context>
chip_gen: v6e
topology: v6e:2x2x1
jax: 0.10.0
libtpu: 0.0.40
codegen_flags: <defaults>
</compile_context>

<pallas_src>
import functools
import math

import jax
import jax.numpy as jnp
from jax.experimental import pallas as pl
from jax.experimental.pallas import tpu as pltpu


def _round_up(x, m):
    return ((x + m - 1) // m) * m


def _fcn_decoder_kernel(z_ref, w1_ref, b1_ref, w2_ref, b2_ref, w3_ref, b3_ref,
                        o_ref):
    # h1 = relu(z @ W1 + b1)   (bf16 operands, f32 accumulate on MXU)
    h = jnp.dot(z_ref[...], w1_ref[...],
                preferred_element_type=jnp.float32) + b1_ref[...]
    h = jnp.maximum(h, 0.0).astype(jnp.bfloat16)
    # h2 = relu(h1 @ W2 + b2)
    h = jnp.dot(h, w2_ref[...],
                preferred_element_type=jnp.float32) + b2_ref[...]
    h = jnp.maximum(h, 0.0).astype(jnp.bfloat16)
    # out = h2 @ W3 + b3   (output_nl=None -> no output nonlinearity)
    out = jnp.dot(h, w3_ref[...],
                  preferred_element_type=jnp.float32) + b3_ref[...]
    o_ref[...] = out.astype(o_ref.dtype)


@functools.partial(jax.jit, static_argnames=("dim_out", "block_b"))
def fcn_decoder_vae_forward(z, params, dim_out, block_b=512):
    """FCNDecoderVAE forward.

    z:       (B, dim_in) float32
    params:  dict with w1 (dim_in,H), b1 (1,H), w2 (H,H), b2 (1,H),
             w3 (H,D), b3 (1,D)   [weights stored transposed vs. torch]
    dim_out: tuple, e.g. (C, H, W); prod(dim_out) must equal w3.shape[1]
    block_b: max batch-tile rows per grid step.
    """
    b, dim_in = z.shape
    hidden = params["w1"].shape[1]
    d_out = params["w3"].shape[1]
    assert d_out == math.prod(dim_out), (
        f"prod(dim_out)={math.prod(dim_out)} != w3 output dim {d_out}")

    # ---- MXU / lane alignment: zero-pad hidden to mult. of 256, output to
    # mult. of 128. Exact: padded units have zero weights+bias -> contribute 0.
    h_al = _round_up(hidden, 256)
    n_al = _round_up(d_out, 128)
    ph, pn = h_al - hidden, n_al - d_out

    w1 = jnp.pad(params["w1"], ((0, 0), (0, ph))).astype(jnp.bfloat16)
    b1 = jnp.pad(params["b1"], ((0, 0), (0, ph)))
    w2 = jnp.pad(params["w2"], ((0, ph), (0, ph))).astype(jnp.bfloat16)
    b2 = jnp.pad(params["b2"], ((0, 0), (0, ph)))
    w3 = jnp.pad(params["w3"], ((0, ph), (0, pn))).astype(jnp.bfloat16)
    b3 = jnp.pad(params["b3"], ((0, 0), (0, pn)))

    # ---- Batch tiling: multiple of 8 (sublane); guarantee >= 2 grid steps
    # when the batch allows so the "parallel" axis shards across v7x's 2 TCs.
    b8 = _round_up(b, 8)
    tb = min(block_b, b8)
    if b8 // tb < 2 and b8 >= 16:
        tb = _round_up((b8 + 1) // 2, 8)
    b_pad = _round_up(b8, tb)
    z_p = jnp.pad(z, ((0, b_pad - b), (0, 0))).astype(jnp.bfloat16)

    # Weights/biases: constant block index across the grid (VMEM-resident),
    # single-buffered since the block never changes.
    def resident(*shape):
        return pl.BlockSpec(shape, lambda i: tuple(0 for _ in shape),
                            pipeline_mode=pl.Buffered(1))

    out_flat = pl.pallas_call(
        _fcn_decoder_kernel,
        out_shape=jax.ShapeDtypeStruct((b_pad, n_al), jnp.float32),
        grid_spec=pl.GridSpec(
            grid=(b_pad // tb,),
            in_specs=[
                pl.BlockSpec((tb, dim_in), lambda i: (i, 0)),  # z: batch-tiled
                resident(dim_in, h_al),                         # W1
                resident(1, h_al),                              # b1
                resident(h_al, h_al),                           # W2
                resident(1, h_al),                              # b2
                resident(h_al, n_al),                           # W3
                resident(1, n_al),                              # b3
            ],
            out_specs=pl.BlockSpec((tb, n_al), lambda i: (i, 0)),
        ),
        compiler_params=pltpu.CompilerParams(
            dimension_semantics=("parallel",),
            vmem_limit_bytes=32 << 20,
        ),
    )(z_p, w1, b1, w2, b2, w3, b3)

    out_flat = out_flat[:b, :d_out]
    return out_flat.reshape((-1,) + tuple(dim_out))


def init_params(key, dim_in, hidden_size, d_out):
    """Deterministic init mirroring torch.nn.Linear default U(-1/sqrt(fan_in), +)."""
    ks = jax.random.split(key, 6)

    def linear(kw, kb, fan_in, fan_out):
        bound = 1.0 / jnp.sqrt(fan_in)
        w = jax.random.uniform(kw, (fan_in, fan_out), jnp.float32, -bound, bound)
        b = jax.random.uniform(kb, (1, fan_out), jnp.float32, -bound, bound)
        return w, b

    w1, b1 = linear(ks[0], ks[1], dim_in, hidden_size)
    w2, b2 = linear(ks[2], ks[3], hidden_size, hidden_size)
    w3, b3 = linear(ks[4], ks[5], hidden_size, d_out)
    return dict(w1=w1, b1=b1, w2=w2, b2=b2, w3=w3, b3=b3)


def reference_forward(z, params, dim_out):
    """Plain-JAX reference using the same bf16-operand / f32-accumulate recipe."""
    zb = z.astype(jnp.bfloat16)
    w1 = params["w1"].astype(jnp.bfloat16)
    w2 = params["w2"].astype(jnp.bfloat16)
    w3 = params["w3"].astype(jnp.bfloat16)
    h = jnp.dot(zb, w1, preferred_element_type=jnp.float32) + params["b1"]
    h = jnp.maximum(h, 0.0).astype(jnp.bfloat16)
    h = jnp.dot(h, w2, preferred_element_type=jnp.float32) + params["b2"]
    h = jnp.maximum(h, 0.0).astype(jnp.bfloat16)
    out = jnp.dot(h, w3, preferred_element_type=jnp.float32) + params["b3"]
    return out.reshape((-1,) + tuple(dim_out))


if __name__ == "__main__":
    key = jax.random.PRNGKey(0)
    k_z, k_p = jax.random.split(key)

    # Small, module-consistent shapes.
    batch = 2
    dim_in = 32                    # latent dim
    hidden_size = 800              # module default (padded to 1024 inside)
    dim_out = (4, 16, 16)          # image-shaped decoder output
    d_out = int(4 * 16 * 16)       # 1024

    z = jax.random.normal(k_z, (batch, dim_in), jnp.float32)
    params = init_params(k_p, dim_in, hidden_size, d_out)

    x = fcn_decoder_vae_forward(z, params, dim_out)
    x = jax.block_until_ready(x)

    # Cross-check against plain-JAX reference (same precision recipe).
    x_ref = reference_forward(z, params, dim_out)
    assert x.shape == (batch,) + dim_out, x.shape
    assert jnp.allclose(x, x_ref, atol=2e-2, rtol=2e-2), "mismatch vs reference"

    print("KERNEL_OK")
</pallas_src>

<mosaic_0001>
module attributes {stable_mosaic.version = 11 : i64} {
  func.func @_fcn_decoder_kernel(%arg0: i32, %arg1: memref<8x32xbf16, #tpu.memory_space<vmem>>, %arg2: memref<32x1024xbf16, #tpu.memory_space<vmem>>, %arg3: memref<1x1024xf32, #tpu.memory_space<vmem>>, %arg4: memref<1024x1024xbf16, #tpu.memory_space<vmem>>, %arg5: memref<1x1024xf32, #tpu.memory_space<vmem>>, %arg6: memref<1024x1024xbf16, #tpu.memory_space<vmem>>, %arg7: memref<1x1024xf32, #tpu.memory_space<vmem>>, %arg8: memref<8x1024xf32, #tpu.memory_space<vmem>>) attributes {dimension_semantics = [#tpu.dimension_semantics<parallel>], iteration_bounds = array<i64: 1>, scalar_prefetch = 0 : i64, scratch_operands = 0 : i64, tpu.core_type = #tpu.core_type<tc>, window_params = [{transform_indices = @transform_0, window_bounds = array<i64: 8, 32>}, {pipeline_mode = #tpu.pipeline_mode<synchronous>, transform_indices = @transform_1, window_bounds = array<i64: 32, 1024>}, {pipeline_mode = #tpu.pipeline_mode<synchronous>, transform_indices = @transform_2, window_bounds = array<i64: 1, 1024>}, {pipeline_mode = #tpu.pipeline_mode<synchronous>, transform_indices = @transform_3, window_bounds = array<i64: 1024, 1024>}, {pipeline_mode = #tpu.pipeline_mode<synchronous>, transform_indices = @transform_4, window_bounds = array<i64: 1, 1024>}, {pipeline_mode = #tpu.pipeline_mode<synchronous>, transform_indices = @transform_5, window_bounds = array<i64: 1024, 1024>}, {pipeline_mode = #tpu.pipeline_mode<synchronous>, transform_indices = @transform_6, window_bounds = array<i64: 1, 1024>}, {transform_indices = @transform_7, window_bounds = array<i64: 8, 1024>}]} {
    %c0 = arith.constant 0 : index
    %c0_0 = arith.constant 0 : index
    %0 = vector.load %arg1[%c0, %c0_0] : memref<8x32xbf16, #tpu.memory_space<vmem>>, vector<8x32xbf16>
    %c0_1 = arith.constant 0 : index
    %c0_2 = arith.constant 0 : index
    %1 = vector.load %arg2[%c0_1, %c0_2] : memref<32x1024xbf16, #tpu.memory_space<vmem>>, vector<32x1024xbf16>
    %cst = arith.constant dense<0.000000e+00> : vector<8x1024xf32>
    %2 = tpu.matmul %0, %1, %cst {dimension_numbers = #tpu.dot_dimension_numbers<[1], [0], [0], [1], [0, 0, 1, 1], [], []>} : vector<8x32xbf16>, vector<32x1024xbf16>, vector<8x1024xf32> -> vector<8x1024xf32>
    %c0_3 = arith.constant 0 : index
    %c0_4 = arith.constant 0 : index
    %3 = vector.load %arg3[%c0_3, %c0_4] : memref<1x1024xf32, #tpu.memory_space<vmem>>, vector<1x1024xf32>
    %4 = vector.broadcast %3 : vector<1x1024xf32> to vector<8x1024xf32>
    %5 = arith.addf %2, %4 : vector<8x1024xf32>
    %cst_5 = arith.constant 0.000000e+00 : f32
    %6 = vector.broadcast %cst_5 : f32 to vector<8x1024xf32>
    %7 = arith.maximumf %5, %6 : vector<8x1024xf32>
    %8 = arith.truncf %7 : vector<8x1024xf32> to vector<8x1024xbf16>
    %c0_6 = arith.constant 0 : index
    %c0_7 = arith.constant 0 : index
    %9 = vector.load %arg4[%c0_6, %c0_7] : memref<1024x1024xbf16, #tpu.memory_space<vmem>>, vector<1024x1024xbf16>
    %cst_8 = arith.constant dense<0.000000e+00> : vector<8x1024xf32>
    %10 = tpu.matmul %8, %9, %cst_8 {dimension_numbers = #tpu.dot_dimension_numbers<[1], [0], [0], [1], [0, 0, 1, 1], [], []>} : vector<8x1024xbf16>, vector<1024x1024xbf16>, vector<8x1024xf32> -> vector<8x1024xf32>
    %c0_9 = arith.constant 0 : index
    %c0_10 = arith.constant 0 : index
    %11 = vector.load %arg5[%c0_9, %c0_10] : memref<1x1024xf32, #tpu.memory_space<vmem>>, vector<1x1024xf32>
    %12 = vector.broadcast %11 : vector<1x1024xf32> to vector<8x1024xf32>
    %13 = arith.addf %10, %12 : vector<8x1024xf32>
    %cst_11 = arith.constant 0.000000e+00 : f32
    %14 = vector.broadcast %cst_11 : f32 to vector<8x1024xf32>
    %15 = arith.maximumf %13, %14 : vector<8x1024xf32>
    %16 = arith.truncf %15 : vector<8x1024xf32> to vector<8x1024xbf16>
    %c0_12 = arith.constant 0 : index
    %c0_13 = arith.constant 0 : index
    %17 = vector.load %arg6[%c0_12, %c0_13] : memref<1024x1024xbf16, #tpu.memory_space<vmem>>, vector<1024x1024xbf16>
    %cst_14 = arith.constant dense<0.000000e+00> : vector<8x1024xf32>
    %18 = tpu.matmul %16, %17, %cst_14 {dimension_numbers = #tpu.dot_dimension_numbers<[1], [0], [0], [1], [0, 0, 1, 1], [], []>} : vector<8x1024xbf16>, vector<1024x1024xbf16>, vector<8x1024xf32> -> vector<8x1024xf32>
    %c0_15 = arith.constant 0 : index
    %c0_16 = arith.constant 0 : index
    %19 = vector.load %arg7[%c0_15, %c0_16] : memref<1x1024xf32, #tpu.memory_space<vmem>>, vector<1x1024xf32>
    %20 = vector.broadcast %19 : vector<1x1024xf32> to vector<8x1024xf32>
    %21 = arith.addf %18, %20 : vector<8x1024xf32>
    %c0_17 = arith.constant 0 : index
    %c0_18 = arith.constant 0 : index
    %22 = vector.load %arg8[%c0_17, %c0_18] : memref<8x1024xf32, #tpu.memory_space<vmem>>, vector<8x1024xf32>
    tpu.vector_store %arg8[%c0_17, %c0_18], %21 {strides = array<i32>} : memref<8x1024xf32, #tpu.memory_space<vmem>>, vector<8x1024xf32>,
    return
  }
  func.func @transform_0(%arg0: i32) -> (i32, i32) {
    %c0_i32 = arith.constant 0 : i32
    %c0_i32_0 = arith.constant 0 : i32
    return %arg0, %c0_i32 : i32, i32
  }
  func.func @transform_1(%arg0: i32) -> (i32, i32) {
    %c0_i32 = arith.constant 0 : i32
    %c0_i32_0 = arith.constant 0 : i32
    %c0_i32_1 = arith.constant 0 : i32
    return %c0_i32, %c0_i32_0 : i32, i32
  }
  func.func @transform_2(%arg0: i32) -> (i32, i32) {
    %c0_i32 = arith.constant 0 : i32
    %c0_i32_0 = arith.constant 0 : i32
    %c0_i32_1 = arith.constant 0 : i32
    return %c0_i32, %c0_i32_0 : i32, i32
  }
  func.func @transform_3(%arg0: i32) -> (i32, i32) {
    %c0_i32 = arith.constant 0 : i32
    %c0_i32_0 = arith.constant 0 : i32
    %c0_i32_1 = arith.constant 0 : i32
    return %c0_i32, %c0_i32_0 : i32, i32
  }
  func.func @transform_4(%arg0: i32) -> (i32, i32) {
    %c0_i32 = arith.constant 0 : i32
    %c0_i32_0 = arith.constant 0 : i32
    %c0_i32_1 = arith.constant 0 : i32
    return %c0_i32, %c0_i32_0 : i32, i32
  }
  func.func @transform_5(%arg0: i32) -> (i32, i32) {
    %c0_i32 = arith.constant 0 : i32
    %c0_i32_0 = arith.constant 0 : i32
    %c0_i32_1 = arith.constant 0 : i32
    return %c0_i32, %c0_i32_0 : i32, i32
  }
  func.func @transform_6(%arg0: i32) -> (i32, i32) {
    %c0_i32 = arith.constant 0 : i32
    %c0_i32_0 = arith.constant 0 : i32
    %c0_i32_1 = arith.constant 0 : i32
    return %c0_i32, %c0_i32_0 : i32, i32
  }
  func.func @transform_7(%arg0: i32) -> (i32, i32) {
    %c0_i32 = arith.constant 0 : i32
    %c0_i32_0 = arith.constant 0 : i32
    return %arg0, %c0_i32 : i32, i32
  }
}

</mosaic_0001>

<bundles_post_ra>
// kernel: fcn_decoder_vae_forward.1
= control target key start
LH: loop header
LB: loop body
LE: loop exit
PB: predicated region body
PF: predicated region fallthrough
CT: control target
= control target key end

     0   :  { %v8966_v3 = vmov 0   ;;  %vm166_vm0 = vcmask 261120   ;;  %s12470_s1 = inlined_call_operand.vmem [shape: bf16[32,1024], index: 1, kind: input, shape index: {}]   ;;  %s12471_s0 = inlined_call_operand.vmem [shape: bf16[8,32], index: 0, kind: input, shape index: {}]   ;;  %s12472_s3 = inlined_call_operand.vmem [shape: bf16[1024,1024], index: 3, kind: input, shape index: {}]   ;;  %s12473_s2 = inlined_call_operand.vmem [shape: f32[1,1024], index: 2, kind: input, shape index: {}]   ;;  %s12474_s4 = inlined_call_operand.vmem [shape: f32[1,1024], index: 4, kind: input, shape index: {}]   ;;  %s12475_s5 = inlined_call_operand.vmem [shape: bf16[1024,1024], index: 5, kind: input, shape index: {}]   ;;  %s12476_s6 = inlined_call_operand.vmem [shape: f32[1,1024], index: 6, kind: input, shape index: {}]   ;;  %s12477_s7 = inlined_call_operand.vmem [shape: f32[8,1024], index: 7, kind: output, shape index: {}]  }
   0x1   :  { %v36_v0 = vld [vmem:[%s12470_s1 + $0x40] sm:$0xff]  ;;  %v37_v2 = vld [vmem:[%s12470_s1 + $0x48] sm:$0xff]  ;;  %202 = vmatprep.mubr.bf16.mxu0 %v8966_v3  ;;  %243 = vmatprep.mubr.bf16.mxu1 %v8966_v3  ;;  %v38_v15 = vld [vmem:[%s12470_s1 + $0x50] sm:$0xff] }
   0x2   :  { %v40_v1 = vld [vmem:[%s12470_s1 + $0x60] sm:$0xff]  ;;  %v41_v5 = vld [vmem:[%s12470_s1 + $0x68] sm:$0xff]  ;;  %v42_v16 = vld [vmem:[%s12470_s1 + $0x70] sm:$0xff] }
   0x3   :  { %v7927_v4 = vcombine.high %v36_v0, %v40_v1  ;;  %v7926_v6 = vcombine.low %v36_v0, %v40_v1  ;;  %v28_v7 = vld [vmem:[%s12470_s1] sm:$0xff]  ;;  %v7929_v9 = vcombine.high %v37_v2, %v41_v5  ;;  %v7928_v10 = vcombine.low %v37_v2, %v41_v5  ;;  %v29_v12 = vld [vmem:[%s12470_s1 + $0x8] sm:$0xff]  ;;  %v39_v17 = vld [vmem:[%s12470_s1 + $0x58] sm:$0xff] }
   0x4   :  { %v32_v8 = vld [vmem:[%s12470_s1 + $0x20] sm:$0xff]  ;;  %v33_v13 = vld [vmem:[%s12470_s1 + $0x28] sm:$0xff]  ;;  %v43_v19 = vld [vmem:[%s12470_s1 + $0x78] sm:$0xff]  ;;  %v7931_v21 = vcombine.high %v38_v15, %v42_v16  ;;  %v7930_v28 = vcombine.low %v38_v15, %v42_v16 }
   0x5   :  { %v7919_v11 = vcombine.high %v28_v7, %v32_v8  ;;  %182 = vmatprep.subr.bf16.mxu0 %v7927_v4  ;;  %v7921_v14 = vcombine.high %v29_v12, %v33_v13  ;;  %223 = vmatprep.subr.bf16.mxu1 %v7929_v9  ;;  %v7918_v18 = vcombine.low %v28_v7, %v32_v8  ;;  %v30_v23 = vld [vmem:[%s12470_s1 + $0x10] sm:$0xff]  ;;  %v31_v25 = vld [vmem:[%s12470_s1 + $0x18] sm:$0xff]  ;;  %v27_v27 = vld [vmem:[%s12471_s0] sm:$0xf] }
   0x6   :  { %183 = vmatpush1.bf16.msra.mxu0 %v7926_v6  ;;  %224 = vmatpush1.bf16.msra.mxu1 %v7928_v10  ;;  %v7920_v20 = vcombine.low %v29_v12, %v33_v13  ;;  %v7933_v22 = vcombine.high %v39_v17, %v43_v19  ;;  %v34_v24 = vld [vmem:[%s12470_s1 + $0x30] sm:$0xff]  ;;  %v35_v26 = vld [vmem:[%s12470_s1 + $0x38] sm:$0xff]  ;;  %v7932_v29 = vcombine.low %v39_v17, %v43_v19  ;;  %v406_v32 = vld [vmem:[%s12472_s3 + $0x1c0] sm:$0xff] }
   0x7   :  { %184 = vmatprep.subr.bf16.mxu0 %v7919_v11  ;;  %225 = vmatprep.subr.bf16.mxu1 %v7921_v14  ;;  %v7923_v30 = vcombine.high %v30_v23, %v34_v24  ;;  %v7925_v31 = vcombine.high %v31_v25, %v35_v26  ;;  %v410_v33 = vld [vmem:[%s12472_s3 + $0x1e0] sm:$0xff]  ;;  %v7922_v36 = vcombine.low %v30_v23, %v34_v24 }
   0x8   :  { %v534_v34 = vld [vmem:[%s12472_s3 + $0x5c0] sm:$0xff]  ;;  %v7924_v37 = vcombine.low %v31_v25, %v35_v26  ;;  %v7995_v38 = vcombine.high %v406_v32, %v410_v33  ;;  %v7994_v44 = vcombine.low %v406_v32, %v410_v33 }
   0x9   :  { %v538_v35 = vld [vmem:[%s12472_s3 + $0x5e0] sm:$0xff] }
   0xa   :  { %185 = vmatpush1.bf16.msra.mxu0 %v7918_v18  ;;  %226 = vmatpush1.bf16.msra.mxu1 %v7920_v20  ;;  %v8123_v39 = vcombine.high %v534_v34, %v538_v35  ;;  %v398_v40 = vld [vmem:[%s12472_s3 + $0x180] sm:$0xff]  ;;  %v8122_v45 = vcombine.low %v534_v34, %v538_v35 }
   0xb   :  { %264 = vmatprep.subr.bf16.mxu0 %v7931_v21  ;;  %305 = vmatprep.subr.bf16.mxu1 %v7933_v22  ;;  %v402_v41 = vld [vmem:[%s12472_s3 + $0x1a0] sm:$0xff] }
   0xc   :  { %v526_v42 = vld [vmem:[%s12472_s3 + $0x580] sm:$0xff]  ;;  %v7987_v46 = vcombine.high %v398_v40, %v402_v41  ;;  %v7986_v52 = vcombine.low %v398_v40, %v402_v41 }
   0xd   :  { %7934 = vmatmul.mubr.msk.bf16.vlgmr.msra.gmra.mxu0 %vm166_vm0, %v27_v27  ;;  %7935 = vmatmul.mubr.msk.bf16.vlgmr.msra.gmra.mxu1 %vm166_vm0, %v27_v27  ;;  %v530_v43 = vld [vmem:[%s12472_s3 + $0x5a0] sm:$0xff] }
   0xe   :  { %265 = vmatpush1.bf16.msra.mxu0 %v7930_v28  ;;  %306 = vmatpush1.bf16.msra.mxu1 %v7932_v29  ;;  %v8115_v47 = vcombine.high %v526_v42, %v530_v43  ;;  %v390_v48 = vld [vmem:[%s12472_s3 + $0x140] sm:$0xff]  ;;  %v8114_v53 = vcombine.low %v526_v42, %v530_v43 }
   0xf   :  { %266 = vmatprep.subr.bf16.mxu0 %v7923_v30  ;;  %307 = vmatprep.subr.bf16.mxu1 %v7925_v31  ;;  %v394_v49 = vld [vmem:[%s12472_s3 + $0x160] sm:$0xff] }
  0x10   :  { %284 = vmatprep.mubr.bf16.mxu0 %v8966_v3  ;;  %325 = vmatprep.mubr.bf16.mxu1 %v8966_v3  ;;  %v518_v50 = vld [vmem:[%s12472_s3 + $0x540] sm:$0xff]  ;;  %v7979_v54 = vcombine.high %v390_v48, %v394_v49  ;;  %v7978_v60 = vcombine.low %v390_v48, %v394_v49 }
  0x11   :  { %v522_v51 = vld [vmem:[%s12472_s3 + $0x560] sm:$0xff] }
  0x12   :  { %267 = vmatpush1.bf16.msra.mxu0 %v7922_v36  ;;  %308 = vmatpush1.bf16.msra.mxu1 %v7924_v37  ;;  %v8107_v55 = vcombine.high %v518_v50, %v522_v51  ;;  %v382_v56 = vld [vmem:[%s12472_s3 + $0x100] sm:$0xff]  ;;  %v8106_v61 = vcombine.low %v518_v50, %v522_v51 }
  0x13   :  { %3464 = vmatprep.subr.bf16.mxu0 %v7995_v38  ;;  %3505 = vmatprep.subr.bf16.mxu1 %v8123_v39  ;;  %v386_v57 = vld [vmem:[%s12472_s3 + $0x120] sm:$0xff] }
  0x14   :  { %v510_v58 = vld [vmem:[%s12472_s3 + $0x500] sm:$0xff]  ;;  %v7971_v62 = vcombine.high %v382_v56, %v386_v57  ;;  %v7970_v4 = vcombine.low %v382_v56, %v386_v57 }
  0x15   :  { %7936 = vmatmul.mubr.msk.bf16.vlgmr.msra.gmra.mxu0 %vm166_vm0, %v27_v27  ;;  %7937 = vmatmul.mubr.msk.bf16.vlgmr.msra.gmra.mxu1 %vm166_vm0, %v27_v27  ;;  %v514_v59 = vld [vmem:[%s12472_s3 + $0x520] sm:$0xff] }
  0x16   :  { %3465 = vmatpush1.bf16.msra.mxu0 %v7994_v44  ;;  %3506 = vmatpush1.bf16.msra.mxu1 %v8122_v45  ;;  %v8099_v63 = vcombine.high %v510_v58, %v514_v59  ;;  %v374_v0 = vld [vmem:[%s12472_s3 + $0xc0] sm:$0xff]  ;;  %v8098_v5 = vcombine.low %v510_v58, %v514_v59 }
  0x17   :  { %3466 = vmatprep.subr.bf16.mxu0 %v7987_v46  ;;  %3507 = vmatprep.subr.bf16.mxu1 %v8115_v47  ;;  %v378_v1 = vld [vmem:[%s12472_s3 + $0xe0] sm:$0xff] }
  0x18   :  { %v502_v2 = vld [vmem:[%s12472_s3 + $0x4c0] sm:$0xff]  ;;  %v7963_v6 = vcombine.high %v374_v0, %v378_v1  ;;  %v7962_v12 = vcombine.low %v374_v0, %v378_v1 }
  0x19   :  { %v506_v3 = vld [vmem:[%s12472_s3 + $0x4e0] sm:$0xff] }
  0x1a   :  { %3467 = vmatpush1.bf16.msra.mxu0 %v7986_v52  ;;  %3508 = vmatpush1.bf16.msra.mxu1 %v8114_v53  ;;  %v8091_v7 = vcombine.high %v502_v2, %v506_v3  ;;  %v366_v8 = vld [vmem:[%s12472_s3 + $0x80] sm:$0xff]  ;;  %v8090_v13 = vcombine.low %v502_v2, %v506_v3 }
  0x1b   :  { %3468 = vmatprep.subr.bf16.mxu0 %v7979_v54  ;;  %3509 = vmatprep.subr.bf16.mxu1 %v8107_v55  ;;  %v370_v9 = vld [vmem:[%s12472_s3 + $0xa0] sm:$0xff] }
  0x1c   :  { %v494_v10 = vld [vmem:[%s12472_s3 + $0x480] sm:$0xff]  ;;  %v7955_v14 = vcombine.high %v366_v8, %v370_v9  ;;  %v7954_v20 = vcombine.low %v366_v8, %v370_v9 }
  0x1d   :  { %v498_v11 = vld [vmem:[%s12472_s3 + $0x4a0] sm:$0xff] }
  0x1e   :  { %3469 = vmatpush1.bf16.msra.mxu0 %v7978_v60  ;;  %3510 = vmatpush1.bf16.msra.mxu1 %v8106_v61  ;;  %v8083_v15 = vcombine.high %v494_v10, %v498_v11  ;;  %v358_v16 = vld [vmem:[%s12472_s3 + $0x40] sm:$0xff]  ;;  %v8082_v21 = vcombine.low %v494_v10, %v498_v11 }
  0x1f   :  { %3470 = vmatprep.subr.bf16.mxu0 %v7971_v62  ;;  %3511 = vmatprep.subr.bf16.mxu1 %v8099_v63  ;;  %v362_v17 = vld [vmem:[%s12472_s3 + $0x60] sm:$0xff] }
  0x20   :  { %v486_v18 = vld [vmem:[%s12472_s3 + $0x440] sm:$0xff]  ;;  %v7947_v22 = vcombine.high %v358_v16, %v362_v17  ;;  %v7946_v28 = vcombine.low %v358_v16, %v362_v17 }
  0x21   :  { %v490_v19 = vld [vmem:[%s12472_s3 + $0x460] sm:$0xff] }
  0x22   :  { %3471 = vmatpush1.bf16.msra.mxu0 %v7970_v4  ;;  %3512 = vmatpush1.bf16.msra.mxu1 %v8098_v5  ;;  %v8075_v23 = vcombine.high %v486_v18, %v490_v19  ;;  %v350_v24 = vld [vmem:[%s12472_s3] sm:$0xff]  ;;  %v8074_v29 = vcombine.low %v486_v18, %v490_v19 }
  0x23   :  { %3472 = vmatprep.subr.bf16.mxu0 %v7963_v6  ;;  %3513 = vmatprep.subr.bf16.mxu1 %v8091_v7  ;;  %v354_v25 = vld [vmem:[%s12472_s3 + $0x20] sm:$0xff] }
  0x24   :  { %v478_v26 = vld [vmem:[%s12472_s3 + $0x400] sm:$0xff]  ;;  %v7939_v30 = vcombine.high %v350_v24, %v354_v25  ;;  %v7938_v36 = vcombine.low %v350_v24, %v354_v25 }
  0x25   :  { %v482_v27 = vld [vmem:[%s12472_s3 + $0x420] sm:$0xff] }
  0x26   :  { %3473 = vmatpush1.bf16.msra.mxu0 %v7962_v12  ;;  %3514 = vmatpush1.bf16.msra.mxu1 %v8090_v13  ;;  %v8067_v31 = vcombine.high %v478_v26, %v482_v27  ;;  %v470_v32 = vld [vmem:[%s12472_s3 + $0x3c0] sm:$0xff]  ;;  %v8066_v37 = vcombine.low %v478_v26, %v482_v27 }
  0x27   :  { %3474 = vmatprep.subr.bf16.mxu0 %v7955_v14  ;;  %3515 = vmatprep.subr.bf16.mxu1 %v8083_v15  ;;  %v474_v33 = vld [vmem:[%s12472_s3 + $0x3e0] sm:$0xff] }
  0x28   :  { %v598_v34 = vld [vmem:[%s12472_s3 + $0x7c0] sm:$0xff]  ;;  %v8059_v38 = vcombine.high %v470_v32, %v474_v33  ;;  %v8058_v44 = vcombine.low %v470_v32, %v474_v33 }
  0x29   :  { %v602_v35 = vld [vmem:[%s12472_s3 + $0x7e0] sm:$0xff] }
  0x2a   :  { %3475 = vmatpush1.bf16.msra.mxu0 %v7954_v20  ;;  %3516 = vmatpush1.bf16.msra.mxu1 %v8082_v21  ;;  %v8187_v39 = vcombine.high %v598_v34, %v602_v35  ;;  %v462_v40 = vld [vmem:[%s12472_s3 + $0x380] sm:$0xff]  ;;  %v8186_v45 = vcombine.low %v598_v34, %v602_v35 }
  0x2b   :  { %3476 = vmatprep.subr.bf16.mxu0 %v7947_v22  ;;  %3517 = vmatprep.subr.bf16.mxu1 %v8075_v23  ;;  %v466_v41 = vld [vmem:[%s12472_s3 + $0x3a0] sm:$0xff] }
  0x2c   :  { %v590_v42 = vld [vmem:[%s12472_s3 + $0x780] sm:$0xff]  ;;  %v8051_v46 = vcombine.high %v462_v40, %v466_v41  ;;  %v8050_v52 = vcombine.low %v462_v40, %v466_v41 }
  0x2d   :  { %v594_v43 = vld [vmem:[%s12472_s3 + $0x7a0] sm:$0xff] }
  0x2e   :  { %3477 = vmatpush1.bf16.msra.mxu0 %v7946_v28  ;;  %3518 = vmatpush1.bf16.msra.mxu1 %v8074_v29  ;;  %v8179_v47 = vcombine.high %v590_v42, %v594_v43  ;;  %v454_v48 = vld [vmem:[%s12472_s3 + $0x340] sm:$0xff]  ;;  %v8178_v53 = vcombine.low %v590_v42, %v594_v43  ;;  %v46_v42 = vlaneseq }
  0x2f   :  { %3478 = vmatprep.subr.bf16.mxu0 %v7939_v30  ;;  %3519 = vmatprep.subr.bf16.mxu1 %v8067_v31  ;;  %v458_v49 = vld [vmem:[%s12472_s3 + $0x360] sm:$0xff] }
  0x30   :  { %v582_v50 = vld [vmem:[%s12472_s3 + $0x740] sm:$0xff]  ;;  %v8043_v54 = vcombine.high %v454_v48, %v458_v49  ;;  %v8042_v60 = vcombine.low %v454_v48, %v458_v49  ;;  %v9282_v43 = vshrl.u32 %v46_v42, 7 }
  0x31   :  { %v586_v51 = vld [vmem:[%s12472_s3 + $0x760] sm:$0xff] }
  0x32   :  { %3479 = vmatpush1.bf16.msra.mxu0 %v7938_v36  ;;  %3520 = vmatpush1.bf16.msra.mxu1 %v8066_v37  ;;  %v8171_v55 = vcombine.high %v582_v50, %v586_v51  ;;  %v446_v56 = vld [vmem:[%s12472_s3 + $0x300] sm:$0xff]  ;;  %v8170_v61 = vcombine.low %v582_v50, %v586_v51  ;;  %v9299_v48 = vsub.s32 3, %v9282_v43 }
  0x33   :  { %3480 = vmatprep.subr.bf16.mxu0 %v8059_v38  ;;  %3521 = vmatprep.subr.bf16.mxu1 %v8187_v39  ;;  %v450_v57 = vld [vmem:[%s12472_s3 + $0x320] sm:$0xff] }
  0x34   :  { %v574_v58 = vld [vmem:[%s12472_s3 + $0x700] sm:$0xff]  ;;  %v8035_v62 = vcombine.high %v446_v56, %v450_v57  ;;  %v8034_v4 = vcombine.low %v446_v56, %v450_v57 }
  0x35   :  { %v578_v59 = vld [vmem:[%s12472_s3 + $0x720] sm:$0xff] }
  0x36   :  { %3481 = vmatpush2.bf16.msra.mxu0 %v8058_v44  ;;  %3522 = vmatpush2.bf16.msra.mxu1 %v8186_v45  ;;  %v8163_v63 = vcombine.high %v574_v58, %v578_v59  ;;  %v438_v0 = vld [vmem:[%s12472_s3 + $0x2c0] sm:$0xff]  ;;  %v8162_v5 = vcombine.low %v574_v58, %v578_v59  ;;  %v9285_v44 = vsub.s32 0, %v9282_v43 }
  0x37   :  { %3482 = vmatprep.subr.bf16.mxu0 %v8051_v46  ;;  %3523 = vmatprep.subr.bf16.mxu1 %v8179_v47  ;;  %v442_v1 = vld [vmem:[%s12472_s3 + $0x2e0] sm:$0xff]  ;;  %v9293_v46 = vsub.s32 2, %v9282_v43  ;;  %v9296_v47 = vsub.s32 1, %v9282_v43 }
  0x38   :  { %v566_v2 = vld [vmem:[%s12472_s3 + $0x6c0] sm:$0xff]  ;;  %v8027_v6 = vcombine.high %v438_v0, %v442_v1  ;;  %v8026_v12 = vcombine.low %v438_v0, %v442_v1  ;;  %v9313_v1 = vsub.s32 7, %v9282_v43 }
  0x39   :  { %v570_v3 = vld [vmem:[%s12472_s3 + $0x6e0] sm:$0xff] }
  0x3a   :  { %3483 = vmatpush2.bf16.msra.mxu0 %v8050_v52  ;;  %3524 = vmatpush2.bf16.msra.mxu1 %v8178_v53  ;;  %v8155_v7 = vcombine.high %v566_v2, %v570_v3  ;;  %v430_v8 = vld [vmem:[%s12472_s3 + $0x280] sm:$0xff]  ;;  %v8154_v13 = vcombine.low %v566_v2, %v570_v3 }
  0x3b   :  { %3484 = vmatprep.subr.bf16.mxu0 %v8043_v54  ;;  %3525 = vmatprep.subr.bf16.mxu1 %v8171_v55  ;;  %v434_v9 = vld [vmem:[%s12472_s3 + $0x2a0] sm:$0xff] }
  0x3c   :  { %v558_v10 = vld [vmem:[%s12472_s3 + $0x680] sm:$0xff]  ;;  %v8019_v14 = vcombine.high %v430_v8, %v434_v9  ;;  %v8018_v16 = vcombine.low %v430_v8, %v434_v9 }
  0x3d   :  { %v562_v11 = vld [vmem:[%s12472_s3 + $0x6a0] sm:$0xff] }
  0x3e   :  { %3485 = vmatpush2.bf16.msra.mxu0 %v8042_v60  ;;  %3526 = vmatpush2.bf16.msra.mxu1 %v8170_v61  ;;  %v8147_v15 = vcombine.high %v558_v10, %v562_v11  ;;  %v8146_v17 = vcombine.low %v558_v10, %v562_v11  ;;  %v422_v18 = vld [vmem:[%s12472_s3 + $0x240] sm:$0xff]  ;;  %v9310_v60 = vsub.s32 5, %v9282_v43 }
  0x3f   :  { %3486 = vmatprep.subr.bf16.mxu0 %v8035_v62  ;;  %3527 = vmatprep.subr.bf16.mxu1 %v8163_v63  ;;  %v426_v19 = vld [vmem:[%s12472_s3 + $0x260] sm:$0xff] }
  0x40   :  { %v550_v20 = vld [vmem:[%s12472_s3 + $0x640] sm:$0xff]  ;;  %v8011_v21 = vcombine.high %v422_v18, %v426_v19  ;;  %v8010_v23 = vcombine.low %v422_v18, %v426_v19 }
  0x41   :  { %v554_v22 = vld [vmem:[%s12472_s3 + $0x660] sm:$0xff] }
  0x42   :  { %3487 = vmatpush2.bf16.msra.mxu0 %v8034_v4  ;;  %3528 = vmatpush2.bf16.msra.mxu1 %v8162_v5  ;;  %v8138_v24 = vcombine.low %v550_v20, %v554_v22  ;;  %v8139_v25 = vcombine.high %v550_v20, %v554_v22  ;;  %v414_v26 = vld [vmem:[%s12472_s3 + $0x200] sm:$0xff] }
  0x43   :  { %3488 = vmatprep.subr.bf16.mxu0 %v8027_v6  ;;  %3529 = vmatprep.subr.bf16.mxu1 %v8155_v7  ;;  %v418_v27 = vld [vmem:[%s12472_s3 + $0x220] sm:$0xff] }
  0x44   :  { %v542_v28 = vld [vmem:[%s12472_s3 + $0x600] sm:$0xff]  ;;  %v8003_v29 = vcombine.high %v414_v26, %v418_v27  ;;  %v8002_v31 = vcombine.low %v414_v26, %v418_v27 }
  0x45   :  { %v546_v30 = vld [vmem:[%s12472_s3 + $0x620] sm:$0xff] }
  0x46   :  { %3489 = vmatpush2.bf16.msra.mxu0 %v8026_v12  ;;  %3530 = vmatpush2.bf16.msra.mxu1 %v8154_v13  ;;  %v8130_v32 = vcombine.low %v542_v28, %v546_v30  ;;  %v8131_v33 = vcombine.high %v542_v28, %v546_v30  ;;  %v9257_v34 = vld [vmem:[%s12472_s3 + $0x9c0] sm:$0xff] }
  0x47   :  { %3490 = vmatprep.subr.bf16.mxu0 %v8019_v14  ;;  %3531 = vmatprep.subr.bf16.mxu1 %v8147_v15  ;;  %v9262_v35 = vld [vmem:[%s12472_s3 + $0x9e0] sm:$0xff] }
  0x48   :  { %v9267_v36 = vld [vmem:[%s12472_s3 + $0xdc0] sm:$0xff]  ;;  %v8251_v37 = vcombine.high %v9257_v34, %v9262_v35  ;;  %v8250_v39 = vcombine.low %v9257_v34, %v9262_v35 }
  0x49   :  { %v9274_v38 = vld [vmem:[%s12472_s3 + $0xde0] sm:$0xff] }
  0x4a   :  { %3491 = vmatpush2.bf16.msra.mxu0 %v8018_v16  ;;  %3532 = vmatpush2.bf16.msra.mxu1 %v8146_v17  ;;  %v8378_v40 = vcombine.low %v9267_v36, %v9274_v38  ;;  %v8379_v41 = vcombine.high %v9267_v36, %v9274_v38  ;;  %v9290_v45 = vld [vmem:[%s12473_s2] sm:$0xff] }
  0x4b   :  { %3492 = vmatprep.subr.bf16.mxu0 %v8011_v21  ;;  %3533 = vmatprep.subr.bf16.mxu1 %v8139_v25  ;;  %v49_v49 = vrot.slane %v9290_v45, %v9285_v44  ;;  %v57_v50 = vrot.slane %v9290_v45, %v9293_v46  ;;  %v53_v51 = vrot.slane %v9290_v45, %v9296_v47  ;;  %v654_v4 = vld [vmem:[%s12472_s3 + $0x980] sm:$0xff] }
  0x4c   :  { %v61_v53 = vrot.slane %v9290_v45, %v9299_v48  ;;  %v658_v5 = vld [vmem:[%s12472_s3 + $0x9a0] sm:$0xff]  ;;  %v69_v13 = vrot.slane %v9290_v45, %v9310_v60  ;;  %v77_v18 = vrot.slane %v9290_v45, %v9313_v1 }
  0x4d   :  { %v782_v8 = vld [vmem:[%s12472_s3 + $0xd80] sm:$0xff]  ;;  %v8243_v16 = vcombine.high %v654_v4, %v658_v5  ;;  %v8242_v26 = vcombine.low %v654_v4, %v658_v5 }
  0x4e   :  { %3493 = vmatpush2.bf16.msra.mxu0 %v8010_v23  ;;  %3534 = vmatpush2.bf16.msra.mxu1 %v8138_v24  ;;  %v786_v9 = vld [vmem:[%s12472_s3 + $0xda0] sm:$0xff] }
  0x4f   :  { %3494 = vmatprep.subr.bf16.mxu0 %v8003_v29  ;;  %3535 = vmatprep.subr.bf16.mxu1 %v8131_v33  ;;  %v8371_v19 = vcombine.high %v782_v8, %v786_v9  ;;  %v646_v20 = vld [vmem:[%s12472_s3 + $0x940] sm:$0xff]  ;;  %v8370_v29 = vcombine.low %v782_v8, %v786_v9 }
  0x50   :  { %v650_v21 = vld [vmem:[%s12472_s3 + $0x960] sm:$0xff] }
  0x51   :  { %v774_v23 = vld [vmem:[%s12472_s3 + $0xd40] sm:$0xff]  ;;  %v8235_v30 = vcombine.high %v646_v20, %v650_v21  ;;  %v8234_v42 = vcombine.low %v646_v20, %v650_v21 }
  0x52   :  { %3495 = vmatpush2.bf16.msra.mxu0 %v8002_v31  ;;  %3536 = vmatpush2.bf16.msra.mxu1 %v8130_v32  ;;  %v778_v24 = vld [vmem:[%s12472_s3 + $0xd60] sm:$0xff] }
  0x53   :  { %3546 = vmatprep.subr.bf16.mxu0 %v8251_v37  ;;  %3587 = vmatprep.subr.bf16.mxu1 %v8379_v41  ;;  %v8363_v33 = vcombine.high %v774_v23, %v778_v24  ;;  %v638_v34 = vld [vmem:[%s12472_s3 + $0x900] sm:$0xff] }
  0x54   :  { %v642_v35 = vld [vmem:[%s12472_s3 + $0x920] sm:$0xff] }
  0x55   :  { %v766_v38 = vld [vmem:[%s12472_s3 + $0xd00] sm:$0xff] }
  0x56   :  { %v754_v4 = vld [vmem:[%s12472_s3 + $0xca0] sm:$0xff] }
  0x57   :  { %v614_v9 = vld [vmem:[%s12472_s3 + $0x840] sm:$0xff] }
  0xcd   :  { %v204_v52 = vpop.f32.mrf.mxu0  ;;  %v245_v55 = vpop.f32.mrf.mxu1 }
  0xce   :  { %v205_v54 = vadd.f32 %v204_v52, %v49_v49  ;;  %v246_v56 = vadd.f32 %v245_v55, %v57_v50  ;;  %v8227_v52 = vcombine.high %v638_v34, %v642_v35  ;;  %v630_v55 = vld [vmem:[%s12472_s3 + $0x8c0] sm:$0xff] }
  0xcf   :  { %v206_v57 = vpop.f32.mrf.mxu0  ;;  %v247_v59 = vpop.f32.mrf.mxu1 }
  0xd0   :  { %v207_v58 = vadd.f32 %v206_v57, %v53_v51  ;;  %v334_v61 = vmax.f32 %v205_v54, 0.0  ;;  %v336_v62 = vmax.f32 %v246_v56, 0.0  ;;  %v248_v63 = vadd.f32 %v247_v59, %v61_v53  ;;  %v634_v56 = vld [vmem:[%s12472_s3 + $0x8e0] sm:$0xff] }
  0xd1   :  { %v208_v0 = vpop.f32.mrf.mxu0  ;;  %v249_v3 = vpop.f32.mrf.mxu1  ;;  %v8362_v51 = vcombine.low %v774_v23, %v778_v24  ;;  %v758_v57 = vld [vmem:[%s12472_s3 + $0xcc0] sm:$0xff]  ;;  %v8226_v59 = vcombine.low %v638_v34, %v642_v35  ;;  %v8218_v5 = vcombine.low %v630_v55, %v634_v56 }
  0xd2   :  { %v335_v2 = vmax.f32 %v207_v58, 0.0  ;;  %v337_v6 = vmax.f32 %v248_v63, 0.0  ;;  %v9327_v10 = vpack.c.bf16 %v336_v62, %v336_v62  ;;  %v9333_v14 = vpack.c.bf16 %v334_v61, %v334_v61  ;;  %v762_v58 = vld [vmem:[%s12472_s3 + $0xce0] sm:$0xff] }
  0xd3   :  { %v209_v7 = vpop.f32.mrf.mxu0  ;;  %v250_v12 = vpop.f32.mrf.mxu1  ;;  %v8219_v62 = vcombine.high %v630_v55, %v634_v56  ;;  %v8347_v63 = vcombine.high %v758_v57, %v762_v58  ;;  %v622_v0 = vld [vmem:[%s12472_s3 + $0x880] sm:$0xff] }
  0xd4   :  { %v9329_v11 = vpack.c.bf16 %v335_v2, %v335_v2  ;;  %v9335_v15 = vpack.c.bf16 %v337_v6, %v337_v6  ;;  %v626_v2 = vld [vmem:[%s12472_s3 + $0x8a0] sm:$0xff]  ;;  %v8346_v6 = vcombine.low %v758_v57, %v762_v58 }
  0xd5   :  { %v9337_v17 = vpop.f32.mrf.mxu0  ;;  %v9348_v22 = vpop.f32.mrf.mxu1  ;;  %v750_v3 = vld [vmem:[%s12472_s3 + $0xc80] sm:$0xff]  ;;  %v8211_v7 = vcombine.high %v622_v0, %v626_v2 }
  0xd6   :  { %3496 = vmatprep.mubr.bf16.mxu0 %v9329_v11  ;;  %3537 = vmatprep.mubr.bf16.mxu1 %v9335_v15  ;;  %v8339_v8 = vcombine.high %v750_v3, %v754_v4  ;;  %v618_v12 = vld [vmem:[%s12472_s3 + $0x860] sm:$0xff] }
  0xd7   :  { %3497 = vmatmul.mubr.bf16.vlgmr.msra.gmra.mxu0 %v9333_v14  ;;  %v288_v25 = vpop.f32.mrf.mxu0  ;;  %3538 = vmatmul.mubr.bf16.vlgmr.msra.gmra.mxu1 %v9327_v10  ;;  %v329_v28 = vpop.f32.mrf.mxu1  ;;  %v8203_v20 = vcombine.high %v614_v9, %v618_v12  ;;  %v606_v23 = vld [vmem:[%s12472_s3 + $0x800] sm:$0xff] }
  0xd8   :  { %3547 = vmatpush1.bf16.msra.mxu0 %v8250_v39  ;;  %v289_v27 = vadd.f32 %v288_v25, %v69_v13  ;;  %3588 = vmatpush1.bf16.msra.mxu1 %v8378_v40  ;;  %v330_v32 = vadd.f32 %v329_v28, %v77_v18  ;;  %v770_v39 = vld [vmem:[%s12472_s3 + $0xd20] sm:$0xff]  ;;  %v8210_v18 = vcombine.low %v622_v0, %v626_v2 }
  0xd9   :  { %3548 = vmatprep.subr.bf16.mxu0 %v8243_v16  ;;  %v290_v31 = vpop.f32.mrf.mxu0  ;;  %3589 = vmatprep.subr.bf16.mxu1 %v8371_v19  ;;  %v331_v37 = vpop.f32.mrf.mxu1  ;;  %v8355_v54 = vcombine.high %v766_v38, %v770_v39  ;;  %v8354_v61 = vcombine.low %v766_v38, %v770_v39  ;;  %v742_v13 = vld [vmem:[%s12472_s3 + $0xc40] sm:$0xff]  ;;  %v8338_v19 = vcombine.low %v750_v3, %v754_v4 }
  0xda   :  { %v339_v36 = vmax.f32 %v289_v27, 0.0  ;;  %v341_v40 = vmax.f32 %v330_v32, 0.0  ;;  %v746_v16 = vld [vmem:[%s12472_s3 + $0xc60] sm:$0xff]  ;;  %v8202_v27 = vcombine.low %v614_v9, %v618_v12 }
  0xdb   :  { %v291_v41 = vpop.f32.mrf.mxu0  ;;  %v332_v50 = vpop.f32.mrf.mxu1  ;;  %v8331_v21 = vcombine.high %v742_v13, %v746_v16  ;;  %v610_v24 = vld [vmem:[%s12472_s3 + $0x820] sm:$0xff]  ;;  %v8330_v28 = vcombine.low %v742_v13, %v746_v16 }
  0xdc   :  { %3549 = vmatpush1.bf16.msra.mxu0 %v8242_v26  ;;  %v9371_v49 = vpack.c.bf16 %v339_v36, %v339_v36  ;;  %3590 = vmatpush1.bf16.msra.mxu1 %v8370_v29  ;;  %v9373_v53 = vpack.c.bf16 %v341_v40, %v341_v40  ;;  %v734_v25 = vld [vmem:[%s12472_s3 + $0xc00] sm:$0xff]  ;;  %v8195_v29 = vcombine.high %v606_v23, %v610_v24 }
  0xdd   :  { %3550 = vmatprep.subr.bf16.mxu0 %v8235_v30  ;;  %3591 = vmatprep.subr.bf16.mxu1 %v8363_v33  ;;  %v738_v26 = vld [vmem:[%s12472_s3 + $0xc20] sm:$0xff]  ;;  %v8194_v35 = vcombine.low %v606_v23, %v610_v24 }
  0xde   :  { %3578 = vmatprep.mubr.bf16.mxu0 %v9371_v49  ;;  %3619 = vmatprep.mubr.bf16.mxu1 %v9373_v53  ;;  %v8323_v30 = vcombine.high %v734_v25, %v738_v26  ;;  %v726_v31 = vld [vmem:[%s12472_s3 + $0xbc0] sm:$0xff]  ;;  %v8322_v36 = vcombine.low %v734_v25, %v738_v26 }
  0xdf   :  { %v730_v32 = vld [vmem:[%s12472_s3 + $0xbe0] sm:$0xff] }
  0xe0   :  { %3551 = vmatpush1.bf16.msra.mxu0 %v8234_v42  ;;  %3592 = vmatpush1.bf16.msra.mxu1 %v8362_v51  ;;  %v854_v33 = vld [vmem:[%s12472_s3 + $0xfc0] sm:$0xff]  ;;  %v8315_v37 = vcombine.high %v726_v31, %v730_v32  ;;  %v8314_v50 = vcombine.low %v726_v31, %v730_v32 }
  0xe1   :  { %3552 = vmatprep.subr.bf16.mxu0 %v8227_v52  ;;  %3593 = vmatprep.subr.bf16.mxu1 %v8355_v54  ;;  %v858_v34 = vld [vmem:[%s12472_s3 + $0xfe0] sm:$0xff] }
  0xe2   :  { %v8443_v38 = vcombine.high %v854_v33, %v858_v34  ;;  %v718_v39 = vld [vmem:[%s12472_s3 + $0xb80] sm:$0xff]  ;;  %v8442_v51 = vcombine.low %v854_v33, %v858_v34 }
  0xe3   :  { %v722_v40 = vld [vmem:[%s12472_s3 + $0xba0] sm:$0xff] }
  0xe4   :  { %3553 = vmatpush1.bf16.msra.mxu0 %v8226_v59  ;;  %3594 = vmatpush1.bf16.msra.mxu1 %v8354_v61  ;;  %v846_v41 = vld [vmem:[%s12472_s3 + $0xf80] sm:$0xff]  ;;  %v8307_v52 = vcombine.high %v718_v39, %v722_v40  ;;  %v8306_v59 = vcombine.low %v718_v39, %v722_v40 }
  0xe5   :  { %3554 = vmatprep.subr.bf16.mxu0 %v8219_v62  ;;  %3595 = vmatprep.subr.bf16.mxu1 %v8347_v63  ;;  %v850_v42 = vld [vmem:[%s12472_s3 + $0xfa0] sm:$0xff] }
  0xe6   :  { %v8435_v54 = vcombine.high %v846_v41, %v850_v42  ;;  %v710_v55 = vld [vmem:[%s12472_s3 + $0xb40] sm:$0xff]  ;;  %v8434_v61 = vcombine.low %v846_v41, %v850_v42 }
  0xe7   :  { %v714_v56 = vld [vmem:[%s12472_s3 + $0xb60] sm:$0xff] }
  0xe8   :  { %3555 = vmatpush1.bf16.msra.mxu0 %v8218_v5  ;;  %3596 = vmatpush1.bf16.msra.mxu1 %v8346_v6  ;;  %v838_v57 = vld [vmem:[%s12472_s3 + $0xf40] sm:$0xff]  ;;  %v8299_v62 = vcombine.high %v710_v55, %v714_v56  ;;  %v8298_v5 = vcombine.low %v710_v55, %v714_v56 }
  0xe9   :  { %3556 = vmatprep.subr.bf16.mxu0 %v8211_v7  ;;  %3597 = vmatprep.subr.bf16.mxu1 %v8339_v8  ;;  %v842_v58 = vld [vmem:[%s12472_s3 + $0xf60] sm:$0xff] }
  0xea   :  { %v8427_v63 = vcombine.high %v838_v57, %v842_v58  ;;  %v702_v0 = vld [vmem:[%s12472_s3 + $0xb00] sm:$0xff]  ;;  %v8426_v6 = vcombine.low %v838_v57, %v842_v58 }
  0xeb   :  { %v706_v2 = vld [vmem:[%s12472_s3 + $0xb20] sm:$0xff] }
  0xec   :  { %3557 = vmatpush1.bf16.msra.mxu0 %v8210_v18  ;;  %3598 = vmatpush1.bf16.msra.mxu1 %v8338_v19  ;;  %v830_v3 = vld [vmem:[%s12472_s3 + $0xf00] sm:$0xff]  ;;  %v8291_v7 = vcombine.high %v702_v0, %v706_v2  ;;  %v8290_v18 = vcombine.low %v702_v0, %v706_v2 }
  0xed   :  { %3558 = vmatprep.subr.bf16.mxu0 %v8203_v20  ;;  %3599 = vmatprep.subr.bf16.mxu1 %v8331_v21  ;;  %v834_v4 = vld [vmem:[%s12472_s3 + $0xf20] sm:$0xff] }
  0xee   :  { %v8419_v8 = vcombine.high %v830_v3, %v834_v4  ;;  %v694_v9 = vld [vmem:[%s12472_s3 + $0xac0] sm:$0xff]  ;;  %v8418_v19 = vcombine.low %v830_v3, %v834_v4 }
  0xef   :  { %v698_v12 = vld [vmem:[%s12472_s3 + $0xae0] sm:$0xff] }
  0xf0   :  { %3559 = vmatpush1.bf16.msra.mxu0 %v8202_v27  ;;  %3600 = vmatpush1.bf16.msra.mxu1 %v8330_v28  ;;  %v822_v13 = vld [vmem:[%s12472_s3 + $0xec0] sm:$0xff]  ;;  %v8283_v20 = vcombine.high %v694_v9, %v698_v12  ;;  %v8282_v27 = vcombine.low %v694_v9, %v698_v12  ;;  %v9498_v28 = vsub.s32 6, %v9282_v43  ;;  %v527_v9 = vld [vmem:[%s12472_s3 + $0x588] sm:$0xff] }
  0xf1   :  { %3560 = vmatprep.subr.bf16.mxu0 %v8195_v29  ;;  %3601 = vmatprep.subr.bf16.mxu1 %v8323_v30  ;;  %v826_v16 = vld [vmem:[%s12472_s3 + $0xee0] sm:$0xff]  ;;  %v9501_v30 = vsub.s32 4, %v9282_v43  ;;  %v531_v12 = vld [vmem:[%s12472_s3 + $0x5a8] sm:$0xff] }
  0xf2   :  { %v8411_v21 = vcombine.high %v822_v13, %v826_v16  ;;  %v686_v23 = vld [vmem:[%s12472_s3 + $0xa80] sm:$0xff]  ;;  %v8410_v29 = vcombine.low %v822_v13, %v826_v16 }
  0xf3   :  { %v690_v24 = vld [vmem:[%s12472_s3 + $0xaa0] sm:$0xff] }
  0xf4   :  { %3561 = vmatpush1.bf16.msra.mxu0 %v8194_v35  ;;  %3602 = vmatpush1.bf16.msra.mxu1 %v8322_v36  ;;  %v814_v25 = vld [vmem:[%s12472_s3 + $0xe80] sm:$0xff]  ;;  %v8275_v31 = vcombine.high %v686_v23, %v690_v24  ;;  %v73_v36 = vrot.slane %v9290_v45, %v9498_v28 }
  0xf5   :  { %3562 = vmatprep.subr.bf16.mxu0 %v8315_v37  ;;  %3603 = vmatprep.subr.bf16.mxu1 %v8443_v38  ;;  %v818_v26 = vld [vmem:[%s12472_s3 + $0xea0] sm:$0xff]  ;;  %v8274_v37 = vcombine.low %v686_v23, %v690_v24  ;;  %v65_v38 = vrot.slane %v9290_v45, %v9501_v30  ;;  %v519_v23 = vld [vmem:[%s12472_s3 + $0x548] sm:$0xff] }
  0xf6   :  { %v8403_v32 = vcombine.high %v814_v25, %v818_v26  ;;  %v678_v33 = vld [vmem:[%s12472_s3 + $0xa40] sm:$0xff]  ;;  %v8402_v39 = vcombine.low %v814_v25, %v818_v26  ;;  %v523_v24 = vld [vmem:[%s12472_s3 + $0x568] sm:$0xff]  ;;  %v8116_v26 = vcombine.low %v527_v9, %v531_v12 }
  0xf7   :  { %v682_v34 = vld [vmem:[%s12472_s3 + $0xa60] sm:$0xff]  ;;  %v287_v55 = vadd.f32 %v9337_v17, %v65_v38  ;;  %v539_v17 = vld [vmem:[%s12472_s3 + $0x5e8] sm:$0xff] }
  0xf8   :  { %3563 = vmatpush2.bf16.msra.mxu0 %v8314_v50  ;;  %3604 = vmatpush2.bf16.msra.mxu1 %v8442_v51  ;;  %v806_v35 = vld [vmem:[%s12472_s3 + $0xe40] sm:$0xff]  ;;  %v8267_v40 = vcombine.high %v678_v33, %v682_v34  ;;  %v375_v38 = vld [vmem:[%s12472_s3 + $0xc8] sm:$0xff] }
  0xf9   :  { %3564 = vmatprep.subr.bf16.mxu0 %v8307_v52  ;;  %3605 = vmatprep.subr.bf16.mxu1 %v8435_v54  ;;  %v810_v43 = vld [vmem:[%s12472_s3 + $0xe60] sm:$0xff]  ;;  %v328_v52 = vadd.f32 %v9348_v22, %v73_v36  ;;  %v8266_v54 = vcombine.low %v678_v33, %v682_v34  ;;  %v535_v22 = vld [vmem:[%s12472_s3 + $0x5c8] sm:$0xff]  ;;  %v338_v0 = vmax.f32 %v287_v55, 0.0 }
  0xfa   :  { %v8395_v41 = vcombine.high %v806_v35, %v810_v43  ;;  %v670_v42 = vld [vmem:[%s12472_s3 + $0xa00] sm:$0xff]  ;;  %v8394_v56 = vcombine.low %v806_v35, %v810_v43  ;;  %v8125_v4 = vcombine.high %v535_v22, %v539_v17  ;;  %v8124_v16 = vcombine.low %v535_v22, %v539_v17  ;;  %v511_v33 = vld [vmem:[%s12472_s3 + $0x508] sm:$0xff] }
  0xfb   :  { %v674_v50 = vld [vmem:[%s12472_s3 + $0xa20] sm:$0xff]  ;;  %v9559_v13 = vpack.c.bf16 %v338_v0, %v338_v0  ;;  %v515_v34 = vld [vmem:[%s12472_s3 + $0x528] sm:$0xff]  ;;  %v8108_v43 = vcombine.low %v519_v23, %v523_v24 }
  0xfc   :  { %3565 = vmatpush2.bf16.msra.mxu0 %v8306_v59  ;;  %3606 = vmatpush2.bf16.msra.mxu1 %v8434_v61  ;;  %v798_v51 = vld [vmem:[%s12472_s3 + $0xe00] sm:$0xff]  ;;  %v8259_v57 = vcombine.high %v670_v42, %v674_v50  ;;  %v407_v59 = vld [vmem:[%s12472_s3 + $0x1c8] sm:$0xff] }
  0xfd   :  { %3566 = vmatprep.subr.bf16.mxu0 %v8299_v62  ;;  %3607 = vmatprep.subr.bf16.mxu1 %v8427_v63  ;;  %v802_v45 = vld [vmem:[%s12472_s3 + $0xe20] sm:$0xff]  ;;  %v411_v61 = vld [vmem:[%s12472_s3 + $0x1e8] sm:$0xff]  ;;  %v340_v62 = vmax.f32 %v328_v52, 0.0  ;;  %v8258_v63 = vcombine.low %v670_v42, %v674_v50  ;;  %v8100_v50 = vcombine.low %v511_v33, %v515_v34 }
  0xfe   :  { %v8387_v58 = vcombine.high %v798_v51, %v802_v45  ;;  %v8386_v2 = vcombine.low %v798_v51, %v802_v45  ;;  %v7997_v3 = vcombine.high %v407_v59, %v411_v61  ;;  %v367_v52 = vld [vmem:[%s12472_s3 + $0x88] sm:$0xff] }
  0xff   :  { %v495_v55 = vld [vmem:[%s12472_s3 + $0x488] sm:$0xff] }
 0x100   :  { %3567 = vmatpush2.bf16.msra.mxu0 %v8298_v5  ;;  %3608 = vmatpush2.bf16.msra.mxu1 %v8426_v6  ;;  %v399_v5 = vld [vmem:[%s12472_s3 + $0x188] sm:$0xff] }
 0x101   :  { %3568 = vmatprep.subr.bf16.mxu0 %v8291_v7  ;;  %3609 = vmatprep.subr.bf16.mxu1 %v8419_v8  ;;  %v403_v6 = vld [vmem:[%s12472_s3 + $0x1a8] sm:$0xff]  ;;  %v9551_v7 = vpack.c.bf16 %v340_v62, %v340_v62  ;;  %v7996_v8 = vcombine.low %v407_v59, %v411_v61 }
 0x102   :  { %v7988_v25 = vcombine.low %v399_v5, %v403_v6  ;;  %v359_v22 = vld [vmem:[%s12472_s3 + $0x48] sm:$0xff] }
 0x103   :  { %v363_v17 = vld [vmem:[%s12472_s3 + $0x68] sm:$0xff] }
 0x104   :  { %3569 = vmatpush2.bf16.msra.mxu0 %v8290_v18  ;;  %3610 = vmatpush2.bf16.msra.mxu1 %v8418_v19  ;;  %v7989_v18 = vcombine.high %v399_v5, %v403_v6  ;;  %v391_v19 = vld [vmem:[%s12472_s3 + $0x148] sm:$0xff] }
 0x105   :  { %3570 = vmatprep.subr.bf16.mxu0 %v8283_v20  ;;  %3611 = vmatprep.subr.bf16.mxu1 %v8411_v21  ;;  %v395_v20 = vld [vmem:[%s12472_s3 + $0x168] sm:$0xff]  ;;  %v8117_v21 = vcombine.high %v527_v9, %v531_v12  ;;  %v7948_v12 = vcombine.low %v359_v22, %v363_v17 }
 0x106   :  { %v7980_v35 = vcombine.low %v391_v19, %v395_v20  ;;  %v487_v62 = vld [vmem:[%s12472_s3 + $0x448] sm:$0xff] }
 0x107   :  { %v351_v5 = vld [vmem:[%s12472_s3 + $0x8] sm:$0xff] }
 0x108   :  { %3571 = vmatpush2.bf16.msra.mxu0 %v8282_v27  ;;  %3612 = vmatpush2.bf16.msra.mxu1 %v8410_v29  ;;  %v7981_v27 = vcombine.high %v391_v19, %v395_v20  ;;  %v8109_v29 = vcombine.high %v519_v23, %v523_v24  ;;  %v355_v6 = vld [vmem:[%s12472_s3 + $0x28] sm:$0xff] }
 0x109   :  { %3572 = vmatprep.subr.bf16.mxu0 %v8275_v31  ;;  %3613 = vmatprep.subr.bf16.mxu1 %v8403_v32  ;;  %v383_v31 = vld [vmem:[%s12472_s3 + $0x108] sm:$0xff] }
 0x10a   :  { %v387_v32 = vld [vmem:[%s12472_s3 + $0x128] sm:$0xff] }
 0x10b   :  { %v7973_v36 = vcombine.high %v383_v31, %v387_v32  ;;  %v7972_v42 = vcombine.low %v383_v31, %v387_v32  ;;  %v483_v9 = vld [vmem:[%s12472_s3 + $0x428] sm:$0xff] }
 0x10c   :  { %3573 = vmatpush2.bf16.msra.mxu0 %v8274_v37  ;;  %3614 = vmatpush2.bf16.msra.mxu1 %v8402_v39  ;;  %v8101_v37 = vcombine.high %v511_v33, %v515_v34  ;;  %v379_v39 = vld [vmem:[%s12472_s3 + $0xe8] sm:$0xff] }
 0x10d   :  { %3574 = vmatprep.subr.bf16.mxu0 %v8267_v40  ;;  %3615 = vmatprep.subr.bf16.mxu1 %v8395_v41  ;;  %v503_v40 = vld [vmem:[%s12472_s3 + $0x4c8] sm:$0xff]  ;;  %v7965_v51 = vcombine.high %v375_v38, %v379_v39 }
 0x10e   :  { %v507_v41 = vld [vmem:[%s12472_s3 + $0x4e8] sm:$0xff] }
 0x10f   :  { %v8093_v45 = vcombine.high %v503_v40, %v507_v41  ;;  %v471_v20 = vld [vmem:[%s12472_s3 + $0x3c8] sm:$0xff] }
 0x110   :  { %3575 = vmatpush2.bf16.msra.mxu0 %v8266_v54  ;;  %3616 = vmatpush2.bf16.msra.mxu1 %v8394_v56  ;;  %v371_v54 = vld [vmem:[%s12472_s3 + $0xa8] sm:$0xff] }
 0x111   :  { %3576 = vmatprep.subr.bf16.mxu0 %v8259_v57  ;;  %3617 = vmatprep.subr.bf16.mxu1 %v8387_v58  ;;  %v499_v56 = vld [vmem:[%s12472_s3 + $0x4a8] sm:$0xff]  ;;  %v7964_v57 = vcombine.low %v375_v38, %v379_v39  ;;  %v8092_v58 = vcombine.low %v503_v40, %v507_v41  ;;  %v7957_v59 = vcombine.high %v367_v52, %v371_v54 }
 0x112   :  { %v8085_v61 = vcombine.high %v495_v55, %v499_v56  ;;  %v7956_v0 = vcombine.low %v367_v52, %v371_v54  ;;  %v599_v23 = vld [vmem:[%s12472_s3 + $0x7c8] sm:$0xff] }
 0x113   :  { %v603_v24 = vld [vmem:[%s12472_s3 + $0x7e8] sm:$0xff] }
 0x114   :  { %3577 = vmatpush2.bf16.msra.mxu0 %v8258_v63  ;;  %3618 = vmatpush2.bf16.msra.mxu1 %v8386_v2  ;;  %v491_v63 = vld [vmem:[%s12472_s3 + $0x468] sm:$0xff]  ;;  %v8084_v2 = vcombine.low %v495_v55, %v499_v56 }
 0x115   :  { %3628 = vmatprep.subr.bf16.mxu0 %v7997_v3  ;;  %3669 = vmatprep.subr.bf16.mxu1 %v8125_v4  ;;  %v7949_v3 = vcombine.high %v359_v22, %v363_v17  ;;  %v8077_v4 = vcombine.high %v487_v62, %v491_v63  ;;  %v463_v31 = vld [vmem:[%s12472_s3 + $0x388] sm:$0xff] }
 0x116   :  { %v467_v32 = vld [vmem:[%s12472_s3 + $0x3a8] sm:$0xff] }
 0x117   :  { %3579 = vmatmul.mubr.bf16.vlgmr.msra.gmra.mxu0 %v9559_v13  ;;  %3620 = vmatmul.mubr.bf16.vlgmr.msra.gmra.mxu1 %v9551_v7  ;;  %v591_v33 = vld [vmem:[%s12472_s3 + $0x788] sm:$0xff] }
 0x118   :  { %3629 = vmatpush1.bf16.msra.mxu0 %v7996_v8  ;;  %3660 = vmatprep.mubr.bf16.mxu0 %v9329_v11  ;;  %v479_v8 = vld [vmem:[%s12472_s3 + $0x408] sm:$0xff] }
 0x119   :  { %3670 = vmatpush1.bf16.msra.mxu1 %v8124_v16  ;;  %3701 = vmatprep.mubr.bf16.mxu1 %v9335_v15  ;;  %v8076_v16 = vcombine.low %v487_v62, %v491_v63  ;;  %v8069_v19 = vcombine.high %v479_v8, %v483_v9  ;;  %v595_v34 = vld [vmem:[%s12472_s3 + $0x7a8] sm:$0xff] }
 0x11a   :  { %3630 = vmatprep.subr.bf16.mxu0 %v7989_v18  ;;  %3671 = vmatprep.subr.bf16.mxu1 %v8117_v21  ;;  %v7941_v18 = vcombine.high %v351_v5, %v355_v6  ;;  %v475_v21 = vld [vmem:[%s12472_s3 + $0x3e8] sm:$0xff] }
 0x11b   :  { %v455_v38 = vld [vmem:[%s12472_s3 + $0x348] sm:$0xff] }
 0x11c   :  { %3631 = vmatpush1.bf16.msra.mxu0 %v7988_v25  ;;  %v7940_v25 = vcombine.low %v351_v5, %v355_v6  ;;  %v459_v39 = vld [vmem:[%s12472_s3 + $0x368] sm:$0xff] }
 0x11d   :  { %3672 = vmatpush1.bf16.msra.mxu1 %v8116_v26  ;;  %3632 = vmatprep.subr.bf16.mxu0 %v7981_v27  ;;  %v8068_v26 = vcombine.low %v479_v8, %v483_v9  ;;  %v8061_v27 = vcombine.high %v471_v20, %v475_v21  ;;  %v583_v40 = vld [vmem:[%s12472_s3 + $0x748] sm:$0xff] }
 0x11e   :  { %3673 = vmatprep.subr.bf16.mxu1 %v8109_v29  ;;  %v8189_v29 = vcombine.high %v599_v23, %v603_v24  ;;  %v587_v41 = vld [vmem:[%s12472_s3 + $0x768] sm:$0xff] }
 0x11f   :  { %v447_v52 = vld [vmem:[%s12472_s3 + $0x308] sm:$0xff] }
 0x120   :  { %3633 = vmatpush1.bf16.msra.mxu0 %v7980_v35  ;;  %v8060_v35 = vcombine.low %v471_v20, %v475_v21  ;;  %v451_v54 = vld [vmem:[%s12472_s3 + $0x328] sm:$0xff] }
 0x121   :  { %3674 = vmatpush1.bf16.msra.mxu1 %v8108_v43  ;;  %3634 = vmatprep.subr.bf16.mxu0 %v7973_v36  ;;  %v8188_v43 = vcombine.low %v599_v23, %v603_v24  ;;  %v8053_v36 = vcombine.high %v463_v31, %v467_v32  ;;  %v575_v55 = vld [vmem:[%s12472_s3 + $0x708] sm:$0xff] }
 0x122   :  { %3675 = vmatprep.subr.bf16.mxu1 %v8101_v37  ;;  %v8181_v37 = vcombine.high %v591_v33, %v595_v34  ;;  %v579_v56 = vld [vmem:[%s12472_s3 + $0x728] sm:$0xff] }
 0x123   :  { %v439_v22 = vld [vmem:[%s12472_s3 + $0x2c8] sm:$0xff] }
 0x124   :  { %3635 = vmatpush1.bf16.msra.mxu0 %v7972_v42  ;;  %v8052_v42 = vcombine.low %v463_v31, %v467_v32  ;;  %v443_v17 = vld [vmem:[%s12472_s3 + $0x2e8] sm:$0xff] }
 0x125   :  { %3676 = vmatpush1.bf16.msra.mxu1 %v8100_v50  ;;  %3636 = vmatprep.subr.bf16.mxu0 %v7965_v51  ;;  %v8180_v50 = vcombine.low %v591_v33, %v595_v34  ;;  %v8045_v51 = vcombine.high %v455_v38, %v459_v39  ;;  %v567_v62 = vld [vmem:[%s12472_s3 + $0x6c8] sm:$0xff] }
 0x126   :  { %3677 = vmatprep.subr.bf16.mxu1 %v8093_v45  ;;  %v8173_v45 = vcombine.high %v583_v40, %v587_v41  ;;  %v571_v63 = vld [vmem:[%s12472_s3 + $0x6e8] sm:$0xff] }
 0x127   :  { %v431_v5 = vld [vmem:[%s12472_s3 + $0x288] sm:$0xff] }
 0x128   :  { %3637 = vmatpush1.bf16.msra.mxu0 %v7964_v57  ;;  %v8044_v57 = vcombine.low %v455_v38, %v459_v39  ;;  %v435_v6 = vld [vmem:[%s12472_s3 + $0x2a8] sm:$0xff] }
 0x129   :  { %3678 = vmatpush1.bf16.msra.mxu1 %v8092_v58  ;;  %3638 = vmatprep.subr.bf16.mxu0 %v7957_v59  ;;  %v8172_v58 = vcombine.low %v583_v40, %v587_v41  ;;  %v8037_v59 = vcombine.high %v447_v52, %v451_v54  ;;  %v559_v8 = vld [vmem:[%s12472_s3 + $0x688] sm:$0xff] }
 0x12a   :  { %3679 = vmatprep.subr.bf16.mxu1 %v8085_v61  ;;  %v8165_v61 = vcombine.high %v575_v55, %v579_v56  ;;  %v563_v9 = vld [vmem:[%s12472_s3 + $0x6a8] sm:$0xff] }
 0x12b   :  { %v423_v20 = vld [vmem:[%s12472_s3 + $0x248] sm:$0xff] }
 0x12c   :  { %3639 = vmatpush1.bf16.msra.mxu0 %v7956_v0  ;;  %v8036_v0 = vcombine.low %v447_v52, %v451_v54  ;;  %v427_v21 = vld [vmem:[%s12472_s3 + $0x268] sm:$0xff] }
 0x12d   :  { %3680 = vmatpush1.bf16.msra.mxu1 %v8084_v2  ;;  %3640 = vmatprep.subr.bf16.mxu0 %v7949_v3  ;;  %v8164_v2 = vcombine.low %v575_v55, %v579_v56  ;;  %v8029_v3 = vcombine.high %v439_v22, %v443_v17  ;;  %v551_v23 = vld [vmem:[%s12472_s3 + $0x648] sm:$0xff] }
 0x12e   :  { %3681 = vmatprep.subr.bf16.mxu1 %v8077_v4  ;;  %v8157_v4 = vcombine.high %v567_v62, %v571_v63  ;;  %v555_v24 = vld [vmem:[%s12472_s3 + $0x668] sm:$0xff] }
 0x12f   :  { %v415_v31 = vld [vmem:[%s12472_s3 + $0x208] sm:$0xff] }
 0x130   :  { %3641 = vmatpush1.bf16.msra.mxu0 %v7948_v12  ;;  %v8028_v12 = vcombine.low %v439_v22, %v443_v17  ;;  %v419_v32 = vld [vmem:[%s12472_s3 + $0x228] sm:$0xff] }
 0x131   :  { %3682 = vmatpush1.bf16.msra.mxu1 %v8076_v16  ;;  %3642 = vmatprep.subr.bf16.mxu0 %v7941_v18  ;;  %v8156_v16 = vcombine.low %v567_v62, %v571_v63  ;;  %v8021_v18 = vcombine.high %v431_v5, %v435_v6  ;;  %v543_v33 = vld [vmem:[%s12472_s3 + $0x608] sm:$0xff] }
 0x132   :  { %3683 = vmatprep.subr.bf16.mxu1 %v8069_v19  ;;  %v8149_v19 = vcombine.high %v559_v8, %v563_v9  ;;  %v547_v34 = vld [vmem:[%s12472_s3 + $0x628] sm:$0xff] }
 0x133   :  { %v663_v38 = vld [vmem:[%s12472_s3 + $0x9c8] sm:$0xff] }
 0x134   :  { %3643 = vmatpush1.bf16.msra.mxu0 %v7940_v25  ;;  %v8020_v25 = vcombine.low %v431_v5, %v435_v6  ;;  %v667_v39 = vld [vmem:[%s12472_s3 + $0x9e8] sm:$0xff] }
 0x135   :  { %3684 = vmatpush1.bf16.msra.mxu1 %v8068_v26  ;;  %3644 = vmatprep.subr.bf16.mxu0 %v8061_v27  ;;  %v8148_v26 = vcombine.low %v559_v8, %v563_v9  ;;  %v8013_v27 = vcombine.high %v423_v20, %v427_v21  ;;  %v791_v40 = vld [vmem:[%s12472_s3 + $0xdc8] sm:$0xff]  ;;  %v8252_v55 = vcombine.low %v663_v38, %v667_v39 }
 0x136   :  { %3685 = vmatprep.subr.bf16.mxu1 %v8189_v29  ;;  %v8141_v29 = vcombine.high %v551_v23, %v555_v24  ;;  %v795_v41 = vld [vmem:[%s12472_s3 + $0xde8] sm:$0xff] }
 0x137   :  { %v655_v52 = vld [vmem:[%s12472_s3 + $0x988] sm:$0xff] }
 0x138   :  { %3645 = vmatpush2.bf16.msra.mxu0 %v8060_v35  ;;  %v8012_v35 = vcombine.low %v423_v20, %v427_v21  ;;  %v659_v54 = vld [vmem:[%s12472_s3 + $0x9a8] sm:$0xff] }
 0x139   :  { %3686 = vmatpush2.bf16.msra.mxu1 %v8188_v43  ;;  %3646 = vmatprep.subr.bf16.mxu0 %v8053_v36  ;;  %v8140_v43 = vcombine.low %v551_v23, %v555_v24  ;;  %v8005_v36 = vcombine.high %v415_v31, %v419_v32  ;;  %v783_v56 = vld [vmem:[%s12472_s3 + $0xd88] sm:$0xff] }
 0x13a   :  { %3687 = vmatprep.subr.bf16.mxu1 %v8181_v37  ;;  %v8133_v37 = vcombine.high %v543_v33, %v547_v34  ;;  %v651_v22 = vld [vmem:[%s12472_s3 + $0x968] sm:$0xff] }
 0x13b   :  { %v775_v62 = vld [vmem:[%s12472_s3 + $0xd48] sm:$0xff] }
 0x13c   :  { %3647 = vmatpush2.bf16.msra.mxu0 %v8052_v42  ;;  %v8004_v42 = vcombine.low %v415_v31, %v419_v32  ;;  %v779_v63 = vld [vmem:[%s12472_s3 + $0xd68] sm:$0xff] }
 0x13d   :  { %3688 = vmatpush2.bf16.msra.mxu1 %v8180_v50  ;;  %3648 = vmatprep.subr.bf16.mxu0 %v8045_v51  ;;  %v8132_v50 = vcombine.low %v543_v33, %v547_v34  ;;  %v8253_v51 = vcombine.high %v663_v38, %v667_v39  ;;  %v639_v5 = vld [vmem:[%s12472_s3 + $0x908] sm:$0xff] }
 0x13e   :  { %3689 = vmatprep.subr.bf16.mxu1 %v8173_v45  ;;  %v8381_v45 = vcombine.high %v791_v40, %v795_v41  ;;  %v643_v6 = vld [vmem:[%s12472_s3 + $0x928] sm:$0xff] }
 0x13f   :  { %v767_v8 = vld [vmem:[%s12472_s3 + $0xd08] sm:$0xff] }
 0x140   :  { %3649 = vmatpush2.bf16.msra.mxu0 %v8044_v57  ;;  %v787_v57 = vld [vmem:[%s12472_s3 + $0xda8] sm:$0xff] }
 0x141   :  { %3690 = vmatpush2.bf16.msra.mxu1 %v8172_v58  ;;  %3650 = vmatprep.subr.bf16.mxu0 %v8037_v59  ;;  %v8380_v58 = vcombine.low %v791_v40, %v795_v41  ;;  %v8245_v59 = vcombine.high %v655_v52, %v659_v54  ;;  %v8373_v17 = vcombine.high %v783_v56, %v787_v57  ;;  %v771_v9 = vld [vmem:[%s12472_s3 + $0xd28] sm:$0xff] }
 0x142   :  { %3691 = vmatprep.subr.bf16.mxu1 %v8165_v61  ;;  %v647_v61 = vld [vmem:[%s12472_s3 + $0x948] sm:$0xff] }
 0x143   :  { %v631_v20 = vld [vmem:[%s12472_s3 + $0x8c8] sm:$0xff] }
 0x144   :  { %3651 = vmatpush2.bf16.msra.mxu0 %v8036_v0  ;;  %v8244_v0 = vcombine.low %v655_v52, %v659_v54  ;;  %v635_v21 = vld [vmem:[%s12472_s3 + $0x8e8] sm:$0xff] }
 0x145   :  { %3692 = vmatpush2.bf16.msra.mxu1 %v8164_v2  ;;  %3652 = vmatprep.subr.bf16.mxu0 %v8029_v3  ;;  %v8372_v2 = vcombine.low %v783_v56, %v787_v57  ;;  %v8237_v3 = vcombine.high %v647_v61, %v651_v22  ;;  %v759_v23 = vld [vmem:[%s12472_s3 + $0xcc8] sm:$0xff] }
 0x146   :  { %3693 = vmatprep.subr.bf16.mxu1 %v8157_v4  ;;  %v8365_v4 = vcombine.high %v775_v62, %v779_v63  ;;  %v763_v24 = vld [vmem:[%s12472_s3 + $0xce8] sm:$0xff] }
 0x147   :  { %v623_v31 = vld [vmem:[%s12472_s3 + $0x888] sm:$0xff] }
 0x148   :  { %3653 = vmatpush2.bf16.msra.mxu0 %v8028_v12  ;;  %v8236_v12 = vcombine.low %v647_v61, %v651_v22  ;;  %v627_v32 = vld [vmem:[%s12472_s3 + $0x8a8] sm:$0xff] }
 0x149   :  { %3694 = vmatpush2.bf16.msra.mxu1 %v8156_v16  ;;  %3654 = vmatprep.subr.bf16.mxu0 %v8021_v18  ;;  %v8364_v16 = vcombine.low %v775_v62, %v779_v63  ;;  %v8229_v18 = vcombine.high %v639_v5, %v643_v6  ;;  %v751_v33 = vld [vmem:[%s12472_s3 + $0xc88] sm:$0xff] }
 0x14a   :  { %3695 = vmatprep.subr.bf16.mxu1 %v8149_v19  ;;  %v8357_v19 = vcombine.high %v767_v8, %v771_v9  ;;  %v755_v34 = vld [vmem:[%s12472_s3 + $0xca8] sm:$0xff] }
 0x14b   :  { %v615_v38 = vld [vmem:[%s12472_s3 + $0x848] sm:$0xff] }
 0x14c   :  { %3655 = vmatpush2.bf16.msra.mxu0 %v8020_v25  ;;  %v8228_v25 = vcombine.low %v639_v5, %v643_v6  ;;  %v619_v39 = vld [vmem:[%s12472_s3 + $0x868] sm:$0xff] }
 0x14d   :  { %3696 = vmatpush2.bf16.msra.mxu1 %v8148_v26  ;;  %3656 = vmatprep.subr.bf16.mxu0 %v8013_v27  ;;  %v8356_v26 = vcombine.low %v767_v8, %v771_v9  ;;  %v8221_v27 = vcombine.high %v631_v20, %v635_v21  ;;  %v743_v40 = vld [vmem:[%s12472_s3 + $0xc48] sm:$0xff]  ;;  %v8204_v57 = vcombine.low %v615_v38, %v619_v39 }
 0x14e   :  { %3697 = vmatprep.subr.bf16.mxu1 %v8141_v29  ;;  %v8349_v29 = vcombine.high %v759_v23, %v763_v24  ;;  %v747_v41 = vld [vmem:[%s12472_s3 + $0xc68] sm:$0xff] }
 0x14f   :  { %v607_v52 = vld [vmem:[%s12472_s3 + $0x808] sm:$0xff] }
 0x150   :  { %3657 = vmatpush2.bf16.msra.mxu0 %v8012_v35  ;;  %v8220_v35 = vcombine.low %v631_v20, %v635_v21  ;;  %v611_v54 = vld [vmem:[%s12472_s3 + $0x828] sm:$0xff] }
 0x151   :  { %3698 = vmatpush2.bf16.msra.mxu1 %v8140_v43  ;;  %3658 = vmatprep.subr.bf16.mxu0 %v8005_v36  ;;  %v8348_v43 = vcombine.low %v759_v23, %v763_v24  ;;  %v8213_v36 = vcombine.high %v623_v31, %v627_v32  ;;  %v739_v56 = vld [vmem:[%s12472_s3 + $0xc28] sm:$0xff] }
 0x152   :  { %3699 = vmatprep.subr.bf16.mxu1 %v8133_v37  ;;  %v8341_v37 = vcombine.high %v751_v33, %v755_v34  ;;  %v727_v22 = vld [vmem:[%s12472_s3 + $0xbc8] sm:$0xff] }
 0x153   :  { %v855_v62 = vld [vmem:[%s12472_s3 + $0xfc8] sm:$0xff] }
 0x154   :  { %3659 = vmatpush2.bf16.msra.mxu0 %v8004_v42  ;;  %v8212_v42 = vcombine.low %v623_v31, %v627_v32  ;;  %v859_v63 = vld [vmem:[%s12472_s3 + $0xfe8] sm:$0xff] }
 0x155   :  { %3700 = vmatpush2.bf16.msra.mxu1 %v8132_v50  ;;  %3710 = vmatprep.subr.bf16.mxu0 %v8253_v51  ;;  %v8340_v50 = vcombine.low %v751_v33, %v755_v34  ;;  %v8205_v51 = vcombine.high %v615_v38, %v619_v39  ;;  %v719_v5 = vld [vmem:[%s12472_s3 + $0xb88] sm:$0xff] }
 0x156   :  { %3751 = vmatprep.subr.bf16.mxu1 %v8381_v45  ;;  %v8333_v45 = vcombine.high %v743_v40, %v747_v41  ;;  %v723_v6 = vld [vmem:[%s12472_s3 + $0xba8] sm:$0xff] }
 0x157   :  { %3661 = vmatmul.mubr.bf16.vlgmr.msra.gmra.mxu0 %v9333_v14  ;;  %v847_v8 = vld [vmem:[%s12472_s3 + $0xf88] sm:$0xff] }
 0x158   :  { %3702 = vmatmul.mubr.bf16.vlgmr.msra.gmra.mxu1 %v9327_v10  ;;  %3711 = vmatpush1.bf16.msra.mxu0 %v8252_v55  ;;  %v735_v55 = vld [vmem:[%s12472_s3 + $0xc08] sm:$0xff] }
 0x159   :  { %3742 = vmatprep.mubr.bf16.mxu0 %v9371_v49  ;;  %3752 = vmatpush1.bf16.msra.mxu1 %v8380_v58  ;;  %v8332_v58 = vcombine.low %v743_v40, %v747_v41  ;;  %v8325_v61 = vcombine.high %v735_v55, %v739_v56  ;;  %v851_v9 = vld [vmem:[%s12472_s3 + $0xfa8] sm:$0xff] }
 0x15a   :  { %3783 = vmatprep.mubr.bf16.mxu1 %v9373_v53  ;;  %3712 = vmatprep.subr.bf16.mxu0 %v8245_v59  ;;  %v8197_v59 = vcombine.high %v607_v52, %v611_v54  ;;  %v711_v20 = vld [vmem:[%s12472_s3 + $0xb48] sm:$0xff] }
 0x15b   :  { %3753 = vmatprep.subr.bf16.mxu1 %v8373_v17  ;;  %v731_v17 = vld [vmem:[%s12472_s3 + $0xbe8] sm:$0xff] }
 0x15c   :  { %3713 = vmatpush1.bf16.msra.mxu0 %v8244_v0  ;;  %v8196_v0 = vcombine.low %v607_v52, %v611_v54  ;;  %v715_v21 = vld [vmem:[%s12472_s3 + $0xb68] sm:$0xff] }
 0x15d   :  { %3754 = vmatpush1.bf16.msra.mxu1 %v8372_v2  ;;  %3714 = vmatprep.subr.bf16.mxu0 %v8237_v3  ;;  %v8324_v2 = vcombine.low %v735_v55, %v739_v56  ;;  %v8317_v3 = vcombine.high %v727_v22, %v731_v17  ;;  %v839_v23 = vld [vmem:[%s12472_s3 + $0xf48] sm:$0xff] }
 0x15e   :  { %3755 = vmatprep.subr.bf16.mxu1 %v8365_v4  ;;  %v8445_v4 = vcombine.high %v855_v62, %v859_v63  ;;  %v843_v24 = vld [vmem:[%s12472_s3 + $0xf68] sm:$0xff] }
 0x15f   :  { %v703_v31 = vld [vmem:[%s12472_s3 + $0xb08] sm:$0xff] }
 0x160   :  { %3715 = vmatpush1.bf16.msra.mxu0 %v8236_v12  ;;  %v8316_v12 = vcombine.low %v727_v22, %v731_v17  ;;  %v707_v32 = vld [vmem:[%s12472_s3 + $0xb28] sm:$0xff] }
 0x161   :  { %3756 = vmatpush1.bf16.msra.mxu1 %v8364_v16  ;;  %3716 = vmatprep.subr.bf16.mxu0 %v8229_v18  ;;  %v8444_v16 = vcombine.low %v855_v62, %v859_v63  ;;  %v8309_v18 = vcombine.high %v719_v5, %v723_v6  ;;  %v831_v33 = vld [vmem:[%s12472_s3 + $0xf08] sm:$0xff] }
 0x162   :  { %3757 = vmatprep.subr.bf16.mxu1 %v8357_v19  ;;  %v8437_v19 = vcombine.high %v847_v8, %v851_v9  ;;  %v835_v34 = vld [vmem:[%s12472_s3 + $0xf28] sm:$0xff] }
 0x163   :  { %v695_v38 = vld [vmem:[%s12472_s3 + $0xac8] sm:$0xff] }
 0x164   :  { %3717 = vmatpush1.bf16.msra.mxu0 %v8228_v25  ;;  %v8308_v25 = vcombine.low %v719_v5, %v723_v6  ;;  %v699_v39 = vld [vmem:[%s12472_s3 + $0xae8] sm:$0xff] }
 0x165   :  { %3758 = vmatpush1.bf16.msra.mxu1 %v8356_v26  ;;  %3718 = vmatprep.subr.bf16.mxu0 %v8221_v27  ;;  %v8436_v26 = vcombine.low %v847_v8, %v851_v9  ;;  %v8301_v27 = vcombine.high %v711_v20, %v715_v21  ;;  %v823_v40 = vld [vmem:[%s12472_s3 + $0xec8] sm:$0xff] }
 0x166   :  { %3759 = vmatprep.subr.bf16.mxu1 %v8349_v29  ;;  %v8429_v29 = vcombine.high %v839_v23, %v843_v24  ;;  %v827_v41 = vld [vmem:[%s12472_s3 + $0xee8] sm:$0xff] }
 0x167   :  { %v687_v52 = vld [vmem:[%s12472_s3 + $0xa88] sm:$0xff] }
 0x168   :  { %3719 = vmatpush1.bf16.msra.mxu0 %v8220_v35  ;;  %v8300_v35 = vcombine.low %v711_v20, %v715_v21  ;;  %v691_v54 = vld [vmem:[%s12472_s3 + $0xaa8] sm:$0xff]  ;;  %v408_v20 = vld [vmem:[%s12472_s3 + $0x1d0] sm:$0xff] }
 0x169   :  { %3760 = vmatpush1.bf16.msra.mxu1 %v8348_v43  ;;  %3720 = vmatprep.subr.bf16.mxu0 %v8213_v36  ;;  %v8428_v43 = vcombine.low %v839_v23, %v843_v24  ;;  %v8293_v36 = vcombine.high %v703_v31, %v707_v32  ;;  %v815_v55 = vld [vmem:[%s12472_s3 + $0xe88] sm:$0xff]  ;;  %v412_v21 = vld [vmem:[%s12472_s3 + $0x1f0] sm:$0xff] }
 0x16a   :  { %3761 = vmatprep.subr.bf16.mxu1 %v8341_v37  ;;  %v8421_v37 = vcombine.high %v831_v33, %v835_v34  ;;  %v819_v56 = vld [vmem:[%s12472_s3 + $0xea8] sm:$0xff]  ;;  %v536_v23 = vld [vmem:[%s12472_s3 + $0x5d0] sm:$0xff] }
 0x16b   :  { %v679_v22 = vld [vmem:[%s12472_s3 + $0xa48] sm:$0xff]  ;;  %v540_v24 = vld [vmem:[%s12472_s3 + $0x5f0] sm:$0xff] }
 0x16c   :  { %3721 = vmatpush1.bf16.msra.mxu0 %v8212_v42  ;;  %v8292_v42 = vcombine.low %v703_v31, %v707_v32  ;;  %v683_v17 = vld [vmem:[%s12472_s3 + $0xa68] sm:$0xff]  ;;  %v8127_v31 = vcombine.high %v536_v23, %v540_v24  ;;  %v400_v32 = vld [vmem:[%s12472_s3 + $0x190] sm:$0xff] }
 0x16d   :  { %3762 = vmatpush1.bf16.msra.mxu1 %v8340_v50  ;;  %3722 = vmatprep.subr.bf16.mxu0 %v8205_v51  ;;  %v8420_v50 = vcombine.low %v831_v33, %v835_v34  ;;  %v8285_v51 = vcombine.high %v695_v38, %v699_v39  ;;  %v807_v62 = vld [vmem:[%s12472_s3 + $0xe48] sm:$0xff]  ;;  %v404_v33 = vld [vmem:[%s12472_s3 + $0x1b0] sm:$0xff]  ;;  %v7998_v34 = vcombine.low %v408_v20, %v412_v21 }
 0x16e   :  { %3763 = vmatprep.subr.bf16.mxu1 %v8333_v45  ;;  %v8413_v45 = vcombine.high %v823_v40, %v827_v41  ;;  %v811_v63 = vld [vmem:[%s12472_s3 + $0xe68] sm:$0xff] }
 0x16f   :  { %v671_v5 = vld [vmem:[%s12472_s3 + $0xa08] sm:$0xff] }
 0x170   :  { %3723 = vmatpush1.bf16.msra.mxu0 %v8204_v57  ;;  %v8284_v57 = vcombine.low %v695_v38, %v699_v39  ;;  %v675_v6 = vld [vmem:[%s12472_s3 + $0xa28] sm:$0xff]  ;;  %v7991_v39 = vcombine.high %v400_v32, %v404_v33 }
 0x171   :  { %3764 = vmatpush1.bf16.msra.mxu1 %v8332_v58  ;;  %3724 = vmatprep.subr.bf16.mxu0 %v8197_v59  ;;  %v8412_v58 = vcombine.low %v823_v40, %v827_v41  ;;  %v8277_v59 = vcombine.high %v687_v52, %v691_v54  ;;  %v799_v8 = vld [vmem:[%s12472_s3 + $0xe08] sm:$0xff]  ;;  %v392_v40 = vld [vmem:[%s12472_s3 + $0x150] sm:$0xff] }
 0x172   :  { %3765 = vmatprep.subr.bf16.mxu1 %v8325_v61  ;;  %v8405_v61 = vcombine.high %v815_v55, %v819_v56  ;;  %v803_v9 = vld [vmem:[%s12472_s3 + $0xe28] sm:$0xff]  ;;  %v396_v41 = vld [vmem:[%s12472_s3 + $0x170] sm:$0xff] }
 0x174   :  { %3725 = vmatpush1.bf16.msra.mxu0 %v8196_v0  ;;  %v8276_v0 = vcombine.low %v687_v52, %v691_v54 }
 0x175   :  { %3766 = vmatpush1.bf16.msra.mxu1 %v8324_v2  ;;  %3726 = vmatprep.subr.bf16.mxu0 %v8317_v3  ;;  %v8404_v2 = vcombine.low %v815_v55, %v819_v56  ;;  %v8269_v3 = vcombine.high %v679_v22, %v683_v17  ;;  %v7990_v55 = vcombine.low %v400_v32, %v404_v33  ;;  %v372_v32 = vld [vmem:[%s12472_s3 + $0xb0] sm:$0xff] }
 0x176   :  { %3767 = vmatprep.subr.bf16.mxu1 %v8445_v4  ;;  %v8397_v4 = vcombine.high %v807_v62, %v811_v63  ;;  %v496_v33 = vld [vmem:[%s12472_s3 + $0x490] sm:$0xff] }
 0x178   :  { %3727 = vmatpush2.bf16.msra.mxu0 %v8316_v12  ;;  %v8268_v12 = vcombine.low %v679_v22, %v683_v17 }
 0x179   :  { %3768 = vmatpush2.bf16.msra.mxu1 %v8444_v16  ;;  %3728 = vmatprep.subr.bf16.mxu0 %v8309_v18  ;;  %v8396_v16 = vcombine.low %v807_v62, %v811_v63  ;;  %v8261_v18 = vcombine.high %v671_v5, %v675_v6  ;;  %v384_v62 = vld [vmem:[%s12472_s3 + $0x110] sm:$0xff] }
 0x17a   :  { %3769 = vmatprep.subr.bf16.mxu1 %v8437_v19  ;;  %v8389_v19 = vcombine.high %v799_v8, %v803_v9  ;;  %v388_v63 = vld [vmem:[%s12472_s3 + $0x130] sm:$0xff] }
 0x17c   :  { %3729 = vmatpush2.bf16.msra.mxu0 %v8308_v25  ;;  %v8260_v25 = vcombine.low %v671_v5, %v675_v6  ;;  %v7982_v6 = vcombine.low %v392_v40, %v396_v41 }
 0x17d   :  { %3770 = vmatpush2.bf16.msra.mxu1 %v8436_v26  ;;  %3730 = vmatprep.subr.bf16.mxu0 %v8301_v27  ;;  %v8388_v26 = vcombine.low %v799_v8, %v803_v9  ;;  %v7999_v27 = vcombine.high %v408_v20, %v412_v21  ;;  %v380_v20 = vld [vmem:[%s12472_s3 + $0xf0] sm:$0xff] }
 0x17e   :  { %3771 = vmatprep.subr.bf16.mxu1 %v8429_v29  ;;  %v9944_v29 = vld [vmem:[%s12474_s4] sm:$0xff]  ;;  %v504_v21 = vld [vmem:[%s12472_s3 + $0x4d0] sm:$0xff] }
 0x17f   :  { %v871_v38 = vrot.slane %v9944_v29, %v9296_v47 }
 0x180   :  { %3731 = vmatpush2.bf16.msra.mxu0 %v8300_v35  ;;  %v867_v35 = vrot.slane %v9944_v29, %v9285_v44 }
 0x181   :  { %3772 = vmatpush2.bf16.msra.mxu1 %v8428_v43  ;;  %3732 = vmatprep.subr.bf16.mxu0 %v8293_v36  ;;  %v528_v43 = vld [vmem:[%s12472_s3 + $0x590] sm:$0xff] }
 0x182   :  { %3773 = vmatprep.subr.bf16.mxu1 %v8421_v37  ;;  %v532_v36 = vld [vmem:[%s12472_s3 + $0x5b0] sm:$0xff]  ;;  %v8126_v37 = vcombine.low %v536_v23, %v540_v24  ;;  %v7974_v24 = vcombine.low %v384_v62, %v388_v63 }
 0x183   :  { %v508_v23 = vld [vmem:[%s12472_s3 + $0x4f0] sm:$0xff] }
 0x184   :  { %3733 = vmatpush2.bf16.msra.mxu0 %v8292_v42 }
 0x185   :  { %3774 = vmatpush2.bf16.msra.mxu1 %v8420_v50  ;;  %3734 = vmatprep.subr.bf16.mxu0 %v8285_v51  ;;  %v8119_v50 = vcombine.high %v528_v43, %v532_v36  ;;  %v520_v51 = vld [vmem:[%s12472_s3 + $0x550] sm:$0xff] }
 0x186   :  { %3775 = vmatprep.subr.bf16.mxu1 %v8413_v45  ;;  %v524_v45 = vld [vmem:[%s12472_s3 + $0x570] sm:$0xff] }
 0x187   :  { %v8111_v17 = vcombine.high %v520_v51, %v524_v45  ;;  %v8110_v9 = vcombine.low %v520_v51, %v524_v45 }
 0x188   :  { %3735 = vmatpush2.bf16.msra.mxu0 %v8284_v57  ;;  %v8118_v57 = vcombine.low %v528_v43, %v532_v36  ;;  %v8094_v43 = vcombine.low %v504_v21, %v508_v23 }
 0x189   :  { %3776 = vmatpush2.bf16.msra.mxu1 %v8412_v58  ;;  %3736 = vmatprep.subr.bf16.mxu0 %v8277_v59  ;;  %v7983_v58 = vcombine.high %v392_v40, %v396_v41  ;;  %v488_v40 = vld [vmem:[%s12472_s3 + $0x450] sm:$0xff] }
 0x18a   :  { %3777 = vmatprep.subr.bf16.mxu1 %v8405_v61  ;;  %v492_v41 = vld [vmem:[%s12472_s3 + $0x470] sm:$0xff] }
 0x18b   :  { %v8079_v45 = vcombine.high %v488_v40, %v492_v41 }
 0x18c   :  { %3737 = vmatpush2.bf16.msra.mxu0 %v8276_v0 }
 0x18d   :  { %3778 = vmatpush2.bf16.msra.mxu1 %v8404_v2  ;;  %3738 = vmatprep.subr.bf16.mxu0 %v8269_v3  ;;  %v512_v2 = vld [vmem:[%s12472_s3 + $0x510] sm:$0xff] }
 0x18e   :  { %3779 = vmatprep.subr.bf16.mxu1 %v8397_v4  ;;  %v516_v3 = vld [vmem:[%s12472_s3 + $0x530] sm:$0xff] }
 0x190   :  { %3739 = vmatpush2.bf16.msra.mxu0 %v8268_v12  ;;  %v7975_v12 = vcombine.high %v384_v62, %v388_v63  ;;  %v476_v62 = vld [vmem:[%s12472_s3 + $0x3f0] sm:$0xff] }
 0x191   :  { %3780 = vmatpush2.bf16.msra.mxu1 %v8396_v16  ;;  %3740 = vmatprep.subr.bf16.mxu0 %v8261_v18  ;;  %v8103_v18 = vcombine.high %v512_v2, %v516_v3  ;;  %v600_v63 = vld [vmem:[%s12472_s3 + $0x7d0] sm:$0xff] }
 0x192   :  { %3781 = vmatprep.subr.bf16.mxu1 %v8389_v19  ;;  %v376_v19 = vld [vmem:[%s12472_s3 + $0xd0] sm:$0xff] }
 0x194   :  { %3741 = vmatpush2.bf16.msra.mxu0 %v8260_v25  ;;  %v8102_v25 = vcombine.low %v512_v2, %v516_v3 }
 0x195   :  { %3782 = vmatpush2.bf16.msra.mxu1 %v8388_v26  ;;  %3792 = vmatprep.subr.bf16.mxu0 %v7999_v27  ;;  %v7967_v26 = vcombine.high %v376_v19, %v380_v20  ;;  %v8095_v27 = vcombine.high %v504_v21, %v508_v23  ;;  %v456_v23 = vld [vmem:[%s12472_s3 + $0x350] sm:$0xff] }
 0x196   :  { %3833 = vmatprep.subr.bf16.mxu1 %v8127_v31  ;;  %v368_v31 = vld [vmem:[%s12472_s3 + $0x90] sm:$0xff] }
 0x197   :  { %3743 = vmatmul.mubr.bf16.vlgmr.msra.gmra.mxu0 %v9559_v13  ;;  %v3498_v42 = vpop.f32.mrf.mxu0  ;;  %v3539_v54 = vpop.f32.mrf.mxu1  ;;  %v7959_v36 = vcombine.high %v368_v31, %v372_v32 }
 0x198   :  { %3784 = vmatmul.mubr.bf16.vlgmr.msra.gmra.mxu1 %v9551_v7  ;;  %v3499_v52 = vadd.f32 %v3498_v42, %v867_v35  ;;  %3793 = vmatpush1.bf16.msra.mxu0 %v7998_v34  ;;  %v500_v34 = vld [vmem:[%s12472_s3 + $0x4b0] sm:$0xff]  ;;  %v7966_v35 = vcombine.low %v376_v19, %v380_v20  ;;  %v7958_v42 = vcombine.low %v368_v31, %v372_v32 }
 0x199   :  { %3824 = vmatprep.mubr.bf16.mxu0 %v9329_v11  ;;  %3834 = vmatpush1.bf16.msra.mxu1 %v8126_v37  ;;  %v3500_v56 = vpop.f32.mrf.mxu0  ;;  %v3541_v22 = vpop.f32.mrf.mxu1  ;;  %v8087_v37 = vcombine.high %v496_v33, %v500_v34 }
 0x19a   :  { %v9977_v59 = vadd.f32 %v3539_v54, %v3499_v52  ;;  %3865 = vmatprep.mubr.bf16.mxu1 %v9335_v15  ;;  %v3501_v61 = vadd.f32 %v3500_v56, %v871_v38  ;;  %3794 = vmatprep.subr.bf16.mxu0 %v7991_v39  ;;  %v360_v38 = vld [vmem:[%s12472_s3 + $0x50] sm:$0xff] }
 0x19b   :  { %3835 = vmatprep.subr.bf16.mxu1 %v8119_v50  ;;  %v3502_v0 = vpop.f32.mrf.mxu0  ;;  %v3543_v5 = vpop.f32.mrf.mxu1  ;;  %v364_v39 = vld [vmem:[%s12472_s3 + $0x70] sm:$0xff]  ;;  %v8086_v50 = vcombine.low %v496_v33, %v500_v34 }
 0x19c   :  { %v9992_v4 = vadd.f32 %v3541_v22, %v3501_v61  ;;  %3795 = vmatpush1.bf16.msra.mxu0 %v7990_v55  ;;  %v7951_v51 = vcombine.high %v360_v38, %v364_v39  ;;  %v352_v52 = vld [vmem:[%s12472_s3 + $0x10] sm:$0xff] }
 0x19d   :  { %3836 = vmatpush1.bf16.msra.mxu1 %v8118_v57  ;;  %v3503_v8 = vpop.f32.mrf.mxu0  ;;  %3796 = vmatprep.subr.bf16.mxu0 %v7983_v58  ;;  %v3544_v16 = vpop.f32.mrf.mxu1  ;;  %v356_v54 = vld [vmem:[%s12472_s3 + $0x30] sm:$0xff]  ;;  %v7950_v57 = vcombine.low %v360_v38, %v364_v39  ;;  %v8078_v58 = vcombine.low %v488_v40, %v492_v41 }
 0x19e   :  { %3837 = vmatprep.subr.bf16.mxu1 %v8111_v17  ;;  %v480_v55 = vld [vmem:[%s12472_s3 + $0x410] sm:$0xff]  ;;  %v7943_v61 = vcombine.high %v352_v52, %v356_v54  ;;  %v7942_v2 = vcombine.low %v352_v52, %v356_v54 }
 0x19f   :  { %v484_v56 = vld [vmem:[%s12472_s3 + $0x430] sm:$0xff] }
 0x1a0   :  { %3797 = vmatpush1.bf16.msra.mxu0 %v7982_v6  ;;  %v8071_v22 = vcombine.high %v480_v55, %v484_v56  ;;  %v472_v17 = vld [vmem:[%s12472_s3 + $0x3d0] sm:$0xff]  ;;  %v8070_v3 = vcombine.low %v480_v55, %v484_v56 }
 0x1a1   :  { %3838 = vmatpush1.bf16.msra.mxu1 %v8110_v9  ;;  %3798 = vmatprep.subr.bf16.mxu0 %v7975_v12  ;;  %v604_v0 = vld [vmem:[%s12472_s3 + $0x7f0] sm:$0xff]  ;;  %v8063_v5 = vcombine.high %v472_v17, %v476_v62 }
 0x1a2   :  { %3839 = vmatprep.subr.bf16.mxu1 %v8103_v18  ;;  %v8191_v6 = vcombine.high %v600_v63, %v604_v0  ;;  %v464_v8 = vld [vmem:[%s12472_s3 + $0x390] sm:$0xff]  ;;  %v8062_v18 = vcombine.low %v472_v17, %v476_v62  ;;  %v8190_v19 = vcombine.low %v600_v63, %v604_v0 }
 0x1a3   :  { %v468_v9 = vld [vmem:[%s12472_s3 + $0x3b0] sm:$0xff] }
 0x1a4   :  { %3799 = vmatpush1.bf16.msra.mxu0 %v7974_v24  ;;  %v592_v12 = vld [vmem:[%s12472_s3 + $0x790] sm:$0xff]  ;;  %v8055_v20 = vcombine.high %v464_v8, %v468_v9 }
 0x1a5   :  { %3840 = vmatpush1.bf16.msra.mxu1 %v8102_v25  ;;  %3800 = vmatprep.subr.bf16.mxu0 %v7967_v26  ;;  %v596_v16 = vld [vmem:[%s12472_s3 + $0x7b0] sm:$0xff] }
 0x1a6   :  { %3841 = vmatprep.subr.bf16.mxu1 %v8095_v27  ;;  %v8183_v21 = vcombine.high %v592_v12, %v596_v16  ;;  %v460_v24 = vld [vmem:[%s12472_s3 + $0x370] sm:$0xff]  ;;  %v8054_v27 = vcombine.low %v464_v8, %v468_v9  ;;  %v8182_v31 = vcombine.low %v592_v12, %v596_v16 }
 0x1a7   :  { %v584_v25 = vld [vmem:[%s12472_s3 + $0x750] sm:$0xff]  ;;  %v8047_v32 = vcombine.high %v456_v23, %v460_v24 }
 0x1a8   :  { %3801 = vmatpush1.bf16.msra.mxu0 %v7966_v35  ;;  %v588_v26 = vld [vmem:[%s12472_s3 + $0x770] sm:$0xff] }
 0x1a9   :  { %3842 = vmatpush1.bf16.msra.mxu1 %v8094_v43  ;;  %3802 = vmatprep.subr.bf16.mxu0 %v7959_v36  ;;  %v8175_v33 = vcombine.high %v584_v25, %v588_v26  ;;  %v448_v34 = vld [vmem:[%s12472_s3 + $0x310] sm:$0xff]  ;;  %v8174_v38 = vcombine.low %v584_v25, %v588_v26 }
 0x1aa   :  { %3843 = vmatprep.subr.bf16.mxu1 %v8087_v37  ;;  %v452_v35 = vld [vmem:[%s12472_s3 + $0x330] sm:$0xff]  ;;  %v8046_v37 = vcombine.low %v456_v23, %v460_v24 }
 0x1ab   :  { %v576_v43 = vld [vmem:[%s12472_s3 + $0x710] sm:$0xff]  ;;  %v8039_v39 = vcombine.high %v448_v34, %v452_v35 }
 0x1ac   :  { %3803 = vmatpush1.bf16.msra.mxu0 %v7958_v42  ;;  %v580_v36 = vld [vmem:[%s12472_s3 + $0x730] sm:$0xff] }
 0x1ad   :  { %3844 = vmatpush1.bf16.msra.mxu1 %v8086_v50  ;;  %3804 = vmatprep.subr.bf16.mxu0 %v7951_v51  ;;  %v8167_v40 = vcombine.high %v576_v43, %v580_v36  ;;  %v440_v41 = vld [vmem:[%s12472_s3 + $0x2d0] sm:$0xff]  ;;  %v8166_v52 = vcombine.low %v576_v43, %v580_v36 }
 0x1ae   :  { %3845 = vmatprep.subr.bf16.mxu1 %v8079_v45  ;;  %v444_v42 = vld [vmem:[%s12472_s3 + $0x2f0] sm:$0xff]  ;;  %v8038_v45 = vcombine.low %v448_v34, %v452_v35 }
 0x1af   :  { %v568_v50 = vld [vmem:[%s12472_s3 + $0x6d0] sm:$0xff]  ;;  %v8031_v54 = vcombine.high %v440_v41, %v444_v42 }
 0x1b0   :  { %3805 = vmatpush1.bf16.msra.mxu0 %v7950_v57  ;;  %v572_v51 = vld [vmem:[%s12472_s3 + $0x6f0] sm:$0xff] }
 0x1b1   :  { %3846 = vmatpush1.bf16.msra.mxu1 %v8078_v58  ;;  %3806 = vmatprep.subr.bf16.mxu0 %v7943_v61  ;;  %v8159_v55 = vcombine.high %v568_v50, %v572_v51  ;;  %v432_v56 = vld [vmem:[%s12472_s3 + $0x290] sm:$0xff]  ;;  %v8158_v17 = vcombine.low %v568_v50, %v572_v51 }
 0x1b2   :  { %3847 = vmatprep.subr.bf16.mxu1 %v8071_v22  ;;  %v436_v57 = vld [vmem:[%s12472_s3 + $0x2b0] sm:$0xff]  ;;  %v8030_v22 = vcombine.low %v440_v41, %v444_v42 }
 0x1b3   :  { %v560_v58 = vld [vmem:[%s12472_s3 + $0x690] sm:$0xff]  ;;  %v8023_v62 = vcombine.high %v432_v56, %v436_v57 }
 0x1b4   :  { %3807 = vmatpush1.bf16.msra.mxu0 %v7942_v2  ;;  %v564_v61 = vld [vmem:[%s12472_s3 + $0x6b0] sm:$0xff] }
 0x1b5   :  { %3848 = vmatpush1.bf16.msra.mxu1 %v8070_v3  ;;  %3808 = vmatprep.subr.bf16.mxu0 %v8063_v5  ;;  %v8151_v63 = vcombine.high %v560_v58, %v564_v61  ;;  %v424_v0 = vld [vmem:[%s12472_s3 + $0x250] sm:$0xff]  ;;  %v8150_v8 = vcombine.low %v560_v58, %v564_v61 }
 0x1b6   :  { %3849 = vmatprep.subr.bf16.mxu1 %v8191_v6  ;;  %v428_v2 = vld [vmem:[%s12472_s3 + $0x270] sm:$0xff]  ;;  %v8022_v6 = vcombine.low %v432_v56, %v436_v57 }
 0x1b7   :  { %v552_v3 = vld [vmem:[%s12472_s3 + $0x650] sm:$0xff]  ;;  %v8015_v9 = vcombine.high %v424_v0, %v428_v2 }
 0x1b8   :  { %3809 = vmatpush2.bf16.msra.mxu0 %v8062_v18  ;;  %v556_v5 = vld [vmem:[%s12472_s3 + $0x670] sm:$0xff] }
 0x1b9   :  { %3850 = vmatpush2.bf16.msra.mxu1 %v8190_v19  ;;  %3810 = vmatprep.subr.bf16.mxu0 %v8055_v20  ;;  %v8143_v12 = vcombine.high %v552_v3, %v556_v5  ;;  %v416_v16 = vld [vmem:[%s12472_s3 + $0x210] sm:$0xff]  ;;  %v8142_v23 = vcombine.low %v552_v3, %v556_v5 }
 0x1ba   :  { %3851 = vmatprep.subr.bf16.mxu1 %v8183_v21  ;;  %v420_v18 = vld [vmem:[%s12472_s3 + $0x230] sm:$0xff]  ;;  %v8014_v21 = vcombine.low %v424_v0, %v428_v2 }
 0x1bb   :  { %v544_v19 = vld [vmem:[%s12472_s3 + $0x610] sm:$0xff]  ;;  %v8007_v24 = vcombine.high %v416_v16, %v420_v18 }
 0x1bc   :  { %3811 = vmatpush2.bf16.msra.mxu0 %v8054_v27  ;;  %v548_v20 = vld [vmem:[%s12472_s3 + $0x630] sm:$0xff] }
 0x1bd   :  { %3852 = vmatpush2.bf16.msra.mxu1 %v8182_v31  ;;  %3812 = vmatprep.subr.bf16.mxu0 %v8047_v32  ;;  %v8135_v25 = vcombine.high %v544_v19, %v548_v20  ;;  %v664_v26 = vld [vmem:[%s12472_s3 + $0x9d0] sm:$0xff]  ;;  %v8134_v34 = vcombine.low %v544_v19, %v548_v20 }
 0x1be   :  { %3853 = vmatprep.subr.bf16.mxu1 %v8175_v33  ;;  %v668_v27 = vld [vmem:[%s12472_s3 + $0x9f0] sm:$0xff]  ;;  %v8006_v33 = vcombine.low %v416_v16, %v420_v18 }
 0x1bf   :  { %v792_v31 = vld [vmem:[%s12472_s3 + $0xdd0] sm:$0xff]  ;;  %v8255_v35 = vcombine.high %v664_v26, %v668_v27 }
 0x1c0   :  { %3813 = vmatpush2.bf16.msra.mxu0 %v8046_v37  ;;  %v796_v32 = vld [vmem:[%s12472_s3 + $0xdf0] sm:$0xff] }
 0x1c1   :  { %3854 = vmatpush2.bf16.msra.mxu1 %v8174_v38  ;;  %3814 = vmatprep.subr.bf16.mxu0 %v8039_v39  ;;  %v8383_v43 = vcombine.high %v792_v31, %v796_v32  ;;  %v656_v36 = vld [vmem:[%s12472_s3 + $0x990] sm:$0xff]  ;;  %v8254_v38 = vcombine.low %v664_v26, %v668_v27  ;;  %v8382_v41 = vcombine.low %v792_v31, %v796_v32 }
 0x1c2   :  { %3855 = vmatprep.subr.bf16.mxu1 %v8167_v40  ;;  %v660_v37 = vld [vmem:[%s12472_s3 + $0x9b0] sm:$0xff] }
 0x1c3   :  { %v784_v39 = vld [vmem:[%s12472_s3 + $0xd90] sm:$0xff]  ;;  %v8247_v42 = vcombine.high %v656_v36, %v660_v37  ;;  %v8246_v58 = vcombine.low %v656_v36, %v660_v37 }
 0x1c4   :  { %3815 = vmatpush2.bf16.msra.mxu0 %v8038_v45  ;;  %v788_v40 = vld [vmem:[%s12472_s3 + $0xdb0] sm:$0xff] }
 0x1c5   :  { %3856 = vmatpush2.bf16.msra.mxu1 %v8166_v52  ;;  %3816 = vmatprep.subr.bf16.mxu0 %v8031_v54  ;;  %v648_v50 = vld [vmem:[%s12472_s3 + $0x950] sm:$0xff]  ;;  %v8375_v52 = vcombine.high %v784_v39, %v788_v40 }
 0x1c6   :  { %3857 = vmatprep.subr.bf16.mxu1 %v8159_v55  ;;  %v652_v51 = vld [vmem:[%s12472_s3 + $0x970] sm:$0xff] }
 0x1c7   :  { %v776_v54 = vld [vmem:[%s12472_s3 + $0xd50] sm:$0xff] }
 0x1c8   :  { %3817 = vmatpush2.bf16.msra.mxu0 %v8030_v22  ;;  %v780_v55 = vld [vmem:[%s12472_s3 + $0xd70] sm:$0xff]  ;;  %v8374_v22 = vcombine.low %v784_v39, %v788_v40 }
 0x1c9   :  { %3858 = vmatpush2.bf16.msra.mxu1 %v8158_v17  ;;  %3818 = vmatprep.subr.bf16.mxu0 %v8023_v62  ;;  %v8239_v17 = vcombine.high %v648_v50, %v652_v51  ;;  %v640_v2 = vld [vmem:[%s12472_s3 + $0x910] sm:$0xff]  ;;  %v8366_v18 = vcombine.low %v776_v54, %v780_v55 }
 0x1ca   :  { %3859 = vmatprep.subr.bf16.mxu1 %v8151_v63  ;;  %v644_v3 = vld [vmem:[%s12472_s3 + $0x930] sm:$0xff] }
 0x1cb   :  { %v8231_v19 = vcombine.high %v640_v2, %v644_v3  ;;  %v764_v26 = vld [vmem:[%s12472_s3 + $0xcf0] sm:$0xff]  ;;  %v8230_v27 = vcombine.low %v640_v2, %v644_v3 }
 0x1cc   :  { %3819 = vmatpush2.bf16.msra.mxu0 %v8022_v6  ;;  %v768_v6 = vld [vmem:[%s12472_s3 + $0xd10] sm:$0xff] }
 0x1cd   :  { %3860 = vmatpush2.bf16.msra.mxu1 %v8150_v8  ;;  %3820 = vmatprep.subr.bf16.mxu0 %v8015_v9  ;;  %v756_v36 = vld [vmem:[%s12472_s3 + $0xcb0] sm:$0xff] }
 0x1ce   :  { %3861 = vmatprep.subr.bf16.mxu1 %v8143_v12  ;;  %v8238_v12 = vcombine.low %v648_v50, %v652_v51  ;;  %v744_v50 = vld [vmem:[%s12472_s3 + $0xc50] sm:$0xff] }
 0x1cf   :  { %v748_v51 = vld [vmem:[%s12472_s3 + $0xc70] sm:$0xff] }
 0x1d0   :  { %3821 = vmatpush2.bf16.msra.mxu0 %v8014_v21  ;;  %v732_v2 = vld [vmem:[%s12472_s3 + $0xbf0] sm:$0xff] }
 0x1d1   :  { %3862 = vmatpush2.bf16.msra.mxu1 %v8142_v23  ;;  %3822 = vmatprep.subr.bf16.mxu0 %v8007_v24  ;;  %v632_v23 = vld [vmem:[%s12472_s3 + $0x8d0] sm:$0xff] }
 0x1d2   :  { %3863 = vmatprep.subr.bf16.mxu1 %v8135_v25  ;;  %v636_v24 = vld [vmem:[%s12472_s3 + $0x8f0] sm:$0xff] }
 0x1d3   :  { %v760_v25 = vld [vmem:[%s12472_s3 + $0xcd0] sm:$0xff]  ;;  %v8223_v32 = vcombine.high %v632_v23, %v636_v24  ;;  %v8222_v37 = vcombine.low %v632_v23, %v636_v24 }
 0x1d4   :  { %3823 = vmatpush2.bf16.msra.mxu0 %v8006_v33  ;;  %v8351_v33 = vcombine.high %v760_v25, %v764_v26  ;;  %v856_v3 = vld [vmem:[%s12472_s3 + $0xfd0] sm:$0xff] }
 0x1d5   :  { %3864 = vmatpush2.bf16.msra.mxu1 %v8134_v34  ;;  %3874 = vmatprep.subr.bf16.mxu0 %v8255_v35  ;;  %v624_v34 = vld [vmem:[%s12472_s3 + $0x890] sm:$0xff] }
 0x1d6   :  { %3915 = vmatprep.subr.bf16.mxu1 %v8383_v43  ;;  %v628_v35 = vld [vmem:[%s12472_s3 + $0x8b0] sm:$0xff] }
 0x1d7   :  { %v3580_v45 = vpop.f32.mrf.mxu0  ;;  %3825 = vmatmul.mubr.bf16.vlgmr.msra.gmra.mxu0 %v9333_v14  ;;  %v3621_v57 = vpop.f32.mrf.mxu1  ;;  %v752_v43 = vld [vmem:[%s12472_s3 + $0xc90] sm:$0xff]  ;;  %v8215_v39 = vcombine.high %v624_v34, %v628_v35 }
 0x1d8   :  { %v3581_v56 = vadd.f32 %v3580_v45, %v9977_v59  ;;  %3866 = vmatmul.mubr.bf16.vlgmr.msra.gmra.mxu1 %v9327_v10  ;;  %3875 = vmatpush1.bf16.msra.mxu0 %v8254_v38  ;;  %v8367_v59 = vcombine.high %v776_v54, %v780_v55  ;;  %v8350_v38 = vcombine.low %v760_v25, %v764_v26  ;;  %v712_v26 = vld [vmem:[%s12472_s3 + $0xb50] sm:$0xff] }
 0x1d9   :  { %3906 = vmatprep.mubr.bf16.mxu0 %v9371_v49  ;;  %3916 = vmatpush1.bf16.msra.mxu1 %v8382_v41  ;;  %v3582_v61 = vpop.f32.mrf.mxu0  ;;  %v3623_v0 = vpop.f32.mrf.mxu1  ;;  %v8343_v40 = vcombine.high %v752_v43, %v756_v36  ;;  %v616_v41 = vld [vmem:[%s12472_s3 + $0x850] sm:$0xff]  ;;  %v8214_v45 = vcombine.low %v624_v34, %v628_v35  ;;  %v8335_v55 = vcombine.high %v744_v50, %v748_v51 }
 0x1da   :  { %v10178_v62 = vadd.f32 %v3621_v57, %v3581_v56  ;;  %3947 = vmatprep.mubr.bf16.mxu1 %v9373_v53  ;;  %v3583_v63 = vadd.f32 %v3582_v61, %v9992_v4  ;;  %3876 = vmatprep.subr.bf16.mxu0 %v8247_v42  ;;  %v772_v4 = vld [vmem:[%s12472_s3 + $0xd30] sm:$0xff] }
 0x1db   :  { %v3584_v5 = vpop.f32.mrf.mxu0  ;;  %3917 = vmatprep.subr.bf16.mxu1 %v8375_v52  ;;  %v3625_v9 = vpop.f32.mrf.mxu1  ;;  %v8359_v21 = vcombine.high %v768_v6, %v772_v4  ;;  %v8358_v31 = vcombine.low %v768_v6, %v772_v4  ;;  %v620_v42 = vld [vmem:[%s12472_s3 + $0x870] sm:$0xff]  ;;  %v8342_v52 = vcombine.low %v752_v43, %v756_v36 }
 0x1dc   :  { %v10194_v8 = vadd.f32 %v3623_v0, %v3583_v63  ;;  %3877 = vmatpush1.bf16.msra.mxu0 %v8246_v58  ;;  %v8207_v54 = vcombine.high %v616_v41, %v620_v42  ;;  %v608_v56 = vld [vmem:[%s12472_s3 + $0x810] sm:$0xff] }
 0x1dd   :  { %3918 = vmatpush1.bf16.msra.mxu1 %v8374_v22  ;;  %v3585_v16 = vpop.f32.mrf.mxu0  ;;  %3878 = vmatprep.subr.bf16.mxu0 %v8239_v17  ;;  %v3626_v20 = vpop.f32.mrf.mxu1  ;;  %v612_v57 = vld [vmem:[%s12472_s3 + $0x830] sm:$0xff]  ;;  %v8206_v22 = vcombine.low %v616_v41, %v620_v42  ;;  %v8334_v17 = vcombine.low %v744_v50, %v748_v51 }
 0x1de   :  { %3919 = vmatprep.subr.bf16.mxu1 %v8367_v59  ;;  %v736_v58 = vld [vmem:[%s12472_s3 + $0xc10] sm:$0xff]  ;;  %v8199_v63 = vcombine.high %v608_v56, %v612_v57  ;;  %v8198_v6 = vcombine.low %v608_v56, %v612_v57 }
 0x1df   :  { %v740_v61 = vld [vmem:[%s12472_s3 + $0xc30] sm:$0xff] }
 0x1e0   :  { %3879 = vmatpush1.bf16.msra.mxu0 %v8238_v12  ;;  %v8327_v0 = vcombine.high %v736_v58, %v740_v61  ;;  %v728_v59 = vld [vmem:[%s12472_s3 + $0xbd0] sm:$0xff]  ;;  %v8326_v4 = vcombine.low %v736_v58, %v740_v61 }
 0x1e1   :  { %3920 = vmatpush1.bf16.msra.mxu1 %v8366_v18  ;;  %3880 = vmatprep.subr.bf16.mxu0 %v8231_v19  ;;  %v860_v5 = vld [vmem:[%s12472_s3 + $0xff0] sm:$0xff]  ;;  %v8319_v9 = vcombine.high %v728_v59, %v732_v2 }
 0x1e2   :  { %3921 = vmatprep.subr.bf16.mxu1 %v8359_v21  ;;  %v8447_v12 = vcombine.high %v856_v3, %v860_v5  ;;  %v720_v16 = vld [vmem:[%s12472_s3 + $0xb90] sm:$0xff]  ;;  %v8318_v21 = vcombine.low %v728_v59, %v732_v2  ;;  %v8446_v23 = vcombine.low %v856_v3, %v860_v5 }
 0x1e3   :  { %v724_v18 = vld [vmem:[%s12472_s3 + $0xbb0] sm:$0xff] }
 0x1e4   :  { %3881 = vmatpush1.bf16.msra.mxu0 %v8230_v27  ;;  %v848_v19 = vld [vmem:[%s12472_s3 + $0xf90] sm:$0xff]  ;;  %v8311_v24 = vcombine.high %v720_v16, %v724_v18 }
 0x1e5   :  { %3922 = vmatpush1.bf16.msra.mxu1 %v8358_v31  ;;  %3882 = vmatprep.subr.bf16.mxu0 %v8223_v32  ;;  %v852_v20 = vld [vmem:[%s12472_s3 + $0xfb0] sm:$0xff] }
 0x1e6   :  { %3923 = vmatprep.subr.bf16.mxu1 %v8351_v33  ;;  %v8439_v25 = vcombine.high %v848_v19, %v852_v20  ;;  %v716_v27 = vld [vmem:[%s12472_s3 + $0xb70] sm:$0xff]  ;;  %v8310_v33 = vcombine.low %v720_v16, %v724_v18  ;;  %v8438_v34 = vcombine.low %v848_v19, %v852_v20 }
 0x1e7   :  { %v840_v31 = vld [vmem:[%s12472_s3 + $0xf50] sm:$0xff]  ;;  %v8303_v35 = vcombine.high %v712_v26, %v716_v27 }
 0x1e8   :  { %3883 = vmatpush1.bf16.msra.mxu0 %v8222_v37  ;;  %v844_v32 = vld [vmem:[%s12472_s3 + $0xf70] sm:$0xff] }
 0x1e9   :  { %3924 = vmatpush1.bf16.msra.mxu1 %v8350_v38  ;;  %3884 = vmatprep.subr.bf16.mxu0 %v8215_v39  ;;  %v8431_v43 = vcombine.high %v840_v31, %v844_v32  ;;  %v704_v36 = vld [vmem:[%s12472_s3 + $0xb10] sm:$0xff]  ;;  %v8430_v41 = vcombine.low %v840_v31, %v844_v32  ;;  %v409_v32 = vld [vmem:[%s12472_s3 + $0x1d8] sm:$0xff] }
 0x1ea   :  { %3925 = vmatprep.subr.bf16.mxu1 %v8343_v40  ;;  %v708_v37 = vld [vmem:[%s12472_s3 + $0xb30] sm:$0xff]  ;;  %v8302_v40 = vcombine.low %v712_v26, %v716_v27 }
 0x1eb   :  { %v832_v38 = vld [vmem:[%s12472_s3 + $0xf10] sm:$0xff]  ;;  %v8295_v42 = vcombine.high %v704_v36, %v708_v37 }
 0x1ec   :  { %3885 = vmatpush1.bf16.msra.mxu0 %v8214_v45  ;;  %v836_v39 = vld [vmem:[%s12472_s3 + $0xf30] sm:$0xff] }
 0x1ed   :  { %3926 = vmatpush1.bf16.msra.mxu1 %v8342_v52  ;;  %3886 = vmatprep.subr.bf16.mxu0 %v8207_v54  ;;  %v8423_v50 = vcombine.high %v832_v38, %v836_v39  ;;  %v696_v51 = vld [vmem:[%s12472_s3 + $0xad0] sm:$0xff]  ;;  %v8422_v56 = vcombine.low %v832_v38, %v836_v39  ;;  %v401_v39 = vld [vmem:[%s12472_s3 + $0x198] sm:$0xff] }
 0x1ee   :  { %3927 = vmatprep.subr.bf16.mxu1 %v8335_v55  ;;  %v700_v45 = vld [vmem:[%s12472_s3 + $0xaf0] sm:$0xff]  ;;  %v8294_v55 = vcombine.low %v704_v36, %v708_v37 }
 0x1ef   :  { %v824_v52 = vld [vmem:[%s12472_s3 + $0xed0] sm:$0xff]  ;;  %v8287_v57 = vcombine.high %v696_v51, %v700_v45 }
 0x1f0   :  { %3887 = vmatpush1.bf16.msra.mxu0 %v8206_v22  ;;  %v828_v54 = vld [vmem:[%s12472_s3 + $0xef0] sm:$0xff] }
 0x1f1   :  { %3928 = vmatpush1.bf16.msra.mxu1 %v8334_v17  ;;  %3888 = vmatprep.subr.bf16.mxu0 %v8199_v63  ;;  %v8415_v58 = vcombine.high %v824_v52, %v828_v54  ;;  %v688_v61 = vld [vmem:[%s12472_s3 + $0xa90] sm:$0xff]  ;;  %v8414_v59 = vcombine.low %v824_v52, %v828_v54  ;;  %v879_v52 = vrot.slane %v9944_v29, %v9299_v48 }
 0x1f2   :  { %3929 = vmatprep.subr.bf16.mxu1 %v8327_v0  ;;  %v692_v22 = vld [vmem:[%s12472_s3 + $0xab0] sm:$0xff]  ;;  %v8286_v0 = vcombine.low %v696_v51, %v700_v45  ;;  %v533_v51 = vld [vmem:[%s12472_s3 + $0x5b8] sm:$0xff] }
 0x1f3   :  { %v816_v17 = vld [vmem:[%s12472_s3 + $0xe90] sm:$0xff]  ;;  %v8279_v2 = vcombine.high %v688_v61, %v692_v22 }
 0x1f4   :  { %3889 = vmatpush1.bf16.msra.mxu0 %v8198_v6  ;;  %v820_v63 = vld [vmem:[%s12472_s3 + $0xeb0] sm:$0xff] }
 0x1f5   :  { %3930 = vmatpush1.bf16.msra.mxu1 %v8326_v4  ;;  %3890 = vmatprep.subr.bf16.mxu0 %v8319_v9  ;;  %v8407_v3 = vcombine.high %v816_v17, %v820_v63  ;;  %v680_v5 = vld [vmem:[%s12472_s3 + $0xa50] sm:$0xff]  ;;  %v8406_v16 = vcombine.low %v816_v17, %v820_v63 }
 0x1f6   :  { %3931 = vmatprep.subr.bf16.mxu1 %v8447_v12  ;;  %v684_v6 = vld [vmem:[%s12472_s3 + $0xa70] sm:$0xff]  ;;  %v8278_v12 = vcombine.low %v688_v61, %v692_v22  ;;  %v521_v61 = vld [vmem:[%s12472_s3 + $0x558] sm:$0xff] }
 0x1f7   :  { %v808_v4 = vld [vmem:[%s12472_s3 + $0xe50] sm:$0xff]  ;;  %v8271_v18 = vcombine.high %v680_v5, %v684_v6 }
 0x1f8   :  { %3891 = vmatpush2.bf16.msra.mxu0 %v8318_v21  ;;  %v812_v9 = vld [vmem:[%s12472_s3 + $0xe70] sm:$0xff] }
 0x1f9   :  { %3932 = vmatpush2.bf16.msra.mxu1 %v8446_v23  ;;  %3892 = vmatprep.subr.bf16.mxu0 %v8311_v24  ;;  %v8399_v19 = vcombine.high %v808_v4, %v812_v9  ;;  %v672_v20 = vld [vmem:[%s12472_s3 + $0xa10] sm:$0xff]  ;;  %v8398_v26 = vcombine.low %v808_v4, %v812_v9  ;;  %v385_v9 = vld [vmem:[%s12472_s3 + $0x118] sm:$0xff] }
 0x1fa   :  { %3933 = vmatprep.subr.bf16.mxu1 %v8439_v25  ;;  %v676_v21 = vld [vmem:[%s12472_s3 + $0xa30] sm:$0xff]  ;;  %v8270_v25 = vcombine.low %v680_v5, %v684_v6 }
 0x1fb   :  { %v800_v23 = vld [vmem:[%s12472_s3 + $0xe10] sm:$0xff]  ;;  %v8263_v27 = vcombine.high %v672_v20, %v676_v21 }
 0x1fc   :  { %3893 = vmatpush2.bf16.msra.mxu0 %v8310_v33  ;;  %v804_v24 = vld [vmem:[%s12472_s3 + $0xe30] sm:$0xff]  ;;  %v413_v33 = vld [vmem:[%s12472_s3 + $0x1f8] sm:$0xff] }
 0x1fd   :  { %3934 = vmatpush2.bf16.msra.mxu1 %v8438_v34  ;;  %3894 = vmatprep.subr.bf16.mxu0 %v8303_v35  ;;  %v8391_v31 = vcombine.high %v800_v23, %v804_v24  ;;  %v537_v34 = vld [vmem:[%s12472_s3 + $0x5d8] sm:$0xff]  ;;  %v8390_v36 = vcombine.low %v800_v23, %v804_v24  ;;  %v8001_v37 = vcombine.high %v409_v32, %v413_v33 }
 0x1fe   :  { %3935 = vmatprep.subr.bf16.mxu1 %v8431_v43  ;;  %v541_v35 = vld [vmem:[%s12472_s3 + $0x5f8] sm:$0xff]  ;;  %v8262_v43 = vcombine.low %v672_v20, %v676_v21 }
 0x1ff   :  { %v8129_v38 = vcombine.high %v537_v34, %v541_v35  ;;  %v8128_v45 = vcombine.low %v537_v34, %v541_v35 }
 0x200   :  { %3895 = vmatpush2.bf16.msra.mxu0 %v8302_v40  ;;  %v405_v40 = vld [vmem:[%s12472_s3 + $0x1b8] sm:$0xff] }
 0x201   :  { %3936 = vmatpush2.bf16.msra.mxu1 %v8430_v41  ;;  %3896 = vmatprep.subr.bf16.mxu0 %v8295_v42  ;;  %v875_v41 = vrot.slane %v9944_v29, %v9293_v46  ;;  %v8000_v42 = vcombine.low %v409_v32, %v413_v33  ;;  %v7993_v54 = vcombine.high %v401_v39, %v405_v40  ;;  %v525_v29 = vld [vmem:[%s12472_s3 + $0x578] sm:$0xff] }
 0x202   :  { %3937 = vmatprep.subr.bf16.mxu1 %v8423_v50  ;;  %v529_v50 = vld [vmem:[%s12472_s3 + $0x598] sm:$0xff]  ;;  %v7992_v63 = vcombine.low %v401_v39, %v405_v40  ;;  %v8113_v4 = vcombine.high %v521_v61, %v525_v29  ;;  %v8112_v23 = vcombine.low %v521_v61, %v525_v29 }
 0x203   :  { %v505_v32 = vld [vmem:[%s12472_s3 + $0x4d8] sm:$0xff] }
 0x204   :  { %3897 = vmatpush2.bf16.msra.mxu0 %v8294_v55  ;;  %v393_v55 = vld [vmem:[%s12472_s3 + $0x158] sm:$0xff] }
 0x205   :  { %3938 = vmatpush2.bf16.msra.mxu1 %v8422_v56  ;;  %3898 = vmatprep.subr.bf16.mxu0 %v8287_v57  ;;  %v397_v56 = vld [vmem:[%s12472_s3 + $0x178] sm:$0xff] }
 0x206   :  { %3939 = vmatprep.subr.bf16.mxu1 %v8415_v58  ;;  %v8121_v58 = vcombine.high %v529_v50, %v533_v51  ;;  %v7984_v20 = vcombine.low %v393_v55, %v397_v56  ;;  %v509_v33 = vld [vmem:[%s12472_s3 + $0x4f8] sm:$0xff] }
 0x207   :  { %v497_v39 = vld [vmem:[%s12472_s3 + $0x498] sm:$0xff] }
 0x208   :  { %3899 = vmatpush2.bf16.msra.mxu0 %v8286_v0  ;;  %v501_v40 = vld [vmem:[%s12472_s3 + $0x4b8] sm:$0xff] }
 0x209   :  { %3940 = vmatpush2.bf16.msra.mxu1 %v8414_v59  ;;  %3900 = vmatprep.subr.bf16.mxu0 %v8279_v2  ;;  %v8120_v59 = vcombine.low %v529_v50, %v533_v51  ;;  %v7985_v2 = vcombine.high %v393_v55, %v397_v56  ;;  %v8089_v51 = vcombine.high %v497_v39, %v501_v40  ;;  %v493_v55 = vld [vmem:[%s12472_s3 + $0x478] sm:$0xff] }
 0x20a   :  { %3941 = vmatprep.subr.bf16.mxu1 %v8407_v3  ;;  %v353_v29 = vld [vmem:[%s12472_s3 + $0x18] sm:$0xff] }
 0x20c   :  { %3901 = vmatpush2.bf16.msra.mxu0 %v8278_v12 }
 0x20d   :  { %3942 = vmatpush2.bf16.msra.mxu1 %v8406_v16  ;;  %3902 = vmatprep.subr.bf16.mxu0 %v8271_v18  ;;  %v513_v16 = vld [vmem:[%s12472_s3 + $0x518] sm:$0xff] }
 0x20e   :  { %3943 = vmatprep.subr.bf16.mxu1 %v8399_v19 }
 0x210   :  { %3903 = vmatpush2.bf16.msra.mxu0 %v8270_v25 }
 0x211   :  { %3944 = vmatpush2.bf16.msra.mxu1 %v8398_v26  ;;  %3904 = vmatprep.subr.bf16.mxu0 %v8263_v27  ;;  %v377_v27 = vld [vmem:[%s12472_s3 + $0xd8] sm:$0xff] }
 0x212   :  { %3945 = vmatprep.subr.bf16.mxu1 %v8391_v31  ;;  %v381_v31 = vld [vmem:[%s12472_s3 + $0xf8] sm:$0xff] }
 0x214   :  { %3905 = vmatpush2.bf16.msra.mxu0 %v8262_v43  ;;  %v7969_v43 = vcombine.high %v377_v27, %v381_v31 }
 0x215   :  { %3946 = vmatpush2.bf16.msra.mxu1 %v8390_v36  ;;  %3956 = vmatprep.subr.bf16.mxu0 %v8001_v37  ;;  %v8097_v36 = vcombine.high %v505_v32, %v509_v33  ;;  %v369_v37 = vld [vmem:[%s12472_s3 + $0x98] sm:$0xff] }
 0x216   :  { %3997 = vmatprep.subr.bf16.mxu1 %v8129_v38  ;;  %v373_v38 = vld [vmem:[%s12472_s3 + $0xb8] sm:$0xff] }
 0x217   :  { %v3662_v57 = vpop.f32.mrf.mxu0  ;;  %3907 = vmatmul.mubr.bf16.vlgmr.msra.gmra.mxu0 %v9559_v13  ;;  %v7961_v50 = vcombine.high %v369_v37, %v373_v38  ;;  %v7960_v56 = vcombine.low %v369_v37, %v373_v38 }
 0x218   :  { %v3663_v22 = vadd.f32 %v3662_v57, %v875_v41  ;;  %v3703_v17 = vpop.f32.mrf.mxu1  ;;  %3948 = vmatmul.mubr.bf16.vlgmr.msra.gmra.mxu1 %v9551_v7  ;;  %3957 = vmatpush1.bf16.msra.mxu0 %v8000_v42  ;;  %v7968_v41 = vcombine.low %v377_v27, %v381_v31  ;;  %v8096_v42 = vcombine.low %v505_v32, %v509_v33  ;;  %v457_v32 = vld [vmem:[%s12472_s3 + $0x358] sm:$0xff] }
 0x219   :  { %3988 = vmatprep.mubr.bf16.mxu0 %v9329_v11  ;;  %3998 = vmatpush1.bf16.msra.mxu1 %v8128_v45  ;;  %v3664_v0 = vpop.f32.mrf.mxu0  ;;  %v389_v11 = vld [vmem:[%s12472_s3 + $0x138] sm:$0xff]  ;;  %v8088_v57 = vcombine.low %v497_v39, %v501_v40 }
 0x21a   :  { %v10383_v3 = vadd.f32 %v3703_v17, %v3663_v22  ;;  %4029 = vmatprep.mubr.bf16.mxu1 %v9335_v15  ;;  %v3665_v5 = vadd.f32 %v3664_v0, %v879_v52  ;;  %v3705_v6 = vpop.f32.mrf.mxu1  ;;  %3958 = vmatprep.subr.bf16.mxu0 %v7993_v54  ;;  %v517_v15 = vld [vmem:[%s12472_s3 + $0x538] sm:$0xff]  ;;  %v7977_v24 = vcombine.high %v385_v9, %v389_v11 }
 0x21b   :  { %v3666_v12 = vpop.f32.mrf.mxu0  ;;  %3999 = vmatprep.subr.bf16.mxu1 %v8121_v58  ;;  %v8105_v26 = vcombine.high %v513_v16, %v517_v15  ;;  %v7976_v34 = vcombine.low %v385_v9, %v389_v11  ;;  %v8104_v35 = vcombine.low %v513_v16, %v517_v15  ;;  %v361_v45 = vld [vmem:[%s12472_s3 + $0x58] sm:$0xff] }
 0x21c   :  { %v10398_v18 = vadd.f32 %v3705_v6, %v3665_v5  ;;  %v3707_v19 = vpop.f32.mrf.mxu1  ;;  %3959 = vmatpush1.bf16.msra.mxu0 %v7992_v63  ;;  %v365_v52 = vld [vmem:[%s12472_s3 + $0x78] sm:$0xff] }
 0x21d   :  { %4000 = vmatpush1.bf16.msra.mxu1 %v8120_v59  ;;  %v3667_v21 = vpop.f32.mrf.mxu0  ;;  %3960 = vmatprep.subr.bf16.mxu0 %v7985_v2  ;;  %v489_v54 = vld [vmem:[%s12472_s3 + $0x458] sm:$0xff]  ;;  %v7953_v58 = vcombine.high %v361_v45, %v365_v52  ;;  %v7952_v0 = vcombine.low %v361_v45, %v365_v52 }
 0x21e   :  { %v3708_v25 = vpop.f32.mrf.mxu1  ;;  %4001 = vmatprep.subr.bf16.mxu1 %v8113_v4  ;;  %v8081_v61 = vcombine.high %v489_v54, %v493_v55  ;;  %v357_v22 = vld [vmem:[%s12472_s3 + $0x38] sm:$0xff]  ;;  %v8080_v59 = vcombine.low %v489_v54, %v493_v55 }
 0x21f   :  { %v481_v17 = vld [vmem:[%s12472_s3 + $0x418] sm:$0xff]  ;;  %v7945_v2 = vcombine.high %v353_v29, %v357_v22  ;;  %v7944_v12 = vcombine.low %v353_v29, %v357_v22 }
 0x220   :  { %3961 = vmatpush1.bf16.msra.mxu0 %v7984_v20  ;;  %v485_v63 = vld [vmem:[%s12472_s3 + $0x438] sm:$0xff] }
 0x221   :  { %4002 = vmatpush1.bf16.msra.mxu1 %v8112_v23  ;;  %3962 = vmatprep.subr.bf16.mxu0 %v7977_v24  ;;  %v8073_v5 = vcombine.high %v481_v17, %v485_v63  ;;  %v473_v6 = vld [vmem:[%s12472_s3 + $0x3d8] sm:$0xff]  ;;  %v8072_v16 = vcombine.low %v481_v17, %v485_v63 }
 0x222   :  { %4003 = vmatprep.subr.bf16.mxu1 %v8105_v26  ;;  %v477_v4 = vld [vmem:[%s12472_s3 + $0x3f8] sm:$0xff] }
 0x223   :  { %v601_v9 = vld [vmem:[%s12472_s3 + $0x7d8] sm:$0xff]  ;;  %v8065_v15 = vcombine.high %v473_v6, %v477_v4  ;;  %v8064_v25 = vcombine.low %v473_v6, %v477_v4 }
 0x224   :  { %3963 = vmatpush1.bf16.msra.mxu0 %v7976_v34  ;;  %v605_v11 = vld [vmem:[%s12472_s3 + $0x7f8] sm:$0xff] }
 0x225   :  { %4004 = vmatpush1.bf16.msra.mxu1 %v8104_v35  ;;  %3964 = vmatprep.subr.bf16.mxu0 %v7969_v43  ;;  %v8193_v19 = vcombine.high %v601_v9, %v605_v11  ;;  %v465_v20 = vld [vmem:[%s12472_s3 + $0x398] sm:$0xff]  ;;  %v8192_v26 = vcombine.low %v601_v9, %v605_v11 }
 0x226   :  { %4005 = vmatprep.subr.bf16.mxu1 %v8097_v36  ;;  %v469_v21 = vld [vmem:[%s12472_s3 + $0x3b8] sm:$0xff] }
 0x227   :  { %v593_v23 = vld [vmem:[%s12472_s3 + $0x798] sm:$0xff]  ;;  %v8057_v27 = vcombine.high %v465_v20, %v469_v21  ;;  %v8056_v43 = vcombine.low %v465_v20, %v469_v21 }
 0x228   :  { %3965 = vmatpush1.bf16.msra.mxu0 %v7968_v41  ;;  %v597_v24 = vld [vmem:[%s12472_s3 + $0x7b8] sm:$0xff] }
 0x229   :  { %4006 = vmatpush1.bf16.msra.mxu1 %v8096_v42  ;;  %3966 = vmatprep.subr.bf16.mxu0 %v7961_v50  ;;  %v8185_v31 = vcombine.high %v593_v23, %v597_v24  ;;  %v461_v33 = vld [vmem:[%s12472_s3 + $0x378] sm:$0xff]  ;;  %v8184_v36 = vcombine.low %v593_v23, %v597_v24 }
 0x22a   :  { %4007 = vmatprep.subr.bf16.mxu1 %v8089_v51  ;;  %v585_v34 = vld [vmem:[%s12472_s3 + $0x758] sm:$0xff]  ;;  %v8049_v37 = vcombine.high %v457_v32, %v461_v33  ;;  %v8048_v50 = vcombine.low %v457_v32, %v461_v33 }
 0x22b   :  { %v589_v35 = vld [vmem:[%s12472_s3 + $0x778] sm:$0xff] }
 0x22c   :  { %3967 = vmatpush1.bf16.msra.mxu0 %v7960_v56  ;;  %v8177_v38 = vcombine.high %v585_v34, %v589_v35  ;;  %v449_v39 = vld [vmem:[%s12472_s3 + $0x318] sm:$0xff]  ;;  %v8176_v51 = vcombine.low %v585_v34, %v589_v35 }
 0x22d   :  { %4008 = vmatpush1.bf16.msra.mxu1 %v8088_v57  ;;  %3968 = vmatprep.subr.bf16.mxu0 %v7953_v58  ;;  %v453_v40 = vld [vmem:[%s12472_s3 + $0x338] sm:$0xff] }
 0x22e   :  { %4009 = vmatprep.subr.bf16.mxu1 %v8081_v61  ;;  %v577_v41 = vld [vmem:[%s12472_s3 + $0x718] sm:$0xff]  ;;  %v8041_v45 = vcombine.high %v449_v39, %v453_v40  ;;  %v8040_v58 = vcombine.low %v449_v39, %v453_v40 }
 0x22f   :  { %v581_v42 = vld [vmem:[%s12472_s3 + $0x738] sm:$0xff] }
 0x230   :  { %3969 = vmatpush1.bf16.msra.mxu0 %v7952_v0  ;;  %v8169_v52 = vcombine.high %v577_v41, %v581_v42  ;;  %v441_v54 = vld [vmem:[%s12472_s3 + $0x2d8] sm:$0xff]  ;;  %v8168_v61 = vcombine.low %v577_v41, %v581_v42 }
 0x231   :  { %4010 = vmatpush1.bf16.msra.mxu1 %v8080_v59  ;;  %3970 = vmatprep.subr.bf16.mxu0 %v7945_v2  ;;  %v445_v55 = vld [vmem:[%s12472_s3 + $0x2f8] sm:$0xff] }
 0x232   :  { %4011 = vmatprep.subr.bf16.mxu1 %v8073_v5  ;;  %v569_v56 = vld [vmem:[%s12472_s3 + $0x6d8] sm:$0xff]  ;;  %v8033_v29 = vcombine.high %v441_v54, %v445_v55  ;;  %v8032_v2 = vcombine.low %v441_v54, %v445_v55 }
 0x233   :  { %v573_v57 = vld [vmem:[%s12472_s3 + $0x6f8] sm:$0xff] }
 0x234   :  { %3971 = vmatpush1.bf16.msra.mxu0 %v7944_v12  ;;  %v8161_v22 = vcombine.high %v569_v56, %v573_v57  ;;  %v433_v17 = vld [vmem:[%s12472_s3 + $0x298] sm:$0xff]  ;;  %v8160_v5 = vcombine.low %v569_v56, %v573_v57 }
 0x235   :  { %4012 = vmatpush1.bf16.msra.mxu1 %v8072_v16  ;;  %3972 = vmatprep.subr.bf16.mxu0 %v8065_v15  ;;  %v437_v63 = vld [vmem:[%s12472_s3 + $0x2b8] sm:$0xff] }
 0x236   :  { %4013 = vmatprep.subr.bf16.mxu1 %v8193_v19  ;;  %v561_v0 = vld [vmem:[%s12472_s3 + $0x698] sm:$0xff]  ;;  %v8025_v6 = vcombine.high %v433_v17, %v437_v63  ;;  %v8024_v15 = vcombine.low %v433_v17, %v437_v63 }
 0x237   :  { %v565_v59 = vld [vmem:[%s12472_s3 + $0x6b8] sm:$0xff] }
 0x238   :  { %3973 = vmatpush2.bf16.msra.mxu0 %v8064_v25  ;;  %v8153_v4 = vcombine.high %v561_v0, %v565_v59  ;;  %v425_v9 = vld [vmem:[%s12472_s3 + $0x258] sm:$0xff]  ;;  %v8152_v19 = vcombine.low %v561_v0, %v565_v59 }
 0x239   :  { %4014 = vmatpush2.bf16.msra.mxu1 %v8192_v26  ;;  %3974 = vmatprep.subr.bf16.mxu0 %v8057_v27  ;;  %v429_v11 = vld [vmem:[%s12472_s3 + $0x278] sm:$0xff] }
 0x23a   :  { %4015 = vmatprep.subr.bf16.mxu1 %v8185_v31  ;;  %v553_v12 = vld [vmem:[%s12472_s3 + $0x658] sm:$0xff]  ;;  %v8017_v20 = vcombine.high %v425_v9, %v429_v11  ;;  %v8016_v27 = vcombine.low %v425_v9, %v429_v11 }
 0x23b   :  { %v557_v16 = vld [vmem:[%s12472_s3 + $0x678] sm:$0xff] }
 0x23c   :  { %3975 = vmatpush2.bf16.msra.mxu0 %v8056_v43  ;;  %v8145_v21 = vcombine.high %v553_v12, %v557_v16  ;;  %v417_v23 = vld [vmem:[%s12472_s3 + $0x218] sm:$0xff]  ;;  %v8144_v31 = vcombine.low %v553_v12, %v557_v16 }
 0x23d   :  { %4016 = vmatpush2.bf16.msra.mxu1 %v8184_v36  ;;  %3976 = vmatprep.subr.bf16.mxu0 %v8049_v37  ;;  %v421_v24 = vld [vmem:[%s12472_s3 + $0x238] sm:$0xff] }
 0x23e   :  { %4017 = vmatprep.subr.bf16.mxu1 %v8177_v38  ;;  %v545_v25 = vld [vmem:[%s12472_s3 + $0x618] sm:$0xff]  ;;  %v8009_v32 = vcombine.high %v417_v23, %v421_v24  ;;  %v8008_v37 = vcombine.low %v417_v23, %v421_v24 }
 0x23f   :  { %v549_v26 = vld [vmem:[%s12472_s3 + $0x638] sm:$0xff] }
 0x240   :  { %3977 = vmatpush2.bf16.msra.mxu0 %v8048_v50  ;;  %v8137_v33 = vcombine.high %v545_v25, %v549_v26  ;;  %v665_v34 = vld [vmem:[%s12472_s3 + $0x9d8] sm:$0xff]  ;;  %v8136_v38 = vcombine.low %v545_v25, %v549_v26 }
 0x241   :  { %4018 = vmatpush2.bf16.msra.mxu1 %v8176_v51  ;;  %3978 = vmatprep.subr.bf16.mxu0 %v8041_v45  ;;  %v669_v35 = vld [vmem:[%s12472_s3 + $0x9f8] sm:$0xff] }
 0x242   :  { %4019 = vmatprep.subr.bf16.mxu1 %v8169_v52  ;;  %v793_v43 = vld [vmem:[%s12472_s3 + $0xdd8] sm:$0xff]  ;;  %v8257_v39 = vcombine.high %v665_v34, %v669_v35  ;;  %v8256_v50 = vcombine.low %v665_v34, %v669_v35 }
 0x243   :  { %v797_v36 = vld [vmem:[%s12472_s3 + $0xdf8] sm:$0xff] }
 0x244   :  { %3979 = vmatpush2.bf16.msra.mxu0 %v8040_v58  ;;  %v8385_v40 = vcombine.high %v793_v43, %v797_v36  ;;  %v657_v41 = vld [vmem:[%s12472_s3 + $0x998] sm:$0xff]  ;;  %v8384_v52 = vcombine.low %v793_v43, %v797_v36 }
 0x245   :  { %4020 = vmatpush2.bf16.msra.mxu1 %v8168_v61  ;;  %3980 = vmatprep.subr.bf16.mxu0 %v8033_v29  ;;  %v661_v42 = vld [vmem:[%s12472_s3 + $0x9b8] sm:$0xff] }
 0x246   :  { %4021 = vmatprep.subr.bf16.mxu1 %v8161_v22  ;;  %v785_v51 = vld [vmem:[%s12472_s3 + $0xd98] sm:$0xff]  ;;  %v8249_v54 = vcombine.high %v657_v41, %v661_v42  ;;  %v8248_v63 = vcombine.low %v657_v41, %v661_v42 }
 0x247   :  { %v789_v45 = vld [vmem:[%s12472_s3 + $0xdb8] sm:$0xff] }
 0x248   :  { %3981 = vmatpush2.bf16.msra.mxu0 %v8032_v2  ;;  %v649_v55 = vld [vmem:[%s12472_s3 + $0x958] sm:$0xff]  ;;  %v8377_v58 = vcombine.high %v785_v51, %v789_v45  ;;  %v8376_v0 = vcombine.low %v785_v51, %v789_v45 }
 0x249   :  { %4022 = vmatpush2.bf16.msra.mxu1 %v8160_v5  ;;  %3982 = vmatprep.subr.bf16.mxu0 %v8025_v6  ;;  %v653_v56 = vld [vmem:[%s12472_s3 + $0x978] sm:$0xff] }
 0x24a   :  { %4023 = vmatprep.subr.bf16.mxu1 %v8153_v4  ;;  %v777_v61 = vld [vmem:[%s12472_s3 + $0xd58] sm:$0xff]  ;;  %v8241_v59 = vcombine.high %v649_v55, %v653_v56  ;;  %v8240_v11 = vcombine.low %v649_v55, %v653_v56 }
 0x24b   :  { %v781_v29 = vld [vmem:[%s12472_s3 + $0xd78] sm:$0xff] }
 0x24c   :  { %3983 = vmatpush2.bf16.msra.mxu0 %v8024_v15  ;;  %v769_v4 = vld [vmem:[%s12472_s3 + $0xd18] sm:$0xff]  ;;  %v8368_v16 = vcombine.low %v777_v61, %v781_v29 }
 0x24d   :  { %4024 = vmatpush2.bf16.msra.mxu1 %v8152_v19  ;;  %3984 = vmatprep.subr.bf16.mxu0 %v8017_v20  ;;  %v637_v23 = vld [vmem:[%s12472_s3 + $0x8f8] sm:$0xff] }
 0x24e   :  { %4025 = vmatprep.subr.bf16.mxu1 %v8145_v21  ;;  %v633_v21 = vld [vmem:[%s12472_s3 + $0x8d8] sm:$0xff] }
 0x24f   :  { %v761_v24 = vld [vmem:[%s12472_s3 + $0xcd8] sm:$0xff]  ;;  %v8224_v36 = vcombine.low %v633_v21, %v637_v23 }
 0x250   :  { %3985 = vmatpush2.bf16.msra.mxu0 %v8016_v27  ;;  %v765_v25 = vld [vmem:[%s12472_s3 + $0xcf8] sm:$0xff] }
 0x251   :  { %4026 = vmatpush2.bf16.msra.mxu1 %v8144_v31  ;;  %3986 = vmatprep.subr.bf16.mxu0 %v8009_v32  ;;  %v8225_v31 = vcombine.high %v633_v21, %v637_v23  ;;  %v8353_v32 = vcombine.high %v761_v24, %v765_v25  ;;  %v629_v34 = vld [vmem:[%s12472_s3 + $0x8b8] sm:$0xff] }
 0x252   :  { %4027 = vmatprep.subr.bf16.mxu1 %v8137_v33  ;;  %v625_v33 = vld [vmem:[%s12472_s3 + $0x898] sm:$0xff] }
 0x253   :  { %v753_v35 = vld [vmem:[%s12472_s3 + $0xc98] sm:$0xff]  ;;  %v8216_v51 = vcombine.low %v625_v33, %v629_v34 }
 0x254   :  { %3987 = vmatpush2.bf16.msra.mxu0 %v8008_v37  ;;  %v757_v43 = vld [vmem:[%s12472_s3 + $0xcb8] sm:$0xff]  ;;  %v8352_v37 = vcombine.low %v761_v24, %v765_v25 }
 0x255   :  { %4028 = vmatpush2.bf16.msra.mxu1 %v8136_v38  ;;  %4038 = vmatprep.subr.bf16.mxu0 %v8257_v39  ;;  %v8217_v38 = vcombine.high %v625_v33, %v629_v34  ;;  %v8345_v39 = vcombine.high %v753_v35, %v757_v43  ;;  %v621_v41 = vld [vmem:[%s12472_s3 + $0x878] sm:$0xff]  ;;  %v8344_v45 = vcombine.low %v753_v35, %v757_v43 }
 0x256   :  { %4079 = vmatprep.subr.bf16.mxu1 %v8385_v40  ;;  %v617_v40 = vld [vmem:[%s12472_s3 + $0x858] sm:$0xff] }
 0x257   :  { %v3744_v57 = vpop.f32.mrf.mxu0  ;;  %3989 = vmatmul.mubr.bf16.vlgmr.msra.gmra.mxu0 %v9333_v14  ;;  %v745_v42 = vld [vmem:[%s12472_s3 + $0xc58] sm:$0xff] }
 0x258   :  { %v3745_v22 = vadd.f32 %v3744_v57, %v10383_v3  ;;  %v3785_v17 = vpop.f32.mrf.mxu1  ;;  %4030 = vmatmul.mubr.bf16.vlgmr.msra.gmra.mxu1 %v9327_v10  ;;  %4039 = vmatpush1.bf16.msra.mxu0 %v8256_v50  ;;  %v8369_v3 = vcombine.high %v777_v61, %v781_v29  ;;  %v641_v10 = vld [vmem:[%s12472_s3 + $0x918] sm:$0xff]  ;;  %v8208_v61 = vcombine.low %v617_v40, %v621_v41 }
 0x259   :  { %4070 = vmatprep.mubr.bf16.mxu0 %v9371_v49  ;;  %4080 = vmatpush1.bf16.msra.mxu1 %v8384_v52  ;;  %v10584_v14 = vpop.f32.mrf.mxu0  ;;  %v645_v49 = vld [vmem:[%s12472_s3 + $0x938] sm:$0xff]  ;;  %v8209_v52 = vcombine.high %v617_v40, %v621_v41 }
 0x25a   :  { %v10586_v2 = vadd.f32 %v3785_v17, %v3745_v22  ;;  %4111 = vmatprep.mubr.bf16.mxu1 %v9373_v53  ;;  %v10589_v5 = vpop.f32.mrf.mxu1  ;;  %4040 = vmatprep.subr.bf16.mxu0 %v8249_v54  ;;  %v773_v53 = vld [vmem:[%s12472_s3 + $0xd38] sm:$0xff]  ;;  %v8233_v15 = vcombine.high %v641_v10, %v645_v49  ;;  %v8232_v26 = vcombine.low %v641_v10, %v645_v49 }
 0x25b   :  { %v3748_v6 = vpop.f32.mrf.mxu0  ;;  %4081 = vmatprep.subr.bf16.mxu1 %v8377_v58  ;;  %v8361_v20 = vcombine.high %v769_v4, %v773_v53  ;;  %v8360_v27 = vcombine.low %v769_v4, %v773_v53  ;;  %v749_v50 = vld [vmem:[%s12472_s3 + $0xc78] sm:$0xff] }
 0x25c   :  { %v3789_v9 = vpop.f32.mrf.mxu1  ;;  %4041 = vmatpush1.bf16.msra.mxu0 %v8248_v63  ;;  %v8337_v54 = vcombine.high %v745_v42, %v749_v50  ;;  %v609_v55 = vld [vmem:[%s12472_s3 + $0x818] sm:$0xff]  ;;  %v8336_v29 = vcombine.low %v745_v42, %v749_v50 }
 0x25d   :  { %4082 = vmatpush1.bf16.msra.mxu1 %v8376_v0  ;;  %v3749_v12 = vpop.f32.mrf.mxu0  ;;  %4042 = vmatprep.subr.bf16.mxu0 %v8241_v59  ;;  %v613_v56 = vld [vmem:[%s12472_s3 + $0x838] sm:$0xff] }
 0x25e   :  { %v3790_v19 = vpop.f32.mrf.mxu1  ;;  %4083 = vmatprep.subr.bf16.mxu1 %v8369_v3  ;;  %v737_v57 = vld [vmem:[%s12472_s3 + $0xc18] sm:$0xff]  ;;  %v8201_v22 = vcombine.high %v609_v55, %v613_v56  ;;  %v8200_v10 = vcombine.low %v609_v55, %v613_v56 }
 0x25f   :  { %v741_v58 = vld [vmem:[%s12472_s3 + $0xc38] sm:$0xff] }
 0x260   :  { %4043 = vmatpush1.bf16.msra.mxu0 %v8240_v11  ;;  %v8329_v17 = vcombine.high %v737_v57, %v741_v58  ;;  %v729_v63 = vld [vmem:[%s12472_s3 + $0xbd8] sm:$0xff]  ;;  %v8328_v49 = vcombine.low %v737_v57, %v741_v58 }
 0x261   :  { %4084 = vmatpush1.bf16.msra.mxu1 %v8368_v16  ;;  %4044 = vmatprep.subr.bf16.mxu0 %v8233_v15  ;;  %v733_v0 = vld [vmem:[%s12472_s3 + $0xbf8] sm:$0xff] }
 0x262   :  { %4085 = vmatprep.subr.bf16.mxu1 %v8361_v20  ;;  %v857_v59 = vld [vmem:[%s12472_s3 + $0xfd8] sm:$0xff]  ;;  %v8321_v6 = vcombine.high %v729_v63, %v733_v0  ;;  %v8320_v16 = vcombine.low %v729_v63, %v733_v0 }
 0x263   :  { %v861_v3 = vld [vmem:[%s12472_s3 + $0xff8] sm:$0xff] }
 0x264   :  { %4045 = vmatpush1.bf16.msra.mxu0 %v8232_v26  ;;  %v8449_v4 = vcombine.high %v857_v59, %v861_v3  ;;  %v721_v53 = vld [vmem:[%s12472_s3 + $0xb98] sm:$0xff]  ;;  %v8448_v15 = vcombine.low %v857_v59, %v861_v3 }
 0x265   :  { %4086 = vmatpush1.bf16.msra.mxu1 %v8360_v27  ;;  %4046 = vmatprep.subr.bf16.mxu0 %v8225_v31  ;;  %v725_v9 = vld [vmem:[%s12472_s3 + $0xbb8] sm:$0xff] }
 0x266   :  { %4087 = vmatprep.subr.bf16.mxu1 %v8353_v32  ;;  %v849_v11 = vld [vmem:[%s12472_s3 + $0xf98] sm:$0xff]  ;;  %v8313_v19 = vcombine.high %v721_v53, %v725_v9  ;;  %v8312_v26 = vcombine.low %v721_v53, %v725_v9 }
 0x267   :  { %v853_v12 = vld [vmem:[%s12472_s3 + $0xfb8] sm:$0xff] }
 0x268   :  { %4047 = vmatpush1.bf16.msra.mxu0 %v8224_v36  ;;  %v8441_v20 = vcombine.high %v849_v11, %v853_v12  ;;  %v713_v21 = vld [vmem:[%s12472_s3 + $0xb58] sm:$0xff]  ;;  %v8440_v27 = vcombine.low %v849_v11, %v853_v12 }
 0x269   :  { %4088 = vmatpush1.bf16.msra.mxu1 %v8352_v37  ;;  %4048 = vmatprep.subr.bf16.mxu0 %v8217_v38  ;;  %v717_v23 = vld [vmem:[%s12472_s3 + $0xb78] sm:$0xff] }
 0x26a   :  { %4089 = vmatprep.subr.bf16.mxu1 %v8345_v39  ;;  %v841_v24 = vld [vmem:[%s12472_s3 + $0xf58] sm:$0xff]  ;;  %v8305_v31 = vcombine.high %v713_v21, %v717_v23  ;;  %v8304_v36 = vcombine.low %v713_v21, %v717_v23  ;;  %v4192_v23 = vld [vmem:[%s12475_s5 + $0x1c0] sm:$0xff] }
 0x26b   :  { %v845_v25 = vld [vmem:[%s12472_s3 + $0xf78] sm:$0xff] }
 0x26c   :  { %4049 = vmatpush1.bf16.msra.mxu0 %v8216_v51  ;;  %v8433_v32 = vcombine.high %v841_v24, %v845_v25  ;;  %v705_v33 = vld [vmem:[%s12472_s3 + $0xb18] sm:$0xff]  ;;  %v8432_v37 = vcombine.low %v841_v24, %v845_v25  ;;  %v4196_v24 = vld [vmem:[%s12475_s5 + $0x1e0] sm:$0xff] }
 0x26d   :  { %4090 = vmatpush1.bf16.msra.mxu1 %v8344_v45  ;;  %4050 = vmatprep.subr.bf16.mxu0 %v8209_v52  ;;  %v709_v34 = vld [vmem:[%s12472_s3 + $0xb38] sm:$0xff] }
 0x26e   :  { %4091 = vmatprep.subr.bf16.mxu1 %v8337_v54  ;;  %v833_v35 = vld [vmem:[%s12472_s3 + $0xf18] sm:$0xff]  ;;  %v8297_v38 = vcombine.high %v705_v33, %v709_v34  ;;  %v8296_v51 = vcombine.low %v705_v33, %v709_v34  ;;  %v4121_v33 = vmax.f32 %v10194_v8, 0.0  ;;  %v4184_v34 = vld [vmem:[%s12475_s5 + $0x180] sm:$0xff] }
 0x26f   :  { %v837_v43 = vld [vmem:[%s12472_s3 + $0xf38] sm:$0xff]  ;;  %v4312_v8 = vld [vmem:[%s12475_s5 + $0x580] sm:$0xff] }
 0x270   :  { %4051 = vmatpush1.bf16.msra.mxu0 %v8208_v61  ;;  %v8425_v39 = vcombine.high %v833_v35, %v837_v43  ;;  %v697_v40 = vld [vmem:[%s12472_s3 + $0xad8] sm:$0xff]  ;;  %v8424_v45 = vcombine.low %v833_v35, %v837_v43  ;;  %v4188_v35 = vld [vmem:[%s12475_s5 + $0x1a0] sm:$0xff] }
 0x271   :  { %4092 = vmatpush1.bf16.msra.mxu1 %v8336_v29  ;;  %4052 = vmatprep.subr.bf16.mxu0 %v8201_v22  ;;  %v701_v41 = vld [vmem:[%s12472_s3 + $0xaf8] sm:$0xff] }
 0x272   :  { %4093 = vmatprep.subr.bf16.mxu1 %v8329_v17  ;;  %v825_v42 = vld [vmem:[%s12472_s3 + $0xed8] sm:$0xff]  ;;  %v8289_v52 = vcombine.high %v697_v40, %v701_v41  ;;  %v8288_v61 = vcombine.low %v697_v40, %v701_v41  ;;  %v8499_v40 = vcombine.high %v4184_v34, %v4188_v35  ;;  %v4176_v41 = vld [vmem:[%s12475_s5 + $0x140] sm:$0xff] }
 0x273   :  { %v829_v50 = vld [vmem:[%s12472_s3 + $0xef8] sm:$0xff] }
 0x274   :  { %4053 = vmatpush1.bf16.msra.mxu0 %v8200_v10  ;;  %v8417_v54 = vcombine.high %v825_v42, %v829_v50  ;;  %v689_v55 = vld [vmem:[%s12472_s3 + $0xa98] sm:$0xff]  ;;  %v8416_v29 = vcombine.low %v825_v42, %v829_v50  ;;  %v4180_v42 = vld [vmem:[%s12475_s5 + $0x160] sm:$0xff]  ;;  %v10788_v50 = vpack.c.bf16 %v4121_v33, %v4121_v33 }
 0x275   :  { %4094 = vmatpush1.bf16.msra.mxu1 %v8328_v49  ;;  %4054 = vmatprep.subr.bf16.mxu0 %v8321_v6  ;;  %v693_v56 = vld [vmem:[%s12472_s3 + $0xab8] sm:$0xff] }
 0x276   :  { %4095 = vmatprep.subr.bf16.mxu1 %v8449_v4  ;;  %v817_v57 = vld [vmem:[%s12472_s3 + $0xe98] sm:$0xff]  ;;  %v8281_v22 = vcombine.high %v689_v55, %v693_v56  ;;  %v8280_v10 = vcombine.low %v689_v55, %v693_v56 }
 0x277   :  { %v821_v58 = vld [vmem:[%s12472_s3 + $0xeb8] sm:$0xff] }
 0x278   :  { %4055 = vmatpush2.bf16.msra.mxu0 %v8320_v16  ;;  %v8409_v17 = vcombine.high %v817_v57, %v821_v58  ;;  %v681_v63 = vld [vmem:[%s12472_s3 + $0xa58] sm:$0xff]  ;;  %v8408_v49 = vcombine.low %v817_v57, %v821_v58  ;;  %v3747_v16 = vadd.f32 %v10584_v14, %v10398_v18  ;;  %v4320_v18 = vld [vmem:[%s12475_s5 + $0x5c0] sm:$0xff]  ;;  %v8498_v58 = vcombine.low %v4184_v34, %v4188_v35 }
 0x279   :  { %4096 = vmatpush2.bf16.msra.mxu1 %v8448_v15  ;;  %4056 = vmatprep.subr.bf16.mxu0 %v8313_v19  ;;  %v685_v0 = vld [vmem:[%s12472_s3 + $0xa78] sm:$0xff]  ;;  %v4324_v14 = vld [vmem:[%s12475_s5 + $0x5e0] sm:$0xff] }
 0x27a   :  { %4097 = vmatprep.subr.bf16.mxu1 %v8441_v20  ;;  %v809_v59 = vld [vmem:[%s12472_s3 + $0xe58] sm:$0xff]  ;;  %v8273_v6 = vcombine.high %v681_v63, %v685_v0  ;;  %v8272_v15 = vcombine.low %v681_v63, %v685_v0  ;;  %v3788_v25 = vadd.f32 %v10589_v5, %v3747_v16  ;;  %v10772_v5 = vld [vmem:[%s12474_s4] sm:$0xff] }
 0x27b   :  { %v813_v3 = vld [vmem:[%s12472_s3 + $0xe78] sm:$0xff]  ;;  %v4172_v0 = vld [vmem:[%s12475_s5 + $0x120] sm:$0xff] }
 0x27c   :  { %4057 = vmatpush2.bf16.msra.mxu0 %v8312_v26  ;;  %v8401_v4 = vcombine.high %v809_v59, %v813_v3  ;;  %v673_v53 = vld [vmem:[%s12472_s3 + $0xa18] sm:$0xff]  ;;  %v8400_v19 = vcombine.low %v809_v59, %v813_v3  ;;  %v4123_v43 = vmax.f32 %v3788_v25, 0.0  ;;  %v4296_v3 = vld [vmem:[%s12475_s5 + $0x500] sm:$0xff] }
 0x27d   :  { %4098 = vmatpush2.bf16.msra.mxu1 %v8440_v27  ;;  %4058 = vmatprep.subr.bf16.mxu0 %v8305_v31  ;;  %v677_v9 = vld [vmem:[%s12472_s3 + $0xa38] sm:$0xff]  ;;  %v8507_v31 = vcombine.high %v4192_v23, %v4196_v24  ;;  %v4160_v16 = vld [vmem:[%s12475_s5 + $0xc0] sm:$0xff] }
 0x27e   :  { %4099 = vmatprep.subr.bf16.mxu1 %v8433_v32  ;;  %v801_v11 = vld [vmem:[%s12472_s3 + $0xe18] sm:$0xff]  ;;  %v8265_v20 = vcombine.high %v673_v53, %v677_v9  ;;  %v8264_v26 = vcombine.low %v673_v53, %v677_v9  ;;  %v8635_v32 = vcombine.high %v4320_v18, %v4324_v14  ;;  %v10797_v55 = vpack.c.bf16 %v4123_v43, %v4123_v43  ;;  %v4156_v25 = vld [vmem:[%s12475_s5 + $0xa0] sm:$0xff] }
 0x27f   :  { %v805_v12 = vld [vmem:[%s12472_s3 + $0xe38] sm:$0xff]  ;;  %v4144_v35 = vld [vmem:[%s12475_s5 + $0x40] sm:$0xff] }
 0x280   :  { %4059 = vmatpush2.bf16.msra.mxu0 %v8304_v36  ;;  %v8393_v21 = vcombine.high %v801_v11, %v805_v12  ;;  %v8392_v27 = vcombine.low %v801_v11, %v805_v12  ;;  %v883_v36 = vrot.slane %v10772_v5, %v9501_v30  ;;  %v4148_v43 = vld [vmem:[%s12475_s5 + $0x60] sm:$0xff] }
 0x281   :  { %4100 = vmatpush2.bf16.msra.mxu1 %v8432_v37  ;;  %4060 = vmatprep.subr.bf16.mxu0 %v8297_v38  ;;  %v8506_v37 = vcombine.low %v4192_v23, %v4196_v24  ;;  %v4316_v38 = vld [vmem:[%s12475_s5 + $0x5a0] sm:$0xff] }
 0x282   :  { %4101 = vmatprep.subr.bf16.mxu1 %v8425_v39  ;;  %v8634_v39 = vcombine.low %v4320_v18, %v4324_v14  ;;  %v4152_v14 = vld [vmem:[%s12475_s5 + $0x80] sm:$0xff] }
 0x283   :  { %v8467_v33 = vcombine.high %v4152_v14, %v4156_v25 }
 0x284   :  { %4061 = vmatpush2.bf16.msra.mxu0 %v8296_v51 }
 0x285   :  { %4102 = vmatpush2.bf16.msra.mxu1 %v8424_v45  ;;  %4062 = vmatprep.subr.bf16.mxu0 %v8289_v52  ;;  %v8627_v45 = vcombine.high %v4312_v8, %v4316_v38  ;;  %v4304_v52 = vld [vmem:[%s12475_s5 + $0x540] sm:$0xff] }
 0x286   :  { %4103 = vmatprep.subr.bf16.mxu1 %v8417_v54  ;;  %v4308_v54 = vld [vmem:[%s12475_s5 + $0x560] sm:$0xff] }
 0x287   :  { %v8619_v63 = vcombine.high %v4304_v52, %v4308_v54  ;;  %v8618_v53 = vcombine.low %v4304_v52, %v4308_v54  ;;  %v8458_v52 = vcombine.low %v4144_v35, %v4148_v43 }
 0x288   :  { %4063 = vmatpush2.bf16.msra.mxu0 %v8288_v61  ;;  %v8626_v61 = vcombine.low %v4312_v8, %v4316_v38  ;;  %v8466_v8 = vcombine.low %v4152_v14, %v4156_v25  ;;  %v4232_v14 = vld [vmem:[%s12475_s5 + $0x300] sm:$0xff] }
 0x289   :  { %4104 = vmatpush2.bf16.msra.mxu1 %v8416_v29  ;;  %4064 = vmatprep.subr.bf16.mxu0 %v8281_v22  ;;  %v8491_v29 = vcombine.high %v4176_v41, %v4180_v42  ;;  %v4236_v25 = vld [vmem:[%s12475_s5 + $0x320] sm:$0xff] }
 0x28a   :  { %4105 = vmatprep.subr.bf16.mxu1 %v8409_v17 }
 0x28c   :  { %4065 = vmatpush2.bf16.msra.mxu0 %v8280_v10  ;;  %v4300_v10 = vld [vmem:[%s12475_s5 + $0x520] sm:$0xff] }
 0x28d   :  { %4106 = vmatpush2.bf16.msra.mxu1 %v8408_v49  ;;  %4066 = vmatprep.subr.bf16.mxu0 %v8273_v6  ;;  %v8490_v6 = vcombine.low %v4176_v41, %v4180_v42  ;;  %v8611_v12 = vcombine.high %v4296_v3, %v4300_v10  ;;  %v8610_v23 = vcombine.low %v4296_v3, %v4300_v10  ;;  %v4136_v41 = vld [vmem:[%s12475_s5] sm:$0xff] }
 0x28e   :  { %4107 = vmatprep.subr.bf16.mxu1 %v8401_v4  ;;  %v4140_v42 = vld [vmem:[%s12475_s5 + $0x20] sm:$0xff] }
 0x28f   :  { %v4248_v10 = vld [vmem:[%s12475_s5 + $0x380] sm:$0xff] }
 0x290   :  { %4067 = vmatpush2.bf16.msra.mxu0 %v8272_v15  ;;  %v4164_v15 = vld [vmem:[%s12475_s5 + $0xe0] sm:$0xff] }
 0x291   :  { %4108 = vmatpush2.bf16.msra.mxu1 %v8400_v19  ;;  %4068 = vmatprep.subr.bf16.mxu0 %v8265_v20  ;;  %v4288_v19 = vld [vmem:[%s12475_s5 + $0x4c0] sm:$0xff]  ;;  %v8475_v24 = vcombine.high %v4160_v16, %v4164_v15 }
 0x292   :  { %4109 = vmatprep.subr.bf16.mxu1 %v8393_v21  ;;  %v4292_v20 = vld [vmem:[%s12475_s5 + $0x4e0] sm:$0xff] }
 0x293   :  { %v8603_v18 = vcombine.high %v4288_v19, %v4292_v20 }
 0x294   :  { %4069 = vmatpush2.bf16.msra.mxu0 %v8264_v26  ;;  %v4280_v26 = vld [vmem:[%s12475_s5 + $0x480] sm:$0xff] }
 0x295   :  { %4110 = vmatpush2.bf16.msra.mxu1 %v8392_v27  ;;  %7250 = vmatprep.subr.bf16.mxu0 %v8507_v31  ;;  %v4284_v27 = vld [vmem:[%s12475_s5 + $0x4a0] sm:$0xff]  ;;  %v8474_v31 = vcombine.low %v4160_v16, %v4164_v15 }
 0x296   :  { %7291 = vmatprep.subr.bf16.mxu1 %v8635_v32  ;;  %v8602_v32 = vcombine.low %v4288_v19, %v4292_v20  ;;  %v8595_v34 = vcombine.high %v4280_v26, %v4284_v27  ;;  %v8594_v38 = vcombine.low %v4280_v26, %v4284_v27  ;;  %v4240_v16 = vld [vmem:[%s12475_s5 + $0x340] sm:$0xff] }
 0x297   :  { %v3826_v51 = vpop.f32.mrf.mxu0  ;;  %4071 = vmatmul.mubr.bf16.vlgmr.msra.gmra.mxu0 %v9559_v13  ;;  %v4244_v15 = vld [vmem:[%s12475_s5 + $0x360] sm:$0xff] }
 0x298   :  { %v3827_v56 = vadd.f32 %v3826_v51, %v883_v36  ;;  %v3867_v57 = vpop.f32.mrf.mxu1  ;;  %4112 = vmatmul.mubr.bf16.vlgmr.msra.gmra.mxu1 %v9551_v7  ;;  %7251 = vmatpush1.bf16.msra.mxu0 %v8506_v37  ;;  %v4168_v7 = vld [vmem:[%s12475_s5 + $0x100] sm:$0xff] }
 0x299   :  { %7282 = vmatprep.mubr.bf16.mxu0 %v10788_v50  ;;  %7292 = vmatpush1.bf16.msra.mxu1 %v8634_v39  ;;  %v10801_v13 = vpop.f32.mrf.mxu0  ;;  %v8483_v9 = vcombine.high %v4168_v7, %v4172_v0  ;;  %v8482_v21 = vcombine.low %v4168_v7, %v4172_v0  ;;  %v4272_v36 = vld [vmem:[%s12475_s5 + $0x440] sm:$0xff]  ;;  %v8459_v39 = vcombine.high %v4144_v35, %v4148_v43 }
 0x29a   :  { %v10803_v22 = vadd.f32 %v3867_v57, %v3827_v56  ;;  %7323 = vmatprep.mubr.bf16.mxu1 %v10797_v55  ;;  %v10806_v17 = vpop.f32.mrf.mxu1  ;;  %7252 = vmatprep.subr.bf16.mxu0 %v8499_v40  ;;  %v4276_v37 = vld [vmem:[%s12475_s5 + $0x460] sm:$0xff]  ;;  %v8451_v56 = vcombine.high %v4136_v41, %v4140_v42  ;;  %v8450_v7 = vcombine.low %v4136_v41, %v4140_v42 }
 0x29b   :  { %v3830_v59 = vpop.f32.mrf.mxu0  ;;  %7293 = vmatprep.subr.bf16.mxu1 %v8627_v45  ;;  %v8587_v40 = vcombine.high %v4272_v36, %v4276_v37  ;;  %v4264_v51 = vld [vmem:[%s12475_s5 + $0x400] sm:$0xff]  ;;  %v8586_v54 = vcombine.low %v4272_v36, %v4276_v37 }
 0x29c   :  { %v3871_v49 = vpop.f32.mrf.mxu1  ;;  %7253 = vmatpush1.bf16.msra.mxu0 %v8498_v58  ;;  %v4268_v45 = vld [vmem:[%s12475_s5 + $0x420] sm:$0xff] }
 0x29d   :  { %7294 = vmatpush1.bf16.msra.mxu1 %v8626_v61  ;;  %v3831_v4 = vpop.f32.mrf.mxu0  ;;  %7254 = vmatprep.subr.bf16.mxu0 %v8491_v29  ;;  %v8579_v57 = vcombine.high %v4264_v51, %v4268_v45  ;;  %v4256_v58 = vld [vmem:[%s12475_s5 + $0x3c0] sm:$0xff]  ;;  %v8578_v0 = vcombine.low %v4264_v51, %v4268_v45 }
 0x29e   :  { %v3872_v11 = vpop.f32.mrf.mxu1  ;;  %7295 = vmatprep.subr.bf16.mxu1 %v8619_v63  ;;  %v4260_v61 = vld [vmem:[%s12475_s5 + $0x3e0] sm:$0xff] }
 0x29f   :  { %v4384_v29 = vld [vmem:[%s12475_s5 + $0x7c0] sm:$0xff]  ;;  %v8571_v59 = vcombine.high %v4256_v58, %v4260_v61 }
 0x2a0   :  { %7255 = vmatpush1.bf16.msra.mxu0 %v8490_v6  ;;  %v4388_v63 = vld [vmem:[%s12475_s5 + $0x7e0] sm:$0xff] }
 0x2a1   :  { %7296 = vmatpush1.bf16.msra.mxu1 %v8618_v53  ;;  %7256 = vmatprep.subr.bf16.mxu0 %v8483_v9  ;;  %v8699_v3 = vcombine.high %v4384_v29, %v4388_v63  ;;  %v4252_v49 = vld [vmem:[%s12475_s5 + $0x3a0] sm:$0xff]  ;;  %v8570_v53 = vcombine.low %v4256_v58, %v4260_v61  ;;  %v8698_v9 = vcombine.low %v4384_v29, %v4388_v63 }
 0x2a2   :  { %7297 = vmatprep.subr.bf16.mxu1 %v8611_v12  ;;  %v4376_v6 = vld [vmem:[%s12475_s5 + $0x780] sm:$0xff]  ;;  %v8563_v11 = vcombine.high %v4248_v10, %v4252_v49 }
 0x2a3   :  { %v4380_v4 = vld [vmem:[%s12475_s5 + $0x7a0] sm:$0xff] }
 0x2a4   :  { %7257 = vmatpush1.bf16.msra.mxu0 %v8482_v21  ;;  %v8691_v12 = vcombine.high %v4376_v6, %v4380_v4  ;;  %v4368_v19 = vld [vmem:[%s12475_s5 + $0x740] sm:$0xff]  ;;  %v8562_v21 = vcombine.low %v4248_v10, %v4252_v49 }
 0x2a5   :  { %7298 = vmatpush1.bf16.msra.mxu1 %v8610_v23  ;;  %7258 = vmatprep.subr.bf16.mxu0 %v8475_v24  ;;  %v4372_v20 = vld [vmem:[%s12475_s5 + $0x760] sm:$0xff]  ;;  %v8690_v23 = vcombine.low %v4376_v6, %v4380_v4  ;;  %v8555_v24 = vcombine.high %v4240_v16, %v4244_v15 }
 0x2a6   :  { %7299 = vmatprep.subr.bf16.mxu1 %v8603_v18  ;;  %v8683_v18 = vcombine.high %v4368_v19, %v4372_v20  ;;  %v4360_v26 = vld [vmem:[%s12475_s5 + $0x700] sm:$0xff] }
 0x2a7   :  { %v4364_v27 = vld [vmem:[%s12475_s5 + $0x720] sm:$0xff] }
 0x2a8   :  { %7259 = vmatpush1.bf16.msra.mxu0 %v8474_v31  ;;  %v8554_v31 = vcombine.low %v4240_v16, %v4244_v15  ;;  %v4224_v35 = vld [vmem:[%s12475_s5 + $0x2c0] sm:$0xff] }
 0x2a9   :  { %7300 = vmatpush1.bf16.msra.mxu1 %v8602_v32  ;;  %7260 = vmatprep.subr.bf16.mxu0 %v8467_v33  ;;  %v8682_v32 = vcombine.low %v4368_v19, %v4372_v20  ;;  %v8547_v33 = vcombine.high %v4232_v14, %v4236_v25  ;;  %v4228_v43 = vld [vmem:[%s12475_s5 + $0x2e0] sm:$0xff] }
 0x2aa   :  { %7301 = vmatprep.subr.bf16.mxu1 %v8595_v34  ;;  %v8675_v34 = vcombine.high %v4360_v26, %v4364_v27  ;;  %v4352_v36 = vld [vmem:[%s12475_s5 + $0x6c0] sm:$0xff] }
 0x2ab   :  { %v4356_v37 = vld [vmem:[%s12475_s5 + $0x6e0] sm:$0xff] }
 0x2ac   :  { %7261 = vmatpush1.bf16.msra.mxu0 %v8466_v8  ;;  %v8546_v8 = vcombine.low %v4232_v14, %v4236_v25  ;;  %v4216_v41 = vld [vmem:[%s12475_s5 + $0x280] sm:$0xff]  ;;  %v4122_v25 = vmax.f32 %v10586_v2, 0.0 }
 0x2ad   :  { %7302 = vmatpush1.bf16.msra.mxu1 %v8594_v38  ;;  %7262 = vmatprep.subr.bf16.mxu0 %v8459_v39  ;;  %v8674_v38 = vcombine.low %v4360_v26, %v4364_v27  ;;  %v8539_v39 = vcombine.high %v4224_v35, %v4228_v43  ;;  %v4220_v42 = vld [vmem:[%s12475_s5 + $0x2a0] sm:$0xff] }
 0x2ae   :  { %7303 = vmatprep.subr.bf16.mxu1 %v8587_v40  ;;  %v8667_v40 = vcombine.high %v4352_v36, %v4356_v37  ;;  %v4344_v51 = vld [vmem:[%s12475_s5 + $0x680] sm:$0xff] }
 0x2af   :  { %v4348_v45 = vld [vmem:[%s12475_s5 + $0x6a0] sm:$0xff] }
 0x2b0   :  { %7263 = vmatpush1.bf16.msra.mxu0 %v8458_v52  ;;  %v8538_v52 = vcombine.low %v4224_v35, %v4228_v43  ;;  %v4208_v58 = vld [vmem:[%s12475_s5 + $0x240] sm:$0xff]  ;;  %v10995_v43 = vpack.c.bf16 %v4122_v25, %v4122_v25 }
 0x2b1   :  { %7304 = vmatpush1.bf16.msra.mxu1 %v8586_v54  ;;  %7264 = vmatprep.subr.bf16.mxu0 %v8451_v56  ;;  %v8666_v54 = vcombine.low %v4352_v36, %v4356_v37  ;;  %v8531_v56 = vcombine.high %v4216_v41, %v4220_v42  ;;  %v4212_v61 = vld [vmem:[%s12475_s5 + $0x260] sm:$0xff] }
 0x2b2   :  { %7305 = vmatprep.subr.bf16.mxu1 %v8579_v57  ;;  %v8659_v57 = vcombine.high %v4344_v51, %v4348_v45  ;;  %v4336_v29 = vld [vmem:[%s12475_s5 + $0x640] sm:$0xff] }
 0x2b3   :  { %v4340_v63 = vld [vmem:[%s12475_s5 + $0x660] sm:$0xff] }
 0x2b4   :  { %7265 = vmatpush1.bf16.msra.mxu0 %v8450_v7  ;;  %v8530_v7 = vcombine.low %v4216_v41, %v4220_v42  ;;  %v4200_v10 = vld [vmem:[%s12475_s5 + $0x200] sm:$0xff] }
 0x2b5   :  { %7306 = vmatpush1.bf16.msra.mxu1 %v8578_v0  ;;  %7266 = vmatprep.subr.bf16.mxu0 %v8571_v59  ;;  %v8658_v0 = vcombine.low %v4344_v51, %v4348_v45  ;;  %v8523_v59 = vcombine.high %v4208_v58, %v4212_v61  ;;  %v4204_v49 = vld [vmem:[%s12475_s5 + $0x220] sm:$0xff] }
 0x2b6   :  { %7307 = vmatprep.subr.bf16.mxu1 %v8699_v3  ;;  %v8651_v3 = vcombine.high %v4336_v29, %v4340_v63  ;;  %v4328_v6 = vld [vmem:[%s12475_s5 + $0x600] sm:$0xff] }
 0x2b7   :  { %v4332_v4 = vld [vmem:[%s12475_s5 + $0x620] sm:$0xff] }
 0x2b8   :  { %7267 = vmatpush2.bf16.msra.mxu0 %v8570_v53  ;;  %v8522_v53 = vcombine.low %v4208_v58, %v4212_v61  ;;  %v4448_v16 = vld [vmem:[%s12475_s5 + $0x9c0] sm:$0xff] }
 0x2b9   :  { %7308 = vmatpush2.bf16.msra.mxu1 %v8698_v9  ;;  %7268 = vmatprep.subr.bf16.mxu0 %v8563_v11  ;;  %v8650_v9 = vcombine.low %v4336_v29, %v4340_v63  ;;  %v8515_v11 = vcombine.high %v4200_v10, %v4204_v49  ;;  %v4452_v15 = vld [vmem:[%s12475_s5 + $0x9e0] sm:$0xff] }
 0x2ba   :  { %7309 = vmatprep.subr.bf16.mxu1 %v8691_v12  ;;  %v8643_v12 = vcombine.high %v4328_v6, %v4332_v4  ;;  %v4576_v19 = vld [vmem:[%s12475_s5 + $0xdc0] sm:$0xff]  ;;  %v8763_v14 = vcombine.high %v4448_v16, %v4452_v15 }
 0x2bb   :  { %v4580_v20 = vld [vmem:[%s12475_s5 + $0xde0] sm:$0xff] }
 0x2bc   :  { %7269 = vmatpush2.bf16.msra.mxu0 %v8562_v21  ;;  %v887_v21 = vrot.slane %v10772_v5, %v9310_v60  ;;  %v4440_v26 = vld [vmem:[%s12475_s5 + $0x980] sm:$0xff]  ;;  %v8891_v5 = vcombine.high %v4576_v19, %v4580_v20  ;;  %v8890_v35 = vcombine.low %v4576_v19, %v4580_v20 }
 0x2bd   :  { %7310 = vmatpush2.bf16.msra.mxu1 %v8690_v23  ;;  %7270 = vmatprep.subr.bf16.mxu0 %v8555_v24  ;;  %v8514_v23 = vcombine.low %v4200_v10, %v4204_v49  ;;  %v4120_v24 = vmax.f32 %v10178_v62, 0.0  ;;  %v4444_v27 = vld [vmem:[%s12475_s5 + $0x9a0] sm:$0xff] }
 0x2be   :  { %7311 = vmatprep.subr.bf16.mxu1 %v8683_v18  ;;  %v8642_v18 = vcombine.low %v4328_v6, %v4332_v4  ;;  %v4568_v62 = vld [vmem:[%s12475_s5 + $0xd80] sm:$0xff]  ;;  %v3829_v2 = vadd.f32 %v10801_v13, %v887_v21  ;;  %v8754_v42 = vcombine.low %v4440_v26, %v4444_v27 }
 0x2bf   :  { %v4432_v36 = vld [vmem:[%s12475_s5 + $0x940] sm:$0xff] }
 0x2c0   :  { %7271 = vmatpush2.bf16.msra.mxu0 %v8554_v31  ;;  %v4572_v31 = vld [vmem:[%s12475_s5 + $0xda0] sm:$0xff] }
 0x2c1   :  { %7312 = vmatpush2.bf16.msra.mxu1 %v8682_v32  ;;  %7272 = vmatprep.subr.bf16.mxu0 %v8547_v33  ;;  %v8762_v32 = vcombine.low %v4448_v16, %v4452_v15  ;;  %v10993_v33 = vpack.c.bf16 %v4120_v24, %v4120_v24  ;;  %v4436_v37 = vld [vmem:[%s12475_s5 + $0x960] sm:$0xff]  ;;  %v8883_v13 = vcombine.high %v4568_v62, %v4572_v31  ;;  %v11050_v24 = vld [vmem:[%s12475_s5 + $0x5e8] sm:$0xff] }
 0x2c2   :  { %7313 = vmatprep.subr.bf16.mxu1 %v8675_v34  ;;  %v8755_v34 = vcombine.high %v4440_v26, %v4444_v27  ;;  %v8747_v45 = vcombine.high %v4432_v36, %v4436_v37  ;;  %v4552_v29 = vld [vmem:[%s12475_s5 + $0xd00] sm:$0xff] }
 0x2c3   :  { %v4556_v63 = vld [vmem:[%s12475_s5 + $0xd20] sm:$0xff] }
 0x2c4   :  { %7273 = vmatpush2.bf16.msra.mxu0 %v8546_v8  ;;  %v4548_v16 = vld [vmem:[%s12475_s5 + $0xce0] sm:$0xff]  ;;  %v8866_v21 = vcombine.low %v4552_v29, %v4556_v63 }
 0x2c5   :  { %7314 = vmatpush2.bf16.msra.mxu1 %v8674_v38  ;;  %7274 = vmatprep.subr.bf16.mxu0 %v8539_v39  ;;  %v4560_v38 = vld [vmem:[%s12475_s5 + $0xd40] sm:$0xff] }
 0x2c6   :  { %7315 = vmatprep.subr.bf16.mxu1 %v8667_v40  ;;  %v4564_v39 = vld [vmem:[%s12475_s5 + $0xd60] sm:$0xff]  ;;  %v3870_v40 = vadd.f32 %v10806_v17, %v3829_v2 }
 0x2c7   :  { %v4428_v17 = vld [vmem:[%s12475_s5 + $0x920] sm:$0xff]  ;;  %v8875_v58 = vcombine.high %v4560_v38, %v4564_v39  ;;  %v8874_v49 = vcombine.low %v4560_v38, %v4564_v39 }
 0x2c8   :  { %7275 = vmatpush2.bf16.msra.mxu0 %v8538_v52  ;;  %v8882_v52 = vcombine.low %v4568_v62, %v4572_v31  ;;  %v4536_v27 = vld [vmem:[%s12475_s5 + $0xc80] sm:$0xff] }
 0x2c9   :  { %7316 = vmatpush2.bf16.msra.mxu1 %v8666_v54  ;;  %7276 = vmatprep.subr.bf16.mxu0 %v8531_v56 }
 0x2ca   :  { %7317 = vmatprep.subr.bf16.mxu1 %v8659_v57  ;;  %v4424_v57 = vld [vmem:[%s12475_s5 + $0x900] sm:$0xff] }
 0x2cb   :  { %v8739_v10 = vcombine.high %v4424_v57, %v4428_v17  ;;  %v8738_v19 = vcombine.low %v4424_v57, %v4428_v17  ;;  %v4512_v17 = vld [vmem:[%s12475_s5 + $0xbc0] sm:$0xff] }
 0x2cc   :  { %7277 = vmatpush2.bf16.msra.mxu0 %v8530_v7 }
 0x2cd   :  { %7318 = vmatpush2.bf16.msra.mxu1 %v8658_v0  ;;  %7278 = vmatprep.subr.bf16.mxu0 %v8523_v59  ;;  %v8746_v59 = vcombine.low %v4432_v36, %v4436_v37  ;;  %v4528_v36 = vld [vmem:[%s12475_s5 + $0xc40] sm:$0xff] }
 0x2ce   :  { %7319 = vmatprep.subr.bf16.mxu1 %v8651_v3  ;;  %v4532_v37 = vld [vmem:[%s12475_s5 + $0xc60] sm:$0xff] }
 0x2cf   :  { %v8842_v57 = vcombine.low %v4528_v36, %v4532_v37 }
 0x2d0   :  { %7279 = vmatpush2.bf16.msra.mxu0 %v8522_v53  ;;  %v4416_v53 = vld [vmem:[%s12475_s5 + $0x8c0] sm:$0xff] }
 0x2d1   :  { %7320 = vmatpush2.bf16.msra.mxu1 %v8650_v9  ;;  %7280 = vmatprep.subr.bf16.mxu0 %v8515_v11  ;;  %v4420_v9 = vld [vmem:[%s12475_s5 + $0x8e0] sm:$0xff]  ;;  %v8867_v11 = vcombine.high %v4552_v29, %v4556_v63 }
 0x2d2   :  { %7321 = vmatprep.subr.bf16.mxu1 %v8643_v12  ;;  %v4544_v12 = vld [vmem:[%s12475_s5 + $0xcc0] sm:$0xff]  ;;  %v8731_v20 = vcombine.high %v4416_v53, %v4420_v9  ;;  %v8730_v62 = vcombine.low %v4416_v53, %v4420_v9 }
 0x2d3   :  { %v8859_v25 = vcombine.high %v4544_v12, %v4548_v16  ;;  %v8858_v2 = vcombine.low %v4544_v12, %v4548_v16  ;;  %v4640_v29 = vld [vmem:[%s12475_s5 + $0xfc0] sm:$0xff] }
 0x2d4   :  { %7281 = vmatpush2.bf16.msra.mxu0 %v8514_v23  ;;  %v11045_v23 = vld [vmem:[%s12475_s5 + $0x5c8] sm:$0xff]  ;;  %v4644_v63 = vld [vmem:[%s12475_s5 + $0xfe0] sm:$0xff] }
 0x2d5   :  { %7322 = vmatpush2.bf16.msra.mxu1 %v8642_v18  ;;  %7332 = vmatprep.subr.bf16.mxu0 %v8763_v14  ;;  %v4408_v18 = vld [vmem:[%s12475_s5 + $0x880] sm:$0xff]  ;;  %v8636_v26 = vcombine.low %v11045_v23, %v11050_v24 }
 0x2d6   :  { %7373 = vmatprep.subr.bf16.mxu1 %v8891_v5  ;;  %v4412_v14 = vld [vmem:[%s12475_s5 + $0x8a0] sm:$0xff] }
 0x2d7   :  { %v11003_v8 = vpop.f32.mrf.mxu0  ;;  %7283 = vmatmul.mubr.bf16.vlgmr.msra.gmra.mxu0 %v10993_v33  ;;  %v4540_v5 = vld [vmem:[%s12475_s5 + $0xca0] sm:$0xff]  ;;  %v8723_v31 = vcombine.high %v4408_v18, %v4412_v14 }
 0x2d8   :  { %v11013_v41 = vpop.f32.mrf.mxu1  ;;  %7324 = vmatmul.mubr.bf16.vlgmr.msra.gmra.mxu1 %v10995_v43  ;;  %7333 = vmatpush1.bf16.msra.mxu0 %v8762_v32  ;;  %v4400_v32 = vld [vmem:[%s12475_s5 + $0x840] sm:$0xff]  ;;  %v8850_v39 = vcombine.low %v4536_v27, %v4540_v5 }
 0x2d9   :  { %v3910_v51 = vpop.f32.mrf.mxu0  ;;  %7334 = vmatprep.subr.bf16.mxu0 %v8755_v34  ;;  %7374 = vmatpush1.bf16.msra.mxu1 %v8890_v35  ;;  %v4404_v34 = vld [vmem:[%s12475_s5 + $0x860] sm:$0xff]  ;;  %v8851_v35 = vcombine.high %v4536_v27, %v4540_v5 }
 0x2da   :  { %v3911_v54 = vadd.f32 %v3910_v51, %v3870_v40  ;;  %v3951_v56 = vpop.f32.mrf.mxu1  ;;  %7375 = vmatprep.subr.bf16.mxu1 %v8883_v13  ;;  %v8722_v13 = vcombine.low %v4408_v18, %v4412_v14  ;;  %v8715_v38 = vcombine.high %v4400_v32, %v4404_v34  ;;  %v4392_v40 = vld [vmem:[%s12475_s5 + $0x800] sm:$0xff]  ;;  %v8843_v51 = vcombine.high %v4528_v36, %v4532_v37 }
 0x2db   :  { %v3912_v61 = vpop.f32.mrf.mxu0  ;;  %v4496_v12 = vld [vmem:[%s12475_s5 + $0xb40] sm:$0xff] }
 0x2dc   :  { %v3952_v7 = vadd.f32 %v3951_v56, %v3911_v54  ;;  %v3953_v0 = vpop.f32.mrf.mxu1  ;;  %7335 = vmatpush1.bf16.msra.mxu0 %v8754_v42  ;;  %v4396_v42 = vld [vmem:[%s12475_s5 + $0x820] sm:$0xff]  ;;  %v8714_v54 = vcombine.low %v4400_v32, %v4404_v34 }
 0x2dd   :  { %v3913_v3 = vpop.f32.mrf.mxu0  ;;  %7336 = vmatprep.subr.bf16.mxu0 %v8747_v45  ;;  %7376 = vmatpush1.bf16.msra.mxu1 %v8882_v52  ;;  %v4520_v45 = vld [vmem:[%s12475_s5 + $0xc00] sm:$0xff]  ;;  %v8707_v56 = vcombine.high %v4392_v40, %v4396_v42 }
 0x2de   :  { %v4125_v6 = vmax.f32 %v3952_v7, 0.0  ;;  %v3954_v4 = vpop.f32.mrf.mxu1  ;;  %7377 = vmatprep.subr.bf16.mxu1 %v8875_v58  ;;  %v4524_v52 = vld [vmem:[%s12475_s5 + $0xc20] sm:$0xff]  ;;  %v8706_v7 = vcombine.low %v4392_v40, %v4396_v42 }
 0x2df   :  { %v4516_v58 = vld [vmem:[%s12475_s5 + $0xbe0] sm:$0xff]  ;;  %v8835_v61 = vcombine.high %v4520_v45, %v4524_v52 }
 0x2e0   :  { %v11040_v15 = vpack.c.bf16 %v4125_v6, %v4125_v6  ;;  %7337 = vmatpush1.bf16.msra.mxu0 %v8746_v59  ;;  %v8827_v0 = vcombine.high %v4512_v17, %v4516_v58  ;;  %v8834_v59 = vcombine.low %v4520_v45, %v4524_v52  ;;  %v4504_v3 = vld [vmem:[%s12475_s5 + $0xb80] sm:$0xff]  ;;  %v8826_v53 = vcombine.low %v4512_v17, %v4516_v58 }
 0x2e1   :  { %7338 = vmatprep.subr.bf16.mxu0 %v8739_v10  ;;  %7378 = vmatpush1.bf16.msra.mxu1 %v8874_v49  ;;  %v4508_v10 = vld [vmem:[%s12475_s5 + $0xba0] sm:$0xff]  ;;  %v8955_v49 = vcombine.high %v4640_v29, %v4644_v63 }
 0x2e2   :  { %7364 = vmatprep.mubr.bf16.mxu0 %v11040_v15  ;;  %7379 = vmatprep.subr.bf16.mxu1 %v8867_v11  ;;  %v4632_v6 = vld [vmem:[%s12475_s5 + $0xf80] sm:$0xff]  ;;  %v8819_v9 = vcombine.high %v4504_v3, %v4508_v10  ;;  %v8954_v11 = vcombine.low %v4640_v29, %v4644_v63  ;;  %v8818_v18 = vcombine.low %v4504_v3, %v4508_v10 }
 0x2e3   :  { %v4636_v4 = vld [vmem:[%s12475_s5 + $0xfa0] sm:$0xff]  ;;  %v3909_v10 = vadd.f32 %v11003_v8, %v10803_v22 }
 0x2e4   :  { %7339 = vmatpush1.bf16.msra.mxu0 %v8738_v19  ;;  %v4500_v16 = vld [vmem:[%s12475_s5 + $0xb60] sm:$0xff]  ;;  %v8947_v19 = vcombine.high %v4632_v6, %v4636_v4 }
 0x2e5   :  { %7340 = vmatprep.subr.bf16.mxu0 %v8731_v20  ;;  %7380 = vmatpush1.bf16.msra.mxu1 %v8866_v21  ;;  %v4624_v20 = vld [vmem:[%s12475_s5 + $0xf40] sm:$0xff]  ;;  %v8811_v14 = vcombine.high %v4496_v12, %v4500_v16  ;;  %v8810_v32 = vcombine.low %v4496_v12, %v4500_v16  ;;  %v3950_v12 = vadd.f32 %v11013_v41, %v3909_v10 }
 0x2e6   :  { %7381 = vmatprep.subr.bf16.mxu1 %v8859_v25  ;;  %v4628_v21 = vld [vmem:[%s12475_s5 + $0xf60] sm:$0xff]  ;;  %v8946_v25 = vcombine.low %v4632_v6, %v4636_v4 }
 0x2e7   :  { %v4488_v27 = vld [vmem:[%s12475_s5 + $0xb00] sm:$0xff] }
 0x2e8   :  { %7341 = vmatpush1.bf16.msra.mxu0 %v8730_v62  ;;  %v4492_v5 = vld [vmem:[%s12475_s5 + $0xb20] sm:$0xff]  ;;  %v8939_v62 = vcombine.high %v4624_v20, %v4628_v21 }
 0x2e9   :  { %7342 = vmatprep.subr.bf16.mxu0 %v8723_v31  ;;  %7382 = vmatpush1.bf16.msra.mxu1 %v8858_v2  ;;  %v4616_v31 = vld [vmem:[%s12475_s5 + $0xf00] sm:$0xff]  ;;  %v8803_v34 = vcombine.high %v4488_v27, %v4492_v5  ;;  %v8802_v40 = vcombine.low %v4488_v27, %v4492_v5  ;;  %v4185_v5 = vld [vmem:[%s12475_s5 + $0x188] sm:$0xff] }
 0x2ea   :  { %7383 = vmatprep.subr.bf16.mxu1 %v8851_v35  ;;  %v4620_v2 = vld [vmem:[%s12475_s5 + $0xf20] sm:$0xff]  ;;  %v8938_v35 = vcombine.low %v4624_v20, %v4628_v21  ;;  %v4193_v20 = vld [vmem:[%s12475_s5 + $0x1c8] sm:$0xff] }
 0x2eb   :  { %v4480_v36 = vld [vmem:[%s12475_s5 + $0xac0] sm:$0xff]  ;;  %v4197_v21 = vld [vmem:[%s12475_s5 + $0x1e8] sm:$0xff] }
 0x2ec   :  { %7343 = vmatpush1.bf16.msra.mxu0 %v8722_v13  ;;  %v4484_v37 = vld [vmem:[%s12475_s5 + $0xae0] sm:$0xff]  ;;  %v8931_v13 = vcombine.high %v4616_v31, %v4620_v2  ;;  %v8509_v27 = vcombine.high %v4193_v20, %v4197_v21 }
 0x2ed   :  { %7344 = vmatprep.subr.bf16.mxu0 %v8715_v38  ;;  %7384 = vmatpush1.bf16.msra.mxu1 %v8850_v39  ;;  %v4608_v38 = vld [vmem:[%s12475_s5 + $0xec0] sm:$0xff]  ;;  %v8795_v42 = vcombine.high %v4480_v36, %v4484_v37  ;;  %v8794_v17 = vcombine.low %v4480_v36, %v4484_v37  ;;  %v4181_v36 = vld [vmem:[%s12475_s5 + $0x168] sm:$0xff] }
 0x2ee   :  { %7385 = vmatprep.subr.bf16.mxu1 %v8843_v51  ;;  %v4612_v39 = vld [vmem:[%s12475_s5 + $0xee0] sm:$0xff]  ;;  %v8930_v51 = vcombine.low %v4616_v31, %v4620_v2  ;;  %v8637_v31 = vcombine.high %v11045_v23, %v11050_v24  ;;  %v8508_v2 = vcombine.low %v4193_v20, %v4197_v21  ;;  %v4249_v21 = vld [vmem:[%s12475_s5 + $0x388] sm:$0xff] }
 0x2ef   :  { %v4472_v45 = vld [vmem:[%s12475_s5 + $0xa80] sm:$0xff]  ;;  %v4401_v23 = vld [vmem:[%s12475_s5 + $0x848] sm:$0xff] }
 0x2f0   :  { %7345 = vmatpush1.bf16.msra.mxu0 %v8714_v54  ;;  %v4476_v52 = vld [vmem:[%s12475_s5 + $0xaa0] sm:$0xff]  ;;  %v8923_v54 = vcombine.high %v4608_v38, %v4612_v39  ;;  %v4405_v24 = vld [vmem:[%s12475_s5 + $0x868] sm:$0xff] }
 0x2f1   :  { %7346 = vmatprep.subr.bf16.mxu0 %v8707_v56  ;;  %7386 = vmatpush1.bf16.msra.mxu1 %v8842_v57  ;;  %v4600_v56 = vld [vmem:[%s12475_s5 + $0xe80] sm:$0xff]  ;;  %v8787_v58 = vcombine.high %v4472_v45, %v4476_v52  ;;  %v8786_v3 = vcombine.low %v4472_v45, %v4476_v52  ;;  %v4173_v45 = vld [vmem:[%s12475_s5 + $0x128] sm:$0xff] }
 0x2f2   :  { %7387 = vmatprep.subr.bf16.mxu1 %v8835_v61  ;;  %v4604_v57 = vld [vmem:[%s12475_s5 + $0xea0] sm:$0xff]  ;;  %v8922_v61 = vcombine.low %v4608_v38, %v4612_v39 }
 0x2f3   :  { %v4464_v29 = vld [vmem:[%s12475_s5 + $0xa40] sm:$0xff]  ;;  %v8914_v6 = vcombine.low %v4600_v56, %v4604_v57 }
 0x2f4   :  { %7347 = vmatpush1.bf16.msra.mxu0 %v8706_v7  ;;  %v4468_v63 = vld [vmem:[%s12475_s5 + $0xa60] sm:$0xff]  ;;  %v8915_v7 = vcombine.high %v4600_v56, %v4604_v57 }
 0x2f5   :  { %7348 = vmatprep.subr.bf16.mxu0 %v8827_v0  ;;  %7388 = vmatpush1.bf16.msra.mxu1 %v8834_v59  ;;  %v4592_v0 = vld [vmem:[%s12475_s5 + $0xe40] sm:$0xff]  ;;  %v8778_v8 = vcombine.low %v4464_v29, %v4468_v63 }
 0x2f6   :  { %7389 = vmatprep.subr.bf16.mxu1 %v8955_v49  ;;  %v4596_v59 = vld [vmem:[%s12475_s5 + $0xe60] sm:$0xff]  ;;  %v8779_v49 = vcombine.high %v4464_v29, %v4468_v63  ;;  %v4165_v29 = vld [vmem:[%s12475_s5 + $0xe8] sm:$0xff] }
 0x2f7   :  { %v4456_v4 = vld [vmem:[%s12475_s5 + $0xa00] sm:$0xff] }
 0x2f8   :  { %7349 = vmatpush2.bf16.msra.mxu0 %v8826_v53  ;;  %v4460_v53 = vld [vmem:[%s12475_s5 + $0xa20] sm:$0xff] }
 0x2f9   :  { %7350 = vmatprep.subr.bf16.mxu0 %v8819_v9  ;;  %7390 = vmatpush2.bf16.msra.mxu1 %v8954_v11  ;;  %v8907_v9 = vcombine.high %v4592_v0, %v4596_v59  ;;  %v4584_v11 = vld [vmem:[%s12475_s5 + $0xe00] sm:$0xff]  ;;  %v8771_v16 = vcombine.high %v4456_v4, %v4460_v53 }
 0x2fa   :  { %7391 = vmatprep.subr.bf16.mxu1 %v8947_v19  ;;  %v4588_v22 = vld [vmem:[%s12475_s5 + $0xe20] sm:$0xff]  ;;  %v8906_v19 = vcombine.low %v4592_v0, %v4596_v59  ;;  %v4153_v0 = vld [vmem:[%s12475_s5 + $0x88] sm:$0xff] }
 0x2fb   :  { %v8898_v41 = vcombine.low %v4584_v11, %v4588_v22  ;;  %v4157_v59 = vld [vmem:[%s12475_s5 + $0xa8] sm:$0xff] }
 0x2fc   :  { %7351 = vmatpush2.bf16.msra.mxu0 %v8818_v18  ;;  %v8899_v18 = vcombine.high %v4584_v11, %v4588_v22  ;;  %v8469_v10 = vcombine.high %v4153_v0, %v4157_v59  ;;  %v4141_v11 = vld [vmem:[%s12475_s5 + $0x28] sm:$0xff] }
 0x2fd   :  { %7352 = vmatprep.subr.bf16.mxu0 %v8811_v14  ;;  %7392 = vmatpush2.bf16.msra.mxu1 %v8946_v25  ;;  %v8770_v14 = vcombine.low %v4456_v4, %v4460_v53  ;;  %v4124_v25 = vmax.f32 %v3950_v12, 0.0  ;;  %v8468_v4 = vcombine.low %v4153_v0, %v4157_v59  ;;  %v4257_v12 = vld [vmem:[%s12475_s5 + $0x3c8] sm:$0xff]  ;;  %v8964_v59 = vld [vmem:[%s12474_s4] sm:$0xff] }
 0x2fe   :  { %7393 = vmatprep.subr.bf16.mxu1 %v8939_v62  ;;  %v4189_v62 = vld [vmem:[%s12475_s5 + $0x1a8] sm:$0xff] }
 0x2ff   :  { %v8500_v38 = vcombine.low %v4185_v5, %v4189_v62 }
 0x300   :  { %7353 = vmatpush2.bf16.msra.mxu0 %v8810_v32  ;;  %v11204_v32 = vpack.c.bf16 %v4124_v25, %v4124_v25 }
 0x301   :  { %7354 = vmatprep.subr.bf16.mxu0 %v8803_v34  ;;  %7394 = vmatpush2.bf16.msra.mxu1 %v8938_v35  ;;  %v8501_v34 = vcombine.high %v4185_v5, %v4189_v62  ;;  %v4177_v35 = vld [vmem:[%s12475_s5 + $0x148] sm:$0xff] }
 0x302   :  { %7395 = vmatprep.subr.bf16.mxu1 %v8931_v13  ;;  %v8492_v56 = vcombine.low %v4177_v35, %v4181_v36 }
 0x304   :  { %7355 = vmatpush2.bf16.msra.mxu0 %v8802_v40  ;;  %v8493_v40 = vcombine.high %v4177_v35, %v4181_v36  ;;  %v4225_v36 = vld [vmem:[%s12475_s5 + $0x2c8] sm:$0xff] }
 0x305   :  { %7356 = vmatprep.subr.bf16.mxu0 %v8795_v42  ;;  %7396 = vmatpush2.bf16.msra.mxu1 %v8930_v51  ;;  %v4169_v51 = vld [vmem:[%s12475_s5 + $0x108] sm:$0xff] }
 0x306   :  { %7397 = vmatprep.subr.bf16.mxu1 %v8923_v54  ;;  %v8484_v63 = vcombine.low %v4169_v51, %v4173_v45 }
 0x308   :  { %7357 = vmatpush2.bf16.msra.mxu0 %v8794_v17  ;;  %v8485_v17 = vcombine.high %v4169_v51, %v4173_v45  ;;  %v4217_v45 = vld [vmem:[%s12475_s5 + $0x288] sm:$0xff] }
 0x309   :  { %7358 = vmatprep.subr.bf16.mxu0 %v8787_v58  ;;  %7398 = vmatpush2.bf16.msra.mxu1 %v8922_v61  ;;  %v4161_v61 = vld [vmem:[%s12475_s5 + $0xc8] sm:$0xff] }
 0x30a   :  { %7399 = vmatprep.subr.bf16.mxu1 %v8915_v7  ;;  %v8477_v7 = vcombine.high %v4161_v61, %v4165_v29 }
 0x30c   :  { %7359 = vmatpush2.bf16.msra.mxu0 %v8786_v3  ;;  %v8476_v3 = vcombine.low %v4161_v61, %v4165_v29  ;;  %v4201_v29 = vld [vmem:[%s12475_s5 + $0x208] sm:$0xff] }
 0x30d   :  { %7360 = vmatprep.subr.bf16.mxu0 %v8779_v49  ;;  %7400 = vmatpush2.bf16.msra.mxu1 %v8914_v6  ;;  %v4145_v49 = vld [vmem:[%s12475_s5 + $0x48] sm:$0xff] }
 0x30e   :  { %7401 = vmatprep.subr.bf16.mxu1 %v8907_v9  ;;  %v4149_v6 = vld [vmem:[%s12475_s5 + $0x68] sm:$0xff] }
 0x30f   :  { %v8461_v53 = vcombine.high %v4145_v49, %v4149_v6  ;;  %v4137_v9 = vld [vmem:[%s12475_s5 + $0x8] sm:$0xff]  ;;  %v8460_v22 = vcombine.low %v4145_v49, %v4149_v6  ;;  %v895_v6 = vrot.slane %v8964_v59, %v9313_v1 }
 0x310   :  { %7361 = vmatpush2.bf16.msra.mxu0 %v8778_v8  ;;  %v8453_v8 = vcombine.high %v4137_v9, %v4141_v11  ;;  %v4453_v49 = vld [vmem:[%s12475_s5 + $0x9e8] sm:$0xff] }
 0x311   :  { %7362 = vmatprep.subr.bf16.mxu0 %v8771_v16  ;;  %7402 = vmatpush2.bf16.msra.mxu1 %v8906_v19  ;;  %v4261_v16 = vld [vmem:[%s12475_s5 + $0x3e8] sm:$0xff]  ;;  %v8452_v19 = vcombine.low %v4137_v9, %v4141_v11 }
 0x312   :  { %7403 = vmatprep.subr.bf16.mxu1 %v8899_v18  ;;  %v8573_v20 = vcombine.high %v4257_v12, %v4261_v16  ;;  %v4253_v18 = vld [vmem:[%s12475_s5 + $0x3a8] sm:$0xff] }
 0x313   :  { %v8565_v25 = vcombine.high %v4249_v21, %v4253_v18  ;;  %v8564_v5 = vcombine.low %v4249_v21, %v4253_v18  ;;  %v4441_v11 = vld [vmem:[%s12475_s5 + $0x988] sm:$0xff] }
 0x314   :  { %7363 = vmatpush2.bf16.msra.mxu0 %v8770_v14  ;;  %v8572_v14 = vcombine.low %v4257_v12, %v4261_v16 }
 0x315   :  { %7414 = vmatprep.subr.bf16.mxu0 %v8509_v27  ;;  %7404 = vmatpush2.bf16.msra.mxu1 %v8898_v41  ;;  %v4241_v27 = vld [vmem:[%s12475_s5 + $0x348] sm:$0xff] }
 0x316   :  { %7455 = vmatprep.subr.bf16.mxu1 %v8637_v31  ;;  %v4245_v41 = vld [vmem:[%s12475_s5 + $0x368] sm:$0xff] }
 0x317   :  { %v11212_v37 = vpop.f32.mrf.mxu0  ;;  %7365 = vmatmul.mubr.bf16.vlgmr.msra.gmra.mxu0 %v11204_v32  ;;  %v8557_v62 = vcombine.high %v4241_v27, %v4245_v41  ;;  %v4233_v31 = vld [vmem:[%s12475_s5 + $0x308] sm:$0xff] }
 0x318   :  { %v11215_v13 = vpop.f32.mrf.mxu1  ;;  %7415 = vmatpush1.bf16.msra.mxu0 %v8508_v2  ;;  %7446 = vmatprep.mubr.bf16.mxu0 %v10788_v50  ;;  %v4237_v2 = vld [vmem:[%s12475_s5 + $0x328] sm:$0xff] }
 0x319   :  { %v11218_v39 = vpop.f32.mrf.mxu0  ;;  %7416 = vmatprep.subr.bf16.mxu0 %v8501_v34  ;;  %v8556_v34 = vcombine.low %v4241_v27, %v4245_v41  ;;  %v8549_v35 = vcombine.high %v4233_v31, %v4237_v2 }
 0x31a   :  { %v11220_v42 = vpop.f32.mrf.mxu1 }
 0x31b   :  { %v3994_v52 = vpop.f32.mrf.mxu0 }
 0x31c   :  { %v4035_v54 = vpop.f32.mrf.mxu1  ;;  %7417 = vmatpush1.bf16.msra.mxu0 %v8500_v38  ;;  %v4229_v38 = vld [vmem:[%s12475_s5 + $0x2e8] sm:$0xff] }
 0x31d   :  { %v3995_v57 = vpop.f32.mrf.mxu0  ;;  %7418 = vmatprep.subr.bf16.mxu0 %v8493_v40  ;;  %v8548_v40 = vcombine.low %v4233_v31, %v4237_v2  ;;  %v8541_v51 = vcombine.high %v4225_v36, %v4229_v38  ;;  %v4221_v52 = vld [vmem:[%s12475_s5 + $0x2a8] sm:$0xff]  ;;  %v8540_v54 = vcombine.low %v4225_v36, %v4229_v38 }
 0x31e   :  { %v4036_v58 = vpop.f32.mrf.mxu1  ;;  %v4209_v57 = vld [vmem:[%s12475_s5 + $0x248] sm:$0xff] }
 0x31f   :  { %v8532_v58 = vcombine.low %v4217_v45, %v4221_v52  ;;  %v4425_v31 = vld [vmem:[%s12475_s5 + $0x908] sm:$0xff] }
 0x320   :  { %7419 = vmatpush1.bf16.msra.mxu0 %v8492_v56  ;;  %v8533_v56 = vcombine.high %v4217_v45, %v4221_v52 }
 0x321   :  { %7420 = vmatprep.subr.bf16.mxu0 %v8485_v17  ;;  %v4213_v17 = vld [vmem:[%s12475_s5 + $0x268] sm:$0xff] }
 0x322   :  { %v8525_v61 = vcombine.high %v4209_v57, %v4213_v17 }
 0x324   :  { %7421 = vmatpush1.bf16.msra.mxu0 %v8484_v63  ;;  %v4205_v63 = vld [vmem:[%s12475_s5 + $0x228] sm:$0xff] }
 0x325   :  { %7422 = vmatprep.subr.bf16.mxu0 %v8477_v7  ;;  %v8524_v7 = vcombine.low %v4209_v57, %v4213_v17  ;;  %v8517_v0 = vcombine.high %v4201_v29, %v4205_v63  ;;  %v4417_v57 = vld [vmem:[%s12475_s5 + $0x8c8] sm:$0xff] }
 0x326   :  { %v4421_v17 = vld [vmem:[%s12475_s5 + $0x8e8] sm:$0xff] }
 0x328   :  { %7423 = vmatpush1.bf16.msra.mxu0 %v8476_v3  ;;  %v891_v3 = vrot.slane %v8964_v59, %v9498_v28  ;;  %v4309_v59 = vld [vmem:[%s12475_s5 + $0x568] sm:$0xff] }
 0x329   :  { %7424 = vmatprep.subr.bf16.mxu0 %v8469_v10  ;;  %v4449_v10 = vld [vmem:[%s12475_s5 + $0x9c8] sm:$0xff] }
 0x32a   :  { %v3991_v9 = vadd.f32 %v11212_v37, %v891_v3  ;;  %v8764_v12 = vcombine.low %v4449_v10, %v4453_v49  ;;  %v4433_v37 = vld [vmem:[%s12475_s5 + $0x948] sm:$0xff] }
 0x32b   :  { %v4409_v3 = vld [vmem:[%s12475_s5 + $0x888] sm:$0xff] }
 0x32c   :  { %7425 = vmatpush1.bf16.msra.mxu0 %v8468_v4  ;;  %v8516_v4 = vcombine.low %v4201_v29, %v4205_v63 }
 0x32d   :  { %7426 = vmatprep.subr.bf16.mxu0 %v8461_v53  ;;  %v8765_v53 = vcombine.high %v4449_v10, %v4453_v49  ;;  %v4413_v10 = vld [vmem:[%s12475_s5 + $0x8a8] sm:$0xff] }
 0x330   :  { %7427 = vmatpush1.bf16.msra.mxu0 %v8460_v22  ;;  %v4445_v22 = vld [vmem:[%s12475_s5 + $0x9a8] sm:$0xff] }
 0x331   :  { %7428 = vmatprep.subr.bf16.mxu0 %v8453_v8  ;;  %v3993_v8 = vadd.f32 %v11218_v39, %v895_v6  ;;  %v8757_v16 = vcombine.high %v4441_v11, %v4445_v22  ;;  %v8732_v6 = vcombine.low %v4417_v57, %v4421_v17 }
 0x333   :  { %v4034_v18 = vadd.f32 %v11220_v42, %v3993_v8  ;;  %v4429_v42 = vld [vmem:[%s12475_s5 + $0x928] sm:$0xff] }
 0x334   :  { %7429 = vmatpush1.bf16.msra.mxu0 %v8452_v19  ;;  %v4032_v19 = vadd.f32 %v11215_v13, %v3991_v9  ;;  %v8740_v29 = vcombine.low %v4425_v31, %v4429_v42  ;;  %v4297_v9 = vld [vmem:[%s12475_s5 + $0x508] sm:$0xff] }
 0x335   :  { %7430 = vmatprep.subr.bf16.mxu0 %v8573_v20  ;;  %v4437_v20 = vld [vmem:[%s12475_s5 + $0x968] sm:$0xff] }
 0x336   :  { %v8749_v27 = vcombine.high %v4433_v37, %v4437_v20  ;;  %v8748_v36 = vcombine.low %v4433_v37, %v4437_v20  ;;  %v4393_v37 = vld [vmem:[%s12475_s5 + $0x808] sm:$0xff] }
 0x337   :  { %v4397_v20 = vld [vmem:[%s12475_s5 + $0x828] sm:$0xff] }
 0x338   :  { %7431 = vmatpush2.bf16.msra.mxu0 %v8572_v14 }
 0x339   :  { %7432 = vmatprep.subr.bf16.mxu0 %v8565_v25  ;;  %v8756_v25 = vcombine.low %v4441_v11, %v4445_v22  ;;  %v4301_v11 = vld [vmem:[%s12475_s5 + $0x528] sm:$0xff]  ;;  %v8724_v22 = vcombine.low %v4409_v3, %v4413_v10 }
 0x33a   :  { %v8613_v8 = vcombine.high %v4297_v9, %v4301_v11 }
 0x33c   :  { %7433 = vmatpush2.bf16.msra.mxu0 %v8564_v5 }
 0x33d   :  { %7434 = vmatprep.subr.bf16.mxu0 %v8557_v62 }
 0x340   :  { %7435 = vmatpush2.bf16.msra.mxu0 %v8556_v34 }
 0x341   :  { %7436 = vmatprep.subr.bf16.mxu0 %v8549_v35 }
 0x344   :  { %7437 = vmatpush2.bf16.msra.mxu0 %v8548_v40 }
 0x345   :  { %7438 = vmatprep.subr.bf16.mxu0 %v8541_v51  ;;  %v8741_v51 = vcombine.high %v4425_v31, %v4429_v42 }
 0x348   :  { %7439 = vmatpush2.bf16.msra.mxu0 %v8540_v54  ;;  %v4313_v54 = vld [vmem:[%s12475_s5 + $0x588] sm:$0xff] }
 0x349   :  { %7440 = vmatprep.subr.bf16.mxu0 %v8533_v56  ;;  %v4317_v56 = vld [vmem:[%s12475_s5 + $0x5a8] sm:$0xff] }
 0x34a   :  { %v8629_v63 = vcombine.high %v4313_v54, %v4317_v56  ;;  %v8628_v49 = vcombine.low %v4313_v54, %v4317_v56  ;;  %v4269_v54 = vld [vmem:[%s12475_s5 + $0x428] sm:$0xff] }
 0x34b   :  { %v4497_v56 = vld [vmem:[%s12475_s5 + $0xb48] sm:$0xff] }
 0x34c   :  { %7441 = vmatpush2.bf16.msra.mxu0 %v8532_v58 }
 0x34d   :  { %7442 = vmatprep.subr.bf16.mxu0 %v8525_v61 }
 0x350   :  { %7443 = vmatpush2.bf16.msra.mxu0 %v8524_v7  ;;  %v8733_v7 = vcombine.high %v4417_v57, %v4421_v17  ;;  %v4501_v57 = vld [vmem:[%s12475_s5 + $0xb68] sm:$0xff] }
 0x351   :  { %7444 = vmatprep.subr.bf16.mxu0 %v8517_v0  ;;  %v4305_v0 = vld [vmem:[%s12475_s5 + $0x548] sm:$0xff] }
 0x354   :  { %7445 = vmatpush2.bf16.msra.mxu0 %v8516_v4  ;;  %v8621_v4 = vcombine.high %v4305_v0, %v4309_v59 }
 0x355   :  { %7496 = vmatprep.subr.bf16.mxu0 %v8765_v53  ;;  %v8725_v53 = vcombine.high %v4409_v3, %v4413_v10  ;;  %v4489_v3 = vld [vmem:[%s12475_s5 + $0xb08] sm:$0xff] }
 0x356   :  { %v4493_v10 = vld [vmem:[%s12475_s5 + $0xb28] sm:$0xff] }
 0x357   :  { %v4072_v21 = vpop.f32.mrf.mxu0  ;;  %7447 = vmatmul.mubr.bf16.vlgmr.msra.gmra.mxu0 %v10993_v33 }
 0x358   :  { %v4073_v39 = vadd.f32 %v4072_v21, %v4032_v19  ;;  %v4113_v14 = vpop.f32.mrf.mxu1  ;;  %7497 = vmatpush1.bf16.msra.mxu0 %v8764_v12  ;;  %7528 = vmatprep.mubr.bf16.mxu0 %v11040_v15  ;;  %v8717_v12 = vcombine.high %v4401_v23, %v4405_v24  ;;  %v4293_v19 = vld [vmem:[%s12475_s5 + $0x4e8] sm:$0xff]  ;;  %v8612_v21 = vcombine.low %v4297_v9, %v4301_v11 }
 0x359   :  { %v4074_v13 = vpop.f32.mrf.mxu0  ;;  %7498 = vmatprep.subr.bf16.mxu0 %v8757_v16  ;;  %v4289_v16 = vld [vmem:[%s12475_s5 + $0x4c8] sm:$0xff] }
 0x35a   :  { %v4114_v41 = vadd.f32 %v4113_v14, %v4073_v39  ;;  %v4075_v5 = vadd.f32 %v4074_v13, %v4034_v18  ;;  %v4115_v62 = vpop.f32.mrf.mxu1  ;;  %v8716_v18 = vcombine.low %v4401_v23, %v4405_v24  ;;  %v8605_v39 = vcombine.high %v4289_v16, %v4293_v19  ;;  %v4285_v13 = vld [vmem:[%s12475_s5 + $0x4a8] sm:$0xff] }
 0x35b   :  { %v4076_v2 = vpop.f32.mrf.mxu0  ;;  %v8709_v14 = vcombine.high %v4393_v37, %v4397_v20  ;;  %v4377_v9 = vld [vmem:[%s12475_s5 + $0x788] sm:$0xff] }
 0x35c   :  { %v4116_v34 = vadd.f32 %v4115_v62, %v4075_v5  ;;  %v4117_v35 = vpop.f32.mrf.mxu1  ;;  %7499 = vmatpush1.bf16.msra.mxu0 %v8756_v25  ;;  %v4126_v38 = vmax.f32 %v4114_v41, 0.0  ;;  %v4281_v25 = vld [vmem:[%s12475_s5 + $0x488] sm:$0xff]  ;;  %v8604_v5 = vcombine.low %v4289_v16, %v4293_v19  ;;  %v8708_v62 = vcombine.low %v4393_v37, %v4397_v20 }
 0x35d   :  { %v4077_v40 = vpop.f32.mrf.mxu0  ;;  %7500 = vmatprep.subr.bf16.mxu0 %v8749_v27  ;;  %v4513_v27 = vld [vmem:[%s12475_s5 + $0xbc8] sm:$0xff]  ;;  %v8597_v31 = vcombine.high %v4281_v25, %v4285_v13 }
 0x35e   :  { %v4127_v45 = vmax.f32 %v4116_v34, 0.0  ;;  %v4118_v52 = vpop.f32.mrf.mxu1  ;;  %v11349_v61 = vpack.c.bf16 %v4126_v38, %v4126_v38  ;;  %v4517_v41 = vld [vmem:[%s12475_s5 + $0xbe8] sm:$0xff]  ;;  %v8596_v38 = vcombine.low %v4281_v25, %v4285_v13 }
 0x35f   :  { %v8829_v42 = vcombine.high %v4513_v27, %v4517_v41  ;;  %v4273_v2 = vld [vmem:[%s12475_s5 + $0x448] sm:$0xff]  ;;  %v8828_v40 = vcombine.low %v4513_v27, %v4517_v41 }
 0x360   :  { %v11347_v58 = vpack.c.bf16 %v4127_v45, %v4127_v45  ;;  %7501 = vmatpush1.bf16.msra.mxu0 %v8748_v36  ;;  %v4277_v34 = vld [vmem:[%s12475_s5 + $0x468] sm:$0xff] }
 0x361   :  { %7502 = vmatprep.subr.bf16.mxu0 %v8741_v51  ;;  %v4505_v35 = vld [vmem:[%s12475_s5 + $0xb88] sm:$0xff]  ;;  %v8589_v51 = vcombine.high %v4273_v2, %v4277_v34  ;;  %v8588_v17 = vcombine.low %v4273_v2, %v4277_v34 }
 0x362   :  { %7405 = vmatprep.mubr.bf16.mxu1 %v11347_v58  ;;  %v4509_v36 = vld [vmem:[%s12475_s5 + $0xba8] sm:$0xff] }
 0x363   :  { %7406 = vmatmul.mubr.bf16.vlgmr.msra.gmra.mxu1 %v11349_v61  ;;  %v8821_v45 = vcombine.high %v4505_v35, %v4509_v36  ;;  %v4265_v52 = vld [vmem:[%s12475_s5 + $0x408] sm:$0xff] }
 0x364   :  { %7456 = vmatpush1.bf16.msra.mxu1 %v8636_v26  ;;  %7487 = vmatprep.mubr.bf16.mxu1 %v10797_v55  ;;  %v8620_v26 = vcombine.low %v4305_v0, %v4309_v59  ;;  %v4385_v0 = vld [vmem:[%s12475_s5 + $0x7c8] sm:$0xff] }
 0x365   :  { %7503 = vmatpush1.bf16.msra.mxu0 %v8740_v29  ;;  %7457 = vmatprep.subr.bf16.mxu1 %v8629_v63  ;;  %v8820_v29 = vcombine.low %v4505_v35, %v4509_v36  ;;  %v8581_v63 = vcombine.high %v4265_v52, %v4269_v54  ;;  %v4389_v59 = vld [vmem:[%s12475_s5 + $0x7e8] sm:$0xff] }
 0x366   :  { %7504 = vmatprep.subr.bf16.mxu0 %v8733_v7  ;;  %v8813_v7 = vcombine.high %v4497_v56, %v4501_v57  ;;  %v4381_v11 = vld [vmem:[%s12475_s5 + $0x7a8] sm:$0xff] }
 0x367   :  { %v4481_v23 = vld [vmem:[%s12475_s5 + $0xac8] sm:$0xff] }
 0x368   :  { %7458 = vmatpush1.bf16.msra.mxu1 %v8628_v49  ;;  %v8580_v49 = vcombine.low %v4265_v52, %v4269_v54  ;;  %v4485_v24 = vld [vmem:[%s12475_s5 + $0xae8] sm:$0xff] }
 0x369   :  { %7505 = vmatpush1.bf16.msra.mxu0 %v8732_v6  ;;  %7459 = vmatprep.subr.bf16.mxu1 %v8621_v4  ;;  %v8812_v6 = vcombine.low %v4497_v56, %v4501_v57  ;;  %v8701_v4 = vcombine.high %v4385_v0, %v4389_v59  ;;  %v4369_v16 = vld [vmem:[%s12475_s5 + $0x748] sm:$0xff]  ;;  %v4194_v56 = vld [vmem:[%s12475_s5 + $0x1d0] sm:$0xff] }
 0x36a   :  { %7506 = vmatprep.subr.bf16.mxu0 %v8725_v53  ;;  %v8805_v53 = vcombine.high %v4489_v3, %v4493_v10  ;;  %v4373_v19 = vld [vmem:[%s12475_s5 + $0x768] sm:$0xff]  ;;  %v4198_v57 = vld [vmem:[%s12475_s5 + $0x1f0] sm:$0xff] }
 0x36b   :  { %v4473_v37 = vld [vmem:[%s12475_s5 + $0xa88] sm:$0xff] }
 0x36c   :  { %7460 = vmatpush1.bf16.msra.mxu1 %v8620_v26  ;;  %v8700_v26 = vcombine.low %v4385_v0, %v4389_v59  ;;  %v4477_v20 = vld [vmem:[%s12475_s5 + $0xaa8] sm:$0xff]  ;;  %v8511_v0 = vcombine.high %v4194_v56, %v4198_v57 }
 0x36d   :  { %7507 = vmatpush1.bf16.msra.mxu0 %v8724_v22  ;;  %7461 = vmatprep.subr.bf16.mxu1 %v8613_v8  ;;  %v8804_v22 = vcombine.low %v4489_v3, %v4493_v10  ;;  %v8693_v8 = vcombine.high %v4377_v9, %v4381_v11  ;;  %v4361_v25 = vld [vmem:[%s12475_s5 + $0x708] sm:$0xff]  ;;  %v4186_v10 = vld [vmem:[%s12475_s5 + $0x190] sm:$0xff] }
 0x36e   :  { %7508 = vmatprep.subr.bf16.mxu0 %v8717_v12  ;;  %v8797_v12 = vcombine.high %v4481_v23, %v4485_v24  ;;  %v4365_v13 = vld [vmem:[%s12475_s5 + $0x728] sm:$0xff] }
 0x36f   :  { %v4465_v27 = vld [vmem:[%s12475_s5 + $0xa48] sm:$0xff] }
 0x370   :  { %7462 = vmatpush1.bf16.msra.mxu1 %v8612_v21  ;;  %v8692_v21 = vcombine.low %v4377_v9, %v4381_v11  ;;  %v4469_v41 = vld [vmem:[%s12475_s5 + $0xa68] sm:$0xff] }
 0x371   :  { %7509 = vmatpush1.bf16.msra.mxu0 %v8716_v18  ;;  %7463 = vmatprep.subr.bf16.mxu1 %v8605_v39  ;;  %v8796_v18 = vcombine.low %v4481_v23, %v4485_v24  ;;  %v8685_v39 = vcombine.high %v4369_v16, %v4373_v19  ;;  %v4353_v2 = vld [vmem:[%s12475_s5 + $0x6c8] sm:$0xff] }
 0x372   :  { %7510 = vmatprep.subr.bf16.mxu0 %v8709_v14  ;;  %v8789_v14 = vcombine.high %v4473_v37, %v4477_v20  ;;  %v4357_v34 = vld [vmem:[%s12475_s5 + $0x6e8] sm:$0xff] }
 0x373   :  { %v4457_v35 = vld [vmem:[%s12475_s5 + $0xa08] sm:$0xff] }
 0x374   :  { %7464 = vmatpush1.bf16.msra.mxu1 %v8604_v5  ;;  %v8684_v5 = vcombine.low %v4369_v16, %v4373_v19  ;;  %v4461_v36 = vld [vmem:[%s12475_s5 + $0xa28] sm:$0xff] }
 0x375   :  { %7511 = vmatpush1.bf16.msra.mxu0 %v8708_v62  ;;  %7465 = vmatprep.subr.bf16.mxu1 %v8597_v31  ;;  %v8788_v62 = vcombine.low %v4473_v37, %v4477_v20  ;;  %v8677_v31 = vcombine.high %v4361_v25, %v4365_v13  ;;  %v4345_v52 = vld [vmem:[%s12475_s5 + $0x688] sm:$0xff] }
 0x376   :  { %7512 = vmatprep.subr.bf16.mxu0 %v8829_v42  ;;  %v8781_v42 = vcombine.high %v4465_v27, %v4469_v41  ;;  %v4349_v54 = vld [vmem:[%s12475_s5 + $0x6a8] sm:$0xff] }
 0x377   :  { %v4337_v59 = vld [vmem:[%s12475_s5 + $0x648] sm:$0xff] }
 0x378   :  { %7466 = vmatpush1.bf16.msra.mxu1 %v8596_v38  ;;  %v8676_v38 = vcombine.low %v4361_v25, %v4365_v13  ;;  %v4341_v3 = vld [vmem:[%s12475_s5 + $0x668] sm:$0xff] }
 0x379   :  { %7513 = vmatpush2.bf16.msra.mxu0 %v8828_v40  ;;  %7467 = vmatprep.subr.bf16.mxu1 %v8589_v51  ;;  %v8780_v40 = vcombine.low %v4465_v27, %v4469_v41  ;;  %v8669_v51 = vcombine.high %v4353_v2, %v4357_v34  ;;  %v8653_v11 = vcombine.high %v4337_v59, %v4341_v3  ;;  %v4329_v24 = vld [vmem:[%s12475_s5 + $0x608] sm:$0xff]  ;;  %v4170_v41 = vld [vmem:[%s12475_s5 + $0x110] sm:$0xff] }
 0x37a   :  { %7514 = vmatprep.subr.bf16.mxu0 %v8821_v45  ;;  %v8773_v45 = vcombine.high %v4457_v35, %v4461_v36  ;;  %v8652_v16 = vcombine.low %v4337_v59, %v4341_v3  ;;  %v4577_v25 = vld [vmem:[%s12475_s5 + $0xdc8] sm:$0xff] }
 0x37b   :  { %v4581_v13 = vld [vmem:[%s12475_s5 + $0xde8] sm:$0xff] }
 0x37c   :  { %7468 = vmatpush1.bf16.msra.mxu1 %v8588_v17  ;;  %v8668_v17 = vcombine.low %v4353_v2, %v4357_v34 }
 0x37d   :  { %7515 = vmatpush2.bf16.msra.mxu0 %v8820_v29  ;;  %7469 = vmatprep.subr.bf16.mxu1 %v8581_v63  ;;  %v8772_v29 = vcombine.low %v4457_v35, %v4461_v36  ;;  %v8661_v63 = vcombine.high %v4345_v52, %v4349_v54  ;;  %v8893_v35 = vcombine.high %v4577_v25, %v4581_v13 }
 0x37e   :  { %7516 = vmatprep.subr.bf16.mxu0 %v8813_v7  ;;  %v4648_v7 = vld [vmem:[%s12476_s6] sm:$0xff] }
 0x37f   :  { %v4657_v9 = vrot.slane %v4648_v7, %v9296_v47 }
 0x380   :  { %7470 = vmatpush1.bf16.msra.mxu1 %v8580_v49  ;;  %v4190_v49 = vld [vmem:[%s12475_s5 + $0x1b0] sm:$0xff] }
 0x381   :  { %7517 = vmatpush2.bf16.msra.mxu0 %v8812_v6  ;;  %7471 = vmatprep.subr.bf16.mxu1 %v8701_v4  ;;  %v8660_v6 = vcombine.low %v4345_v52, %v4349_v54  ;;  %v4653_v4 = vrot.slane %v4648_v7, %v9285_v44  ;;  %v8503_v23 = vcombine.high %v4186_v10, %v4190_v49  ;;  %v4178_v44 = vld [vmem:[%s12475_s5 + $0x150] sm:$0xff] }
 0x382   :  { %7518 = vmatprep.subr.bf16.mxu0 %v8805_v53  ;;  %v8510_v53 = vcombine.low %v4194_v56, %v4198_v57  ;;  %v8502_v37 = vcombine.low %v4186_v10, %v4190_v49  ;;  %v4166_v52 = vld [vmem:[%s12475_s5 + $0xf0] sm:$0xff]  ;;  %v8892_v54 = vcombine.low %v4577_v25, %v4581_v13 }
 0x383   :  { %v4154_v7 = vld [vmem:[%s12475_s5 + $0x90] sm:$0xff] }
 0x384   :  { %7472 = vmatpush2.bf16.msra.mxu1 %v8700_v26  ;;  %v4333_v26 = vld [vmem:[%s12475_s5 + $0x628] sm:$0xff] }
 0x385   :  { %7519 = vmatpush2.bf16.msra.mxu0 %v8804_v22  ;;  %7473 = vmatprep.subr.bf16.mxu1 %v8693_v8  ;;  %v4182_v8 = vld [vmem:[%s12475_s5 + $0x170] sm:$0xff]  ;;  %v8645_v20 = vcombine.high %v4329_v24, %v4333_v26 }
 0x386   :  { %7520 = vmatprep.subr.bf16.mxu0 %v8797_v12  ;;  %v8494_v34 = vcombine.low %v4178_v44, %v4182_v8 }
 0x388   :  { %7474 = vmatpush2.bf16.msra.mxu1 %v8692_v21 }
 0x389   :  { %7521 = vmatpush2.bf16.msra.mxu0 %v8796_v18  ;;  %7475 = vmatprep.subr.bf16.mxu1 %v8685_v39 }
 0x38a   :  { %7522 = vmatprep.subr.bf16.mxu0 %v8789_v14  ;;  %v8495_v14 = vcombine.high %v4178_v44, %v4182_v8  ;;  %v4549_v44 = vld [vmem:[%s12475_s5 + $0xce8] sm:$0xff]  ;;  %v4138_v8 = vld [vmem:[%s12475_s5 + $0x10] sm:$0xff] }
 0x38c   :  { %7476 = vmatpush2.bf16.msra.mxu1 %v8684_v5  ;;  %v4174_v5 = vld [vmem:[%s12475_s5 + $0x130] sm:$0xff] }
 0x38d   :  { %7523 = vmatpush2.bf16.msra.mxu0 %v8788_v62  ;;  %7477 = vmatprep.subr.bf16.mxu1 %v8677_v31  ;;  %v8486_v56 = vcombine.low %v4170_v41, %v4174_v5 }
 0x38e   :  { %7524 = vmatprep.subr.bf16.mxu0 %v8781_v42  ;;  %v8644_v42 = vcombine.low %v4329_v24, %v4333_v26 }
 0x390   :  { %7478 = vmatpush2.bf16.msra.mxu1 %v8676_v38  ;;  %v8487_v38 = vcombine.high %v4170_v41, %v4174_v5  ;;  %v4529_v5 = vld [vmem:[%s12475_s5 + $0xc48] sm:$0xff] }
 0x391   :  { %7525 = vmatpush2.bf16.msra.mxu0 %v8780_v40  ;;  %7479 = vmatprep.subr.bf16.mxu1 %v8669_v51  ;;  %v4569_v40 = vld [vmem:[%s12475_s5 + $0xd88] sm:$0xff] }
 0x392   :  { %7526 = vmatprep.subr.bf16.mxu0 %v8773_v45  ;;  %v4573_v51 = vld [vmem:[%s12475_s5 + $0xda8] sm:$0xff]  ;;  %v4162_v45 = vld [vmem:[%s12475_s5 + $0xd0] sm:$0xff] }
 0x393   :  { %v8885_v57 = vcombine.high %v4569_v40, %v4573_v51  ;;  %v8884_v59 = vcombine.low %v4569_v40, %v4573_v51  ;;  %v8478_v3 = vcombine.low %v4162_v45, %v4166_v52  ;;  %v4521_v40 = vld [vmem:[%s12475_s5 + $0xc08] sm:$0xff] }
 0x394   :  { %7480 = vmatpush2.bf16.msra.mxu1 %v8668_v17  ;;  %v8479_v17 = vcombine.high %v4162_v45, %v4166_v52  ;;  %v4525_v51 = vld [vmem:[%s12475_s5 + $0xc28] sm:$0xff]  ;;  %v4242_v45 = vld [vmem:[%s12475_s5 + $0x350] sm:$0xff] }
 0x395   :  { %7527 = vmatpush2.bf16.msra.mxu0 %v8772_v29  ;;  %7481 = vmatprep.subr.bf16.mxu1 %v8661_v63  ;;  %v4561_v29 = vld [vmem:[%s12475_s5 + $0xd48] sm:$0xff]  ;;  %v4246_v52 = vld [vmem:[%s12475_s5 + $0x370] sm:$0xff] }
 0x396   :  { %7578 = vmatprep.subr.bf16.mxu0 %v8511_v0  ;;  %v4565_v63 = vld [vmem:[%s12475_s5 + $0xd68] sm:$0xff]  ;;  %v4158_v0 = vld [vmem:[%s12475_s5 + $0xb0] sm:$0xff] }
 0x397   :  { %v7284_v22 = vpop.f32.mrf.mxu0  ;;  %v8877_v10 = vcombine.high %v4561_v29, %v4565_v63  ;;  %v8471_v49 = vcombine.high %v4154_v7, %v4158_v0 }
 0x398   :  { %v7285_v47 = vadd.f32 %v7284_v22, %v4653_v4  ;;  %v7325_v12 = vpop.f32.mrf.mxu1  ;;  %7482 = vmatpush2.bf16.msra.mxu1 %v8660_v6  ;;  %7529 = vmatmul.mubr.bf16.vlgmr.msra.gmra.mxu0 %v11204_v32  ;;  %v4553_v6 = vld [vmem:[%s12475_s5 + $0xd08] sm:$0xff] }
 0x399   :  { %7579 = vmatpush1.bf16.msra.mxu0 %v8510_v53  ;;  %7610 = vmatprep.mubr.bf16.mxu0 %v10788_v50  ;;  %v7286_v19 = vpop.f32.mrf.mxu0  ;;  %v4557_v4 = vld [vmem:[%s12475_s5 + $0xd28] sm:$0xff]  ;;  %v4146_v53 = vld [vmem:[%s12475_s5 + $0x50] sm:$0xff] }
 0x39a   :  { %v11532_v21 = vadd.f32 %v7325_v12, %v7285_v47  ;;  %v7287_v18 = vadd.f32 %v7286_v19, %v4657_v9  ;;  %v7327_v39 = vpop.f32.mrf.mxu1  ;;  %7483 = vmatprep.subr.bf16.mxu1 %v8653_v11  ;;  %7580 = vmatprep.subr.bf16.mxu0 %v8503_v23  ;;  %v4150_v9 = vld [vmem:[%s12475_s5 + $0x70] sm:$0xff]  ;;  %v8876_v11 = vcombine.low %v4561_v29, %v4565_v63  ;;  %v4545_v22 = vld [vmem:[%s12475_s5 + $0xcc8] sm:$0xff] }
 0x39b   :  { %v7288_v27 = vpop.f32.mrf.mxu0  ;;  %v8470_v23 = vcombine.low %v4154_v7, %v4158_v0  ;;  %v8869_v24 = vcombine.high %v4553_v6, %v4557_v4  ;;  %v8463_v26 = vcombine.high %v4146_v53, %v4150_v9  ;;  %v4142_v47 = vld [vmem:[%s12475_s5 + $0x30] sm:$0xff]  ;;  %v8868_v12 = vcombine.low %v4553_v6, %v4557_v4  ;;  %v4641_v29 = vld [vmem:[%s12475_s5 + $0xfc8] sm:$0xff] }
 0x39c   :  { %v11546_v62 = vadd.f32 %v7327_v39, %v7287_v18  ;;  %v7329_v31 = vpop.f32.mrf.mxu1  ;;  %7484 = vmatpush2.bf16.msra.mxu1 %v8652_v16  ;;  %v8462_v16 = vcombine.low %v4146_v53, %v4150_v9  ;;  %v8861_v19 = vcombine.high %v4545_v22, %v4549_v44  ;;  %v4541_v18 = vld [vmem:[%s12475_s5 + $0xca8] sm:$0xff]  ;;  %v4258_v39 = vld [vmem:[%s12475_s5 + $0x3d0] sm:$0xff]  ;;  %v8860_v25 = vcombine.low %v4545_v22, %v4549_v44 }
 0x39d   :  { %7581 = vmatpush1.bf16.msra.mxu0 %v8502_v37  ;;  %v7289_v2 = vpop.f32.mrf.mxu0  ;;  %7485 = vmatprep.subr.bf16.mxu1 %v8645_v20  ;;  %v8455_v37 = vcombine.high %v4138_v8, %v4142_v47  ;;  %v4537_v20 = vld [vmem:[%s12475_s5 + $0xc88] sm:$0xff]  ;;  %v8454_v13 = vcombine.low %v4138_v8, %v4142_v47  ;;  %v4234_v7 = vld [vmem:[%s12475_s5 + $0x310] sm:$0xff] }
 0x39e   :  { %v7330_v36 = vpop.f32.mrf.mxu1  ;;  %7582 = vmatprep.subr.bf16.mxu0 %v8495_v14  ;;  %v4262_v14 = vld [vmem:[%s12475_s5 + $0x3f0] sm:$0xff]  ;;  %v8853_v27 = vcombine.high %v4537_v20, %v4541_v18  ;;  %v4533_v31 = vld [vmem:[%s12475_s5 + $0xc68] sm:$0xff] }
 0x39f   :  { %v8575_v41 = vcombine.high %v4258_v39, %v4262_v14  ;;  %v4254_v2 = vld [vmem:[%s12475_s5 + $0x3b0] sm:$0xff]  ;;  %v8845_v36 = vcombine.high %v4529_v5, %v4533_v31  ;;  %v4645_v63 = vld [vmem:[%s12475_s5 + $0xfe8] sm:$0xff] }
 0x3a0   :  { %7486 = vmatpush2.bf16.msra.mxu1 %v8644_v42  ;;  %v4250_v42 = vld [vmem:[%s12475_s5 + $0x390] sm:$0xff]  ;;  %v4633_v6 = vld [vmem:[%s12475_s5 + $0xf88] sm:$0xff] }
 0x3a1   :  { %7583 = vmatpush1.bf16.msra.mxu0 %v8494_v34  ;;  %7537 = vmatprep.subr.bf16.mxu1 %v8893_v35  ;;  %v8852_v34 = vcombine.low %v4537_v20, %v4541_v18  ;;  %v8574_v35 = vcombine.low %v4258_v39, %v4262_v14  ;;  %v4238_v0 = vld [vmem:[%s12475_s5 + $0x330] sm:$0xff]  ;;  %v4637_v4 = vld [vmem:[%s12475_s5 + $0xfa8] sm:$0xff] }
 0x3a2   :  { %7584 = vmatprep.subr.bf16.mxu0 %v8487_v38  ;;  %v8567_v38 = vcombine.high %v4250_v42, %v4254_v2  ;;  %v4226_v53 = vld [vmem:[%s12475_s5 + $0x2d0] sm:$0xff]  ;;  %v4625_v22 = vld [vmem:[%s12475_s5 + $0xf48] sm:$0xff] }
 0x3a3   :  { %7488 = vmatmul.mubr.bf16.vlgmr.msra.gmra.mxu1 %v10995_v43  ;;  %v4230_v9 = vld [vmem:[%s12475_s5 + $0x2f0] sm:$0xff]  ;;  %v4629_v44 = vld [vmem:[%s12475_s5 + $0xf68] sm:$0xff] }
 0x3a4   :  { %7538 = vmatpush1.bf16.msra.mxu1 %v8892_v54  ;;  %7569 = vmatprep.mubr.bf16.mxu1 %v11347_v58  ;;  %v8844_v54 = vcombine.low %v4529_v5, %v4533_v31  ;;  %v4218_v8 = vld [vmem:[%s12475_s5 + $0x290] sm:$0xff]  ;;  %v4617_v20 = vld [vmem:[%s12475_s5 + $0xf08] sm:$0xff] }
 0x3a5   :  { %7585 = vmatpush1.bf16.msra.mxu0 %v8486_v56  ;;  %7539 = vmatprep.subr.bf16.mxu1 %v8885_v57  ;;  %v8566_v56 = vcombine.low %v4250_v42, %v4254_v2  ;;  %v8837_v57 = vcombine.high %v4521_v40, %v4525_v51  ;;  %v4222_v47 = vld [vmem:[%s12475_s5 + $0x2b0] sm:$0xff]  ;;  %v4621_v18 = vld [vmem:[%s12475_s5 + $0xf28] sm:$0xff] }
 0x3a6   :  { %7586 = vmatprep.subr.bf16.mxu0 %v8479_v17  ;;  %v8559_v17 = vcombine.high %v4242_v45, %v4246_v52  ;;  %v4210_v39 = vld [vmem:[%s12475_s5 + $0x250] sm:$0xff]  ;;  %v4609_v5 = vld [vmem:[%s12475_s5 + $0xec8] sm:$0xff] }
 0x3a7   :  { %v4214_v14 = vld [vmem:[%s12475_s5 + $0x270] sm:$0xff]  ;;  %v4613_v31 = vld [vmem:[%s12475_s5 + $0xee8] sm:$0xff] }
 0x3a8   :  { %7540 = vmatpush1.bf16.msra.mxu1 %v8884_v59  ;;  %v8836_v59 = vcombine.low %v4521_v40, %v4525_v51  ;;  %v4202_v42 = vld [vmem:[%s12475_s5 + $0x210] sm:$0xff]  ;;  %v4601_v40 = vld [vmem:[%s12475_s5 + $0xe88] sm:$0xff] }
 0x3a9   :  { %7587 = vmatpush1.bf16.msra.mxu0 %v8478_v3  ;;  %7541 = vmatprep.subr.bf16.mxu1 %v8877_v10  ;;  %v8558_v3 = vcombine.low %v4242_v45, %v4246_v52  ;;  %v8957_v10 = vcombine.high %v4641_v29, %v4645_v63  ;;  %v4206_v2 = vld [vmem:[%s12475_s5 + $0x230] sm:$0xff]  ;;  %v4605_v51 = vld [vmem:[%s12475_s5 + $0xea8] sm:$0xff] }
 0x3aa   :  { %7588 = vmatprep.subr.bf16.mxu0 %v8471_v49  ;;  %v8551_v49 = vcombine.high %v4234_v7, %v4238_v0  ;;  %v4450_v45 = vld [vmem:[%s12475_s5 + $0x9d0] sm:$0xff] }
 0x3ab   :  { %v4454_v52 = vld [vmem:[%s12475_s5 + $0x9f0] sm:$0xff] }
 0x3ac   :  { %7542 = vmatpush1.bf16.msra.mxu1 %v8876_v11  ;;  %v8956_v11 = vcombine.low %v4641_v29, %v4645_v63  ;;  %v4593_v29 = vld [vmem:[%s12475_s5 + $0xe48] sm:$0xff] }
 0x3ad   :  { %7589 = vmatpush1.bf16.msra.mxu0 %v8470_v23  ;;  %7543 = vmatprep.subr.bf16.mxu1 %v8869_v24  ;;  %v8550_v23 = vcombine.low %v4234_v7, %v4238_v0  ;;  %v8949_v24 = vcombine.high %v4633_v6, %v4637_v4  ;;  %v4597_v63 = vld [vmem:[%s12475_s5 + $0xe68] sm:$0xff]  ;;  %v4442_v7 = vld [vmem:[%s12475_s5 + $0x990] sm:$0xff] }
 0x3ae   :  { %7590 = vmatprep.subr.bf16.mxu0 %v8463_v26  ;;  %v8543_v26 = vcombine.high %v4226_v53, %v4230_v9  ;;  %v4446_v0 = vld [vmem:[%s12475_s5 + $0x9b0] sm:$0xff] }
 0x3b0   :  { %7544 = vmatpush1.bf16.msra.mxu1 %v8868_v12  ;;  %v8948_v12 = vcombine.low %v4633_v6, %v4637_v4  ;;  %v4585_v6 = vld [vmem:[%s12475_s5 + $0xe08] sm:$0xff] }
 0x3b1   :  { %7591 = vmatpush1.bf16.msra.mxu0 %v8462_v16  ;;  %7545 = vmatprep.subr.bf16.mxu1 %v8861_v19  ;;  %v8542_v16 = vcombine.low %v4226_v53, %v4230_v9  ;;  %v8941_v19 = vcombine.high %v4625_v22, %v4629_v44  ;;  %v4589_v4 = vld [vmem:[%s12475_s5 + $0xe28] sm:$0xff]  ;;  %v4434_v9 = vld [vmem:[%s12475_s5 + $0x950] sm:$0xff] }
 0x3b2   :  { %7592 = vmatprep.subr.bf16.mxu0 %v8455_v37  ;;  %v8535_v37 = vcombine.high %v4218_v8, %v4222_v47 }
 0x3b4   :  { %7546 = vmatpush1.bf16.msra.mxu1 %v8860_v25  ;;  %v8940_v25 = vcombine.low %v4625_v22, %v4629_v44  ;;  %v8758_v22 = vcombine.low %v4442_v7, %v4446_v0  ;;  %v8901_v44 = vcombine.high %v4585_v6, %v4589_v4 }
 0x3b5   :  { %7593 = vmatpush1.bf16.msra.mxu0 %v8454_v13  ;;  %7547 = vmatprep.subr.bf16.mxu1 %v8853_v27  ;;  %v8534_v13 = vcombine.low %v4218_v8, %v4222_v47  ;;  %v8933_v27 = vcombine.high %v4617_v20, %v4621_v18 }
 0x3b6   :  { %7594 = vmatprep.subr.bf16.mxu0 %v8575_v41  ;;  %v8527_v41 = vcombine.high %v4210_v39, %v4214_v14 }
 0x3b8   :  { %7548 = vmatpush1.bf16.msra.mxu1 %v8852_v34  ;;  %v8932_v34 = vcombine.low %v4617_v20, %v4621_v18 }
 0x3b9   :  { %7595 = vmatpush2.bf16.msra.mxu0 %v8574_v35  ;;  %7549 = vmatprep.subr.bf16.mxu1 %v8845_v36  ;;  %v8526_v35 = vcombine.low %v4210_v39, %v4214_v14  ;;  %v8925_v36 = vcombine.high %v4609_v5, %v4613_v31 }
 0x3ba   :  { %7596 = vmatprep.subr.bf16.mxu0 %v8567_v38  ;;  %v8519_v38 = vcombine.high %v4202_v42, %v4206_v2 }
 0x3bc   :  { %7550 = vmatpush1.bf16.msra.mxu1 %v8844_v54  ;;  %v8924_v54 = vcombine.low %v4609_v5, %v4613_v31 }
 0x3bd   :  { %7597 = vmatpush2.bf16.msra.mxu0 %v8566_v56  ;;  %7551 = vmatprep.subr.bf16.mxu1 %v8837_v57  ;;  %v8518_v56 = vcombine.low %v4202_v42, %v4206_v2  ;;  %v8917_v57 = vcombine.high %v4601_v40, %v4605_v51 }
 0x3be   :  { %7598 = vmatprep.subr.bf16.mxu0 %v8559_v17  ;;  %v8767_v17 = vcombine.high %v4450_v45, %v4454_v52 }
 0x3c0   :  { %7552 = vmatpush1.bf16.msra.mxu1 %v8836_v59  ;;  %v8916_v59 = vcombine.low %v4601_v40, %v4605_v51 }
 0x3c1   :  { %7599 = vmatpush2.bf16.msra.mxu0 %v8558_v3  ;;  %7553 = vmatprep.subr.bf16.mxu1 %v8957_v10  ;;  %v8766_v3 = vcombine.low %v4450_v45, %v4454_v52  ;;  %v8909_v10 = vcombine.high %v4593_v29, %v4597_v63 }
 0x3c2   :  { %7600 = vmatprep.subr.bf16.mxu0 %v8551_v49  ;;  %v8759_v49 = vcombine.high %v4442_v7, %v4446_v0 }
 0x3c4   :  { %7554 = vmatpush2.bf16.msra.mxu1 %v8956_v11  ;;  %v4438_v11 = vld [vmem:[%s12475_s5 + $0x970] sm:$0xff] }
 0x3c5   :  { %7601 = vmatpush2.bf16.msra.mxu0 %v8550_v23  ;;  %7555 = vmatprep.subr.bf16.mxu1 %v8949_v24  ;;  %v8908_v24 = vcombine.low %v4593_v29, %v4597_v63  ;;  %v8751_v47 = vcombine.high %v4434_v9, %v4438_v11  ;;  %v8750_v18 = vcombine.low %v4434_v9, %v4438_v11  ;;  %v4282_v11 = vld [vmem:[%s12475_s5 + $0x490] sm:$0xff] }
 0x3c6   :  { %7602 = vmatprep.subr.bf16.mxu0 %v8543_v26 }
 0x3c8   :  { %7556 = vmatpush2.bf16.msra.mxu1 %v8948_v12  ;;  %v4326_v12 = vld [vmem:[%s12475_s5 + $0x5f0] sm:$0xff] }
 0x3c9   :  { %7603 = vmatpush2.bf16.msra.mxu0 %v8542_v16  ;;  %7557 = vmatprep.subr.bf16.mxu1 %v8941_v19  ;;  %v4426_v19 = vld [vmem:[%s12475_s5 + $0x910] sm:$0xff] }
 0x3ca   :  { %7604 = vmatprep.subr.bf16.mxu0 %v8535_v37  ;;  %v8900_v37 = vcombine.low %v4585_v6, %v4589_v4 }
 0x3cc   :  { %7558 = vmatpush2.bf16.msra.mxu1 %v8940_v25  ;;  %v4314_v25 = vld [vmem:[%s12475_s5 + $0x590] sm:$0xff] }
 0x3cd   :  { %7605 = vmatpush2.bf16.msra.mxu0 %v8534_v13  ;;  %7559 = vmatprep.subr.bf16.mxu1 %v8933_v27  ;;  %v4318_v13 = vld [vmem:[%s12475_s5 + $0x5b0] sm:$0xff] }
 0x3ce   :  { %7606 = vmatprep.subr.bf16.mxu0 %v8527_v41  ;;  %v4418_v27 = vld [vmem:[%s12475_s5 + $0x8d0] sm:$0xff]  ;;  %v8631_v42 = vcombine.high %v4314_v25, %v4318_v13  ;;  %v8630_v40 = vcombine.low %v4314_v25, %v4318_v13 }
 0x3cf   :  { %v4422_v41 = vld [vmem:[%s12475_s5 + $0x8f0] sm:$0xff] }
 0x3d0   :  { %7560 = vmatpush2.bf16.msra.mxu1 %v8932_v34  ;;  %v8735_v2 = vcombine.high %v4418_v27, %v4422_v41  ;;  %v4306_v34 = vld [vmem:[%s12475_s5 + $0x550] sm:$0xff]  ;;  %v8734_v51 = vcombine.low %v4418_v27, %v4422_v41 }
 0x3d1   :  { %7607 = vmatpush2.bf16.msra.mxu0 %v8526_v35  ;;  %7561 = vmatprep.subr.bf16.mxu1 %v8925_v36  ;;  %v4310_v35 = vld [vmem:[%s12475_s5 + $0x570] sm:$0xff] }
 0x3d2   :  { %7608 = vmatprep.subr.bf16.mxu0 %v8519_v38  ;;  %v4410_v36 = vld [vmem:[%s12475_s5 + $0x890] sm:$0xff]  ;;  %v8623_v45 = vcombine.high %v4306_v34, %v4310_v35  ;;  %v8622_v29 = vcombine.low %v4306_v34, %v4310_v35 }
 0x3d3   :  { %v4414_v38 = vld [vmem:[%s12475_s5 + $0x8b0] sm:$0xff] }
 0x3d4   :  { %7562 = vmatpush2.bf16.msra.mxu1 %v8924_v54  ;;  %v8727_v52 = vcombine.high %v4410_v36, %v4414_v38  ;;  %v4298_v54 = vld [vmem:[%s12475_s5 + $0x510] sm:$0xff]  ;;  %v8726_v63 = vcombine.low %v4410_v36, %v4414_v38 }
 0x3d5   :  { %7609 = vmatpush2.bf16.msra.mxu0 %v8518_v56  ;;  %7563 = vmatprep.subr.bf16.mxu1 %v8917_v57  ;;  %v4302_v56 = vld [vmem:[%s12475_s5 + $0x530] sm:$0xff] }
 0x3d6   :  { %7660 = vmatprep.subr.bf16.mxu0 %v8767_v17  ;;  %v4402_v57 = vld [vmem:[%s12475_s5 + $0x850] sm:$0xff]  ;;  %v8615_v7 = vcombine.high %v4298_v54, %v4302_v56  ;;  %v8614_v6 = vcombine.low %v4298_v54, %v4302_v56 }
 0x3d7   :  { %v7366_v53 = vpop.f32.mrf.mxu0  ;;  %v4406_v17 = vld [vmem:[%s12475_s5 + $0x870] sm:$0xff] }
 0x3d8   :  { %v11731_v23 = vadd.f32 %v7366_v53, %v11532_v21  ;;  %7564 = vmatpush2.bf16.msra.mxu1 %v8916_v59  ;;  %7611 = vmatmul.mubr.bf16.vlgmr.msra.gmra.mxu0 %v10993_v33  ;;  %v4322_v21 = vld [vmem:[%s12475_s5 + $0x5d0] sm:$0xff]  ;;  %v8719_v0 = vcombine.high %v4402_v57, %v4406_v17  ;;  %v8718_v4 = vcombine.low %v4402_v57, %v4406_v17 }
 0x3d9   :  { %7661 = vmatpush1.bf16.msra.mxu0 %v8766_v3  ;;  %7692 = vmatprep.mubr.bf16.mxu0 %v11040_v15  ;;  %v7368_v26 = vpop.f32.mrf.mxu0  ;;  %v8639_v39 = vcombine.high %v4322_v21, %v4326_v12  ;;  %v8638_v5 = vcombine.low %v4322_v21, %v4326_v12  ;;  %v4290_v59 = vld [vmem:[%s12475_s5 + $0x4d0] sm:$0xff] }
 0x3da   :  { %v11736_v8 = vadd.f32 %v7368_v26, %v11546_v62  ;;  %7565 = vmatprep.subr.bf16.mxu1 %v8909_v10  ;;  %7662 = vmatprep.subr.bf16.mxu0 %v8759_v49  ;;  %v4430_v62 = vld [vmem:[%s12475_s5 + $0x930] sm:$0xff] }
 0x3db   :  { %v7370_v16 = vpop.f32.mrf.mxu0  ;;  %v8743_v14 = vcombine.high %v4426_v19, %v4430_v62  ;;  %v8742_v31 = vcombine.low %v4426_v19, %v4430_v62  ;;  %v4294_v3 = vld [vmem:[%s12475_s5 + $0x4f0] sm:$0xff] }
 0x3dc   :  { %7566 = vmatpush2.bf16.msra.mxu1 %v8908_v24  ;;  %v4394_v10 = vld [vmem:[%s12475_s5 + $0x810] sm:$0xff]  ;;  %v8607_v53 = vcombine.high %v4290_v59, %v4294_v3 }
 0x3dd   :  { %7663 = vmatpush1.bf16.msra.mxu0 %v8758_v22  ;;  %v7371_v20 = vpop.f32.mrf.mxu0  ;;  %7567 = vmatprep.subr.bf16.mxu1 %v8901_v44  ;;  %v4398_v49 = vld [vmem:[%s12475_s5 + $0x830] sm:$0xff]  ;;  %v8606_v44 = vcombine.low %v4290_v59, %v4294_v3 }
 0x3de   :  { %7664 = vmatprep.subr.bf16.mxu0 %v8751_v47  ;;  %v8711_v9 = vcombine.high %v4394_v10, %v4398_v49  ;;  %v4286_v24 = vld [vmem:[%s12475_s5 + $0x4b0] sm:$0xff]  ;;  %v8710_v47 = vcombine.low %v4394_v10, %v4398_v49 }
 0x3df   :  { %v4514_v26 = vld [vmem:[%s12475_s5 + $0xbd0] sm:$0xff]  ;;  %v8599_v21 = vcombine.high %v4282_v11, %v4286_v24  ;;  %v8598_v20 = vcombine.low %v4282_v11, %v4286_v24 }
 0x3e0   :  { %7568 = vmatpush2.bf16.msra.mxu1 %v8900_v37  ;;  %v4518_v22 = vld [vmem:[%s12475_s5 + $0xbf0] sm:$0xff] }
 0x3e1   :  { %7665 = vmatpush1.bf16.msra.mxu0 %v8750_v18  ;;  %7619 = vmatprep.subr.bf16.mxu1 %v8639_v39  ;;  %v8831_v12 = vcombine.high %v4514_v26, %v4518_v22  ;;  %v4274_v16 = vld [vmem:[%s12475_s5 + $0x450] sm:$0xff]  ;;  %v8830_v18 = vcombine.low %v4514_v26, %v4518_v22 }
 0x3e2   :  { %7666 = vmatprep.subr.bf16.mxu0 %v8743_v14  ;;  %v4278_v19 = vld [vmem:[%s12475_s5 + $0x470] sm:$0xff] }
 0x3e3   :  { %7570 = vmatmul.mubr.bf16.vlgmr.msra.gmra.mxu1 %v11349_v61  ;;  %v4506_v62 = vld [vmem:[%s12475_s5 + $0xb90] sm:$0xff]  ;;  %v8591_v39 = vcombine.high %v4274_v16, %v4278_v19 }
 0x3e4   :  { %7620 = vmatpush1.bf16.msra.mxu1 %v8638_v5  ;;  %7651 = vmatprep.mubr.bf16.mxu1 %v10797_v55  ;;  %v4510_v37 = vld [vmem:[%s12475_s5 + $0xbb0] sm:$0xff]  ;;  %v8590_v5 = vcombine.low %v4274_v16, %v4278_v19 }
 0x3e5   :  { %7667 = vmatpush1.bf16.msra.mxu0 %v8742_v31  ;;  %7621 = vmatprep.subr.bf16.mxu1 %v8631_v42  ;;  %v8823_v14 = vcombine.high %v4506_v62, %v4510_v37  ;;  %v4266_v25 = vld [vmem:[%s12475_s5 + $0x410] sm:$0xff]  ;;  %v8822_v31 = vcombine.low %v4506_v62, %v4510_v37 }
 0x3e6   :  { %7668 = vmatprep.subr.bf16.mxu0 %v8735_v2  ;;  %v4270_v13 = vld [vmem:[%s12475_s5 + $0x430] sm:$0xff] }
 0x3e7   :  { %v4498_v27 = vld [vmem:[%s12475_s5 + $0xb50] sm:$0xff]  ;;  %v8583_v42 = vcombine.high %v4266_v25, %v4270_v13 }
 0x3e8   :  { %7622 = vmatpush1.bf16.msra.mxu1 %v8630_v40  ;;  %v4502_v41 = vld [vmem:[%s12475_s5 + $0xb70] sm:$0xff]  ;;  %v8582_v40 = vcombine.low %v4266_v25, %v4270_v13 }
 0x3e9   :  { %7669 = vmatpush1.bf16.msra.mxu0 %v8734_v51  ;;  %7623 = vmatprep.subr.bf16.mxu1 %v8623_v45  ;;  %v8815_v2 = vcombine.high %v4498_v27, %v4502_v41  ;;  %v4386_v34 = vld [vmem:[%s12475_s5 + $0x7d0] sm:$0xff]  ;;  %v8814_v51 = vcombine.low %v4498_v27, %v4502_v41  ;;  %v4195_v27 = vld [vmem:[%s12475_s5 + $0x1d8] sm:$0xff] }
 0x3ea   :  { %7670 = vmatprep.subr.bf16.mxu0 %v8727_v52  ;;  %v4390_v35 = vld [vmem:[%s12475_s5 + $0x7f0] sm:$0xff]  ;;  %v4199_v41 = vld [vmem:[%s12475_s5 + $0x1f8] sm:$0xff] }
 0x3eb   :  { %v4490_v36 = vld [vmem:[%s12475_s5 + $0xb10] sm:$0xff]  ;;  %v8703_v45 = vcombine.high %v4386_v34, %v4390_v35 }
 0x3ec   :  { %7624 = vmatpush1.bf16.msra.mxu1 %v8622_v29  ;;  %v4494_v38 = vld [vmem:[%s12475_s5 + $0xb30] sm:$0xff]  ;;  %v8702_v29 = vcombine.low %v4386_v34, %v4390_v35 }
 0x3ed   :  { %7671 = vmatpush1.bf16.msra.mxu0 %v8726_v63  ;;  %7625 = vmatprep.subr.bf16.mxu1 %v8615_v7  ;;  %v8807_v52 = vcombine.high %v4490_v36, %v4494_v38  ;;  %v4378_v54 = vld [vmem:[%s12475_s5 + $0x790] sm:$0xff]  ;;  %v8806_v63 = vcombine.low %v4490_v36, %v4494_v38  ;;  %v4187_v36 = vld [vmem:[%s12475_s5 + $0x198] sm:$0xff] }
 0x3ee   :  { %7672 = vmatprep.subr.bf16.mxu0 %v8719_v0  ;;  %v4382_v56 = vld [vmem:[%s12475_s5 + $0x7b0] sm:$0xff]  ;;  %v4191_v38 = vld [vmem:[%s12475_s5 + $0x1b8] sm:$0xff] }
 0x3ef   :  { %v4482_v57 = vld [vmem:[%s12475_s5 + $0xad0] sm:$0xff]  ;;  %v8695_v7 = vcombine.high %v4378_v54, %v4382_v56 }
 0x3f0   :  { %7626 = vmatpush1.bf16.msra.mxu1 %v8614_v6  ;;  %v4486_v17 = vld [vmem:[%s12475_s5 + $0xaf0] sm:$0xff]  ;;  %v8694_v6 = vcombine.low %v4378_v54, %v4382_v56 }
 0x3f1   :  { %7673 = vmatpush1.bf16.msra.mxu0 %v8718_v4  ;;  %7627 = vmatprep.subr.bf16.mxu1 %v8607_v53  ;;  %v8799_v0 = vcombine.high %v4482_v57, %v4486_v17  ;;  %v4370_v59 = vld [vmem:[%s12475_s5 + $0x750] sm:$0xff]  ;;  %v8798_v4 = vcombine.low %v4482_v57, %v4486_v17  ;;  %v4179_v17 = vld [vmem:[%s12475_s5 + $0x158] sm:$0xff] }
 0x3f2   :  { %7674 = vmatprep.subr.bf16.mxu0 %v8711_v9  ;;  %v4374_v3 = vld [vmem:[%s12475_s5 + $0x770] sm:$0xff] }
 0x3f3   :  { %v4474_v10 = vld [vmem:[%s12475_s5 + $0xa90] sm:$0xff]  ;;  %v8687_v53 = vcombine.high %v4370_v59, %v4374_v3 }
 0x3f4   :  { %7628 = vmatpush1.bf16.msra.mxu1 %v8606_v44  ;;  %v4478_v49 = vld [vmem:[%s12475_s5 + $0xab0] sm:$0xff]  ;;  %v8686_v44 = vcombine.low %v4370_v59, %v4374_v3 }
 0x3f5   :  { %7675 = vmatpush1.bf16.msra.mxu0 %v8710_v47  ;;  %7629 = vmatprep.subr.bf16.mxu1 %v8599_v21  ;;  %v8791_v9 = vcombine.high %v4474_v10, %v4478_v49  ;;  %v4362_v11 = vld [vmem:[%s12475_s5 + $0x710] sm:$0xff]  ;;  %v8790_v47 = vcombine.low %v4474_v10, %v4478_v49 }
 0x3f6   :  { %7676 = vmatprep.subr.bf16.mxu0 %v8831_v12  ;;  %v4366_v24 = vld [vmem:[%s12475_s5 + $0x730] sm:$0xff] }
 0x3f7   :  { %v4466_v26 = vld [vmem:[%s12475_s5 + $0xa50] sm:$0xff]  ;;  %v8679_v21 = vcombine.high %v4362_v11, %v4366_v24 }
 0x3f8   :  { %7630 = vmatpush1.bf16.msra.mxu1 %v8598_v20  ;;  %v4470_v22 = vld [vmem:[%s12475_s5 + $0xa70] sm:$0xff]  ;;  %v8678_v20 = vcombine.low %v4362_v11, %v4366_v24 }
 0x3f9   :  { %7677 = vmatpush2.bf16.msra.mxu0 %v8830_v18  ;;  %7631 = vmatprep.subr.bf16.mxu1 %v8591_v39  ;;  %v8783_v12 = vcombine.high %v4466_v26, %v4470_v22  ;;  %v4354_v16 = vld [vmem:[%s12475_s5 + $0x6d0] sm:$0xff]  ;;  %v8782_v18 = vcombine.low %v4466_v26, %v4470_v22 }
 0x3fa   :  { %7678 = vmatprep.subr.bf16.mxu0 %v8823_v14  ;;  %v4358_v19 = vld [vmem:[%s12475_s5 + $0x6f0] sm:$0xff] }
 0x3fb   :  { %v4458_v62 = vld [vmem:[%s12475_s5 + $0xa10] sm:$0xff]  ;;  %v8671_v39 = vcombine.high %v4354_v16, %v4358_v19 }
 0x3fc   :  { %7632 = vmatpush1.bf16.msra.mxu1 %v8590_v5  ;;  %v4462_v37 = vld [vmem:[%s12475_s5 + $0xa30] sm:$0xff]  ;;  %v8670_v5 = vcombine.low %v4354_v16, %v4358_v19 }
 0x3fd   :  { %7679 = vmatpush2.bf16.msra.mxu0 %v8822_v31  ;;  %7633 = vmatprep.subr.bf16.mxu1 %v8583_v42  ;;  %v8775_v14 = vcombine.high %v4458_v62, %v4462_v37  ;;  %v4346_v25 = vld [vmem:[%s12475_s5 + $0x690] sm:$0xff]  ;;  %v8774_v31 = vcombine.low %v4458_v62, %v4462_v37 }
 0x3fe   :  { %7680 = vmatprep.subr.bf16.mxu0 %v8815_v2  ;;  %v4350_v13 = vld [vmem:[%s12475_s5 + $0x6b0] sm:$0xff]  ;;  %v8513_v2 = vcombine.high %v4195_v27, %v4199_v41 }
 0x3ff   :  { %v8663_v42 = vcombine.high %v4346_v25, %v4350_v13  ;;  %v4338_v34 = vld [vmem:[%s12475_s5 + $0x650] sm:$0xff] }
 0x400   :  { %7634 = vmatpush1.bf16.msra.mxu1 %v8582_v40  ;;  %v4342_v35 = vld [vmem:[%s12475_s5 + $0x670] sm:$0xff]  ;;  %v8662_v40 = vcombine.low %v4346_v25, %v4350_v13 }
 0x401   :  { %7681 = vmatpush2.bf16.msra.mxu0 %v8814_v51  ;;  %7635 = vmatprep.subr.bf16.mxu1 %v8703_v45  ;;  %v8512_v51 = vcombine.low %v4195_v27, %v4199_v41  ;;  %v8655_v45 = vcombine.high %v4338_v34, %v4342_v35  ;;  %v4330_v54 = vld [vmem:[%s12475_s5 + $0x610] sm:$0xff] }
 0x402   :  { %7682 = vmatprep.subr.bf16.mxu0 %v8807_v52  ;;  %v8505_v52 = vcombine.high %v4187_v36, %v4191_v38  ;;  %v4334_v56 = vld [vmem:[%s12475_s5 + $0x630] sm:$0xff] }
 0x403   :  { %v8647_v59 = vcombine.high %v4330_v54, %v4334_v56  ;;  %v4578_v10 = vld [vmem:[%s12475_s5 + $0xdd0] sm:$0xff] }
 0x404   :  { %7636 = vmatpush2.bf16.msra.mxu1 %v8702_v29  ;;  %v4183_v29 = vld [vmem:[%s12475_s5 + $0x178] sm:$0xff]  ;;  %v4582_v49 = vld [vmem:[%s12475_s5 + $0xdf0] sm:$0xff] }
 0x405   :  { %7683 = vmatpush2.bf16.msra.mxu0 %v8806_v63  ;;  %7637 = vmatprep.subr.bf16.mxu1 %v8695_v7  ;;  %v8654_v63 = vcombine.low %v4338_v34, %v4342_v35  ;;  %v8497_v3 = vcombine.high %v4179_v17, %v4183_v29  ;;  %v8496_v11 = vcombine.low %v4179_v17, %v4183_v29  ;;  %v4570_v22 = vld [vmem:[%s12475_s5 + $0xd90] sm:$0xff]  ;;  %v4147_v35 = vld [vmem:[%s12475_s5 + $0x58] sm:$0xff] }
 0x406   :  { %7684 = vmatprep.subr.bf16.mxu0 %v8799_v0  ;;  %v8504_v0 = vcombine.low %v4187_v36, %v4191_v38  ;;  %v8895_v24 = vcombine.high %v4578_v10, %v4582_v49  ;;  %v4562_v37 = vld [vmem:[%s12475_s5 + $0xd50] sm:$0xff]  ;;  %v4151_v36 = vld [vmem:[%s12475_s5 + $0x78] sm:$0xff] }
 0x407   :  { %v4143_v17 = vld [vmem:[%s12475_s5 + $0x38] sm:$0xff] }
 0x408   :  { %7638 = vmatpush2.bf16.msra.mxu1 %v8694_v6 }
 0x409   :  { %7685 = vmatpush2.bf16.msra.mxu0 %v8798_v4  ;;  %7639 = vmatprep.subr.bf16.mxu1 %v8687_v53  ;;  %v4175_v4 = vld [vmem:[%s12475_s5 + $0x138] sm:$0xff]  ;;  %v8646_v53 = vcombine.low %v4330_v54, %v4334_v56  ;;  %v4550_v54 = vld [vmem:[%s12475_s5 + $0xcf0] sm:$0xff] }
 0x40a   :  { %7686 = vmatprep.subr.bf16.mxu0 %v8791_v9  ;;  %v4139_v56 = vld [vmem:[%s12475_s5 + $0x18] sm:$0xff] }
 0x40c   :  { %7640 = vmatpush2.bf16.msra.mxu1 %v8686_v44  ;;  %v4574_v44 = vld [vmem:[%s12475_s5 + $0xdb0] sm:$0xff] }
 0x40d   :  { %7687 = vmatpush2.bf16.msra.mxu0 %v8790_v47  ;;  %7641 = vmatprep.subr.bf16.mxu1 %v8679_v21  ;;  %v4163_v47 = vld [vmem:[%s12475_s5 + $0xd8] sm:$0xff]  ;;  %v8887_v19 = vcombine.high %v4570_v22, %v4574_v44  ;;  %v8886_v13 = vcombine.low %v4570_v22, %v4574_v44 }
 0x40e   :  { %7688 = vmatprep.subr.bf16.mxu0 %v8783_v12  ;;  %v4167_v21 = vld [vmem:[%s12475_s5 + $0xf8] sm:$0xff]  ;;  %v8894_v12 = vcombine.low %v4578_v10, %v4582_v49  ;;  %v4542_v10 = vld [vmem:[%s12475_s5 + $0xcb0] sm:$0xff] }
 0x40f   :  { %v8481_v62 = vcombine.high %v4163_v47, %v4167_v21  ;;  %v8480_v41 = vcombine.low %v4163_v47, %v4167_v21  ;;  %v4259_v49 = vld [vmem:[%s12475_s5 + $0x3d8] sm:$0xff] }
 0x410   :  { %7642 = vmatpush2.bf16.msra.mxu1 %v8678_v20  ;;  %v4566_v20 = vld [vmem:[%s12475_s5 + $0xd70] sm:$0xff]  ;;  %v4255_v22 = vld [vmem:[%s12475_s5 + $0x3b8] sm:$0xff] }
 0x411   :  { %7689 = vmatpush2.bf16.msra.mxu0 %v8782_v18  ;;  %7643 = vmatprep.subr.bf16.mxu1 %v8671_v39  ;;  %v4155_v39 = vld [vmem:[%s12475_s5 + $0x98] sm:$0xff] }
 0x412   :  { %7690 = vmatprep.subr.bf16.mxu0 %v8775_v14  ;;  %v4159_v14 = vld [vmem:[%s12475_s5 + $0xb8] sm:$0xff] }
 0x414   :  { %7644 = vmatpush2.bf16.msra.mxu1 %v8670_v5  ;;  %v8879_v5 = vcombine.high %v4562_v37, %v4566_v20 }
 0x415   :  { %7691 = vmatpush2.bf16.msra.mxu0 %v8774_v31  ;;  %7645 = vmatprep.subr.bf16.mxu1 %v8663_v42  ;;  %v8473_v42 = vcombine.high %v4155_v39, %v4159_v14 }
 0x416   :  { %7742 = vmatprep.subr.bf16.mxu0 %v8513_v2  ;;  %v4558_v2 = vld [vmem:[%s12475_s5 + $0xd30] sm:$0xff] }
 0x417   :  { %v11926_v57 = vpop.f32.mrf.mxu0 }
 0x418   :  { %7646 = vmatpush2.bf16.msra.mxu1 %v8662_v40  ;;  %7693 = vmatmul.mubr.bf16.vlgmr.msra.gmra.mxu0 %v11204_v32  ;;  %v8472_v40 = vcombine.low %v4155_v39, %v4159_v14 }
 0x419   :  { %7743 = vmatpush1.bf16.msra.mxu0 %v8512_v51  ;;  %7774 = vmatprep.mubr.bf16.mxu0 %v10788_v50  ;;  %v11936_v7 = vpop.f32.mrf.mxu0  ;;  %v4171_v50 = vld [vmem:[%s12475_s5 + $0x118] sm:$0xff] }
 0x41a   :  { %7647 = vmatprep.subr.bf16.mxu1 %v8655_v45  ;;  %7744 = vmatprep.subr.bf16.mxu0 %v8505_v52  ;;  %v8489_v26 = vcombine.high %v4171_v50, %v4175_v4  ;;  %v8488_v16 = vcombine.low %v4171_v50, %v4175_v4  ;;  %v8465_v45 = vcombine.high %v4147_v35, %v4151_v36  ;;  %v4546_v52 = vld [vmem:[%s12475_s5 + $0xcd0] sm:$0xff] }
 0x41b   :  { %v7452_v6 = vpop.f32.mrf.mxu0  ;;  %v8862_v50 = vcombine.low %v4546_v52, %v4550_v54  ;;  %v8456_v4 = vcombine.low %v4139_v56, %v4143_v17 }
 0x41c   :  { %7648 = vmatpush2.bf16.msra.mxu1 %v8654_v63  ;;  %v8464_v63 = vcombine.low %v4147_v35, %v4151_v36  ;;  %v4263_v6 = vld [vmem:[%s12475_s5 + $0x3f8] sm:$0xff] }
 0x41d   :  { %7745 = vmatpush1.bf16.msra.mxu0 %v8504_v0  ;;  %v7453_v9 = vpop.f32.mrf.mxu0  ;;  %7649 = vmatprep.subr.bf16.mxu1 %v8647_v59  ;;  %v8863_v0 = vcombine.high %v4546_v52, %v4550_v54  ;;  %v8457_v59 = vcombine.high %v4139_v56, %v4143_v17  ;;  %v8576_v47 = vcombine.low %v4259_v49, %v4263_v6  ;;  %v4227_v35 = vld [vmem:[%s12475_s5 + $0x2d8] sm:$0xff]  ;;  %v4630_v52 = vld [vmem:[%s12475_s5 + $0xf70] sm:$0xff] }
 0x41e   :  { %7746 = vmatprep.subr.bf16.mxu0 %v8497_v3  ;;  %v4538_v3 = vld [vmem:[%s12475_s5 + $0xc90] sm:$0xff]  ;;  %v8577_v9 = vcombine.high %v4259_v49, %v4263_v6  ;;  %v4231_v36 = vld [vmem:[%s12475_s5 + $0x2f8] sm:$0xff] }
 0x41f   :  { %v8854_v44 = vcombine.low %v4538_v3, %v4542_v10  ;;  %v4219_v54 = vld [vmem:[%s12475_s5 + $0x298] sm:$0xff] }
 0x420   :  { %7650 = vmatpush2.bf16.msra.mxu1 %v8646_v53  ;;  %v8855_v53 = vcombine.high %v4538_v3, %v4542_v10  ;;  %v4223_v56 = vld [vmem:[%s12475_s5 + $0x2b8] sm:$0xff]  ;;  %v4622_v3 = vld [vmem:[%s12475_s5 + $0xf30] sm:$0xff] }
 0x421   :  { %7747 = vmatpush1.bf16.msra.mxu0 %v8496_v11  ;;  %7701 = vmatprep.subr.bf16.mxu1 %v8895_v24  ;;  %v4530_v11 = vld [vmem:[%s12475_s5 + $0xc50] sm:$0xff]  ;;  %v4211_v10 = vld [vmem:[%s12475_s5 + $0x258] sm:$0xff] }
 0x422   :  { %7748 = vmatprep.subr.bf16.mxu0 %v8489_v26  ;;  %v4534_v24 = vld [vmem:[%s12475_s5 + $0xc70] sm:$0xff]  ;;  %v4251_v26 = vld [vmem:[%s12475_s5 + $0x398] sm:$0xff] }
 0x423   :  { %7652 = vmatmul.mubr.bf16.vlgmr.msra.gmra.mxu1 %v10995_v43  ;;  %v7407_v18 = vpop.f32.mrf.mxu1  ;;  %v8847_v21 = vcombine.high %v4530_v11, %v4534_v24  ;;  %v4215_v49 = vld [vmem:[%s12475_s5 + $0x278] sm:$0xff] }
 0x424   :  { %v7408_v25 = vadd.f32 %v7407_v18, %v11731_v23  ;;  %7702 = vmatpush1.bf16.msra.mxu1 %v8894_v12  ;;  %7733 = vmatprep.mubr.bf16.mxu1 %v11347_v58  ;;  %v4554_v23 = vld [vmem:[%s12475_s5 + $0xd10] sm:$0xff]  ;;  %v8569_v12 = vcombine.high %v4251_v26, %v4255_v22  ;;  %v8568_v18 = vcombine.low %v4251_v26, %v4255_v22  ;;  %v4207_v26 = vld [vmem:[%s12475_s5 + $0x238] sm:$0xff] }
 0x425   :  { %7749 = vmatpush1.bf16.msra.mxu0 %v8488_v16  ;;  %v7409_v27 = vpop.f32.mrf.mxu1  ;;  %7703 = vmatprep.subr.bf16.mxu1 %v8887_v19  ;;  %v8871_v51 = vcombine.high %v4554_v23, %v4558_v2  ;;  %v8870_v29 = vcombine.low %v4554_v23, %v4558_v2  ;;  %v4522_v16 = vld [vmem:[%s12475_s5 + $0xc10] sm:$0xff] }
 0x426   :  { %7906 = vst [vmem:[%s12477_s7] sm:$0xff] %v7408_v25  ;;  %v7410_v31 = vadd.f32 %v7409_v27, %v11736_v8  ;;  %7750 = vmatprep.subr.bf16.mxu0 %v8481_v62  ;;  %v8878_v8 = vcombine.low %v4562_v37, %v4566_v20  ;;  %v4526_v19 = vld [vmem:[%s12475_s5 + $0xc30] sm:$0xff]  ;;  %v4243_v62 = vld [vmem:[%s12475_s5 + $0x358] sm:$0xff]  ;;  %v8846_v20 = vcombine.low %v4530_v11, %v4534_v24 }
 0x427   :  { %v7411_v34 = vpop.f32.mrf.mxu1  ;;  %v4247_v37 = vld [vmem:[%s12475_s5 + $0x378] sm:$0xff]  ;;  %v8839_v39 = vcombine.high %v4522_v16, %v4526_v19  ;;  %v4642_v25 = vld [vmem:[%s12475_s5 + $0xfd0] sm:$0xff] }
 0x428   :  { %7907 = vst [vmem:[%s12477_s7 + $0x8] sm:$0xff] %v7410_v31  ;;  %7704 = vmatpush1.bf16.msra.mxu1 %v8886_v13  ;;  %v8561_v14 = vcombine.high %v4243_v62, %v4247_v37  ;;  %v4646_v13 = vld [vmem:[%s12475_s5 + $0xff0] sm:$0xff]  ;;  %v4235_v27 = vld [vmem:[%s12475_s5 + $0x318] sm:$0xff]  ;;  %v8560_v31 = vcombine.low %v4243_v62, %v4247_v37 }
 0x429   :  { %7751 = vmatpush1.bf16.msra.mxu0 %v8480_v41  ;;  %v7412_v38 = vpop.f32.mrf.mxu1  ;;  %7705 = vmatprep.subr.bf16.mxu1 %v8879_v5  ;;  %v4239_v41 = vld [vmem:[%s12475_s5 + $0x338] sm:$0xff]  ;;  %v8838_v5 = vcombine.low %v4522_v16, %v4526_v19  ;;  %v4634_v2 = vld [vmem:[%s12475_s5 + $0xf90] sm:$0xff] }
 0x42a   :  { %7752 = vmatprep.subr.bf16.mxu0 %v8473_v42  ;;  %v8959_v42 = vcombine.high %v4642_v25, %v4646_v13  ;;  %v8553_v23 = vcombine.high %v4235_v27, %v4239_v41  ;;  %v4638_v34 = vld [vmem:[%s12475_s5 + $0xfb0] sm:$0xff]  ;;  %v8552_v38 = vcombine.low %v4235_v27, %v4239_v41  ;;  %v4203_v24 = vld [vmem:[%s12475_s5 + $0x218] sm:$0xff] }
 0x42b   :  { %v8950_v17 = vcombine.low %v4634_v2, %v4638_v34  ;;  %v4614_v11 = vld [vmem:[%s12475_s5 + $0xef0] sm:$0xff]  ;;  %v4451_v19 = vld [vmem:[%s12475_s5 + $0x9d8] sm:$0xff] }
 0x42c   :  { %7706 = vmatpush1.bf16.msra.mxu1 %v8878_v8  ;;  %v8958_v8 = vcombine.low %v4642_v25, %v4646_v13  ;;  %v4606_v16 = vld [vmem:[%s12475_s5 + $0xeb0] sm:$0xff]  ;;  %v4455_v62 = vld [vmem:[%s12475_s5 + $0x9f8] sm:$0xff] }
 0x42d   :  { %7753 = vmatpush1.bf16.msra.mxu0 %v8472_v40  ;;  %7707 = vmatprep.subr.bf16.mxu1 %v8871_v51  ;;  %v8951_v40 = vcombine.high %v4634_v2, %v4638_v34  ;;  %v8545_v51 = vcombine.high %v4227_v35, %v4231_v36  ;;  %v4598_v25 = vld [vmem:[%s12475_s5 + $0xe70] sm:$0xff]  ;;  %v4443_v13 = vld [vmem:[%s12475_s5 + $0x998] sm:$0xff] }
 0x42e   :  { %7754 = vmatprep.subr.bf16.mxu0 %v8465_v45  ;;  %v4626_v45 = vld [vmem:[%s12475_s5 + $0xf50] sm:$0xff]  ;;  %v4447_v27 = vld [vmem:[%s12475_s5 + $0x9b8] sm:$0xff] }
 0x42f   :  { %v8942_v6 = vcombine.low %v4626_v45, %v4630_v52  ;;  %v4590_v2 = vld [vmem:[%s12475_s5 + $0xe30] sm:$0xff]  ;;  %v4435_v34 = vld [vmem:[%s12475_s5 + $0x958] sm:$0xff] }
 0x430   :  { %7708 = vmatpush1.bf16.msra.mxu1 %v8870_v29  ;;  %v8544_v29 = vcombine.low %v4227_v35, %v4231_v36  ;;  %v4439_v35 = vld [vmem:[%s12475_s5 + $0x978] sm:$0xff] }
 0x431   :  { %7755 = vmatpush1.bf16.msra.mxu0 %v8464_v63  ;;  %7709 = vmatprep.subr.bf16.mxu1 %v8863_v0  ;;  %v8943_v63 = vcombine.high %v4626_v45, %v4630_v52  ;;  %v8537_v0 = vcombine.high %v4219_v54, %v4223_v56  ;;  %v8753_v45 = vcombine.high %v4435_v34, %v4439_v35  ;;  %v4323_v52 = vld [vmem:[%s12475_s5 + $0x5d8] sm:$0xff] }
 0x432   :  { %7756 = vmatprep.subr.bf16.mxu0 %v8457_v59  ;;  %v4618_v59 = vld [vmem:[%s12475_s5 + $0xf10] sm:$0xff] }
 0x433   :  { %v8934_v22 = vcombine.low %v4618_v59, %v4622_v3 }
 0x434   :  { %7710 = vmatpush1.bf16.msra.mxu1 %v8862_v50  ;;  %v8536_v50 = vcombine.low %v4219_v54, %v4223_v56  ;;  %v4327_v54 = vld [vmem:[%s12475_s5 + $0x5f8] sm:$0xff] }
 0x435   :  { %7757 = vmatpush1.bf16.msra.mxu0 %v8456_v4  ;;  %7711 = vmatprep.subr.bf16.mxu1 %v8855_v53  ;;  %v8935_v4 = vcombine.high %v4618_v59, %v4622_v3  ;;  %v8529_v53 = vcombine.high %v4211_v10, %v4215_v49 }
 0x436   :  { %7758 = vmatprep.subr.bf16.mxu0 %v8577_v9  ;;  %v4610_v9 = vld [vmem:[%s12475_s5 + $0xed0] sm:$0xff] }
 0x437   :  { %v8926_v37 = vcombine.low %v4610_v9, %v4614_v11 }
 0x438   :  { %7712 = vmatpush1.bf16.msra.mxu1 %v8854_v44  ;;  %v8528_v44 = vcombine.low %v4211_v10, %v4215_v49  ;;  %v4315_v49 = vld [vmem:[%s12475_s5 + $0x598] sm:$0xff] }
 0x439   :  { %7759 = vmatpush2.bf16.msra.mxu0 %v8576_v47  ;;  %7713 = vmatprep.subr.bf16.mxu1 %v8847_v21  ;;  %v8927_v47 = vcombine.high %v4610_v9, %v4614_v11  ;;  %v8521_v21 = vcombine.high %v4203_v24, %v4207_v26 }
 0x43a   :  { %7760 = vmatprep.subr.bf16.mxu0 %v8569_v12  ;;  %v4602_v12 = vld [vmem:[%s12475_s5 + $0xe90] sm:$0xff] }
 0x43b   :  { %v8918_v41 = vcombine.low %v4602_v12, %v4606_v16 }
 0x43c   :  { %7714 = vmatpush1.bf16.msra.mxu1 %v8846_v20  ;;  %v8520_v20 = vcombine.low %v4203_v24, %v4207_v26 }
 0x43d   :  { %7761 = vmatpush2.bf16.msra.mxu0 %v8568_v18  ;;  %7715 = vmatprep.subr.bf16.mxu1 %v8839_v39  ;;  %v8919_v18 = vcombine.high %v4602_v12, %v4606_v16  ;;  %v8769_v39 = vcombine.high %v4451_v19, %v4455_v62 }
 0x43e   :  { %7762 = vmatprep.subr.bf16.mxu0 %v8561_v14  ;;  %v4594_v14 = vld [vmem:[%s12475_s5 + $0xe50] sm:$0xff] }
 0x440   :  { %7716 = vmatpush1.bf16.msra.mxu1 %v8838_v5  ;;  %v8768_v5 = vcombine.low %v4451_v19, %v4455_v62 }
 0x441   :  { %7763 = vmatpush2.bf16.msra.mxu0 %v8560_v31  ;;  %7717 = vmatprep.subr.bf16.mxu1 %v8959_v42  ;;  %v8911_v31 = vcombine.high %v4594_v14, %v4598_v25  ;;  %v8761_v42 = vcombine.high %v4443_v13, %v4447_v27 }
 0x442   :  { %7764 = vmatprep.subr.bf16.mxu0 %v8553_v23  ;;  %v4586_v23 = vld [vmem:[%s12475_s5 + $0xe10] sm:$0xff] }
 0x444   :  { %7718 = vmatpush2.bf16.msra.mxu1 %v8958_v8  ;;  %v8910_v8 = vcombine.low %v4594_v14, %v4598_v25  ;;  %v4403_v25 = vld [vmem:[%s12475_s5 + $0x858] sm:$0xff] }
 0x445   :  { %7765 = vmatpush2.bf16.msra.mxu0 %v8552_v38  ;;  %7719 = vmatprep.subr.bf16.mxu1 %v8951_v40  ;;  %v8760_v38 = vcombine.low %v4443_v13, %v4447_v27  ;;  %v8903_v40 = vcombine.high %v4586_v23, %v4590_v2  ;;  %v4407_v13 = vld [vmem:[%s12475_s5 + $0x878] sm:$0xff] }
 0x446   :  { %7766 = vmatprep.subr.bf16.mxu0 %v8545_v51 }
 0x448   :  { %7720 = vmatpush2.bf16.msra.mxu1 %v8950_v17  ;;  %v8902_v17 = vcombine.low %v4586_v23, %v4590_v2  ;;  %v8721_v23 = vcombine.high %v4403_v25, %v4407_v13  ;;  %v4291_v2 = vld [vmem:[%s12475_s5 + $0x4d8] sm:$0xff] }
 0x449   :  { %7767 = vmatpush2.bf16.msra.mxu0 %v8544_v29  ;;  %7721 = vmatprep.subr.bf16.mxu1 %v8943_v63  ;;  %v8752_v29 = vcombine.low %v4435_v34, %v4439_v35  ;;  %v8641_v63 = vcombine.high %v4323_v52, %v4327_v54  ;;  %v4295_v34 = vld [vmem:[%s12475_s5 + $0x4f8] sm:$0xff] }
 0x44a   :  { %7768 = vmatprep.subr.bf16.mxu0 %v8537_v0  ;;  %v12159_v0 = vld [vmem:[%s12476_s6] sm:$0xff]  ;;  %v4395_v35 = vld [vmem:[%s12475_s5 + $0x818] sm:$0xff] }
 0x44b   :  { %v4661_v59 = vrot.slane %v12159_v0, %v9293_v46  ;;  %v4665_v46 = vrot.slane %v12159_v0, %v9299_v48  ;;  %v4411_v48 = vld [vmem:[%s12475_s5 + $0x898] sm:$0xff] }
 0x44c   :  { %7722 = vmatpush2.bf16.msra.mxu1 %v8942_v6  ;;  %v4319_v6 = vld [vmem:[%s12475_s5 + $0x5b8] sm:$0xff] }
 0x44d   :  { %7769 = vmatpush2.bf16.msra.mxu0 %v8536_v50  ;;  %7723 = vmatprep.subr.bf16.mxu1 %v8935_v4  ;;  %v4419_v50 = vld [vmem:[%s12475_s5 + $0x8d8] sm:$0xff]  ;;  %v8633_v11 = vcombine.high %v4315_v49, %v4319_v6  ;;  %v7449_v24 = vadd.f32 %v11926_v57, %v4661_v59  ;;  %v8632_v16 = vcombine.low %v4315_v49, %v4319_v6 }
 0x44e   :  { %7770 = vmatprep.subr.bf16.mxu0 %v8529_v53  ;;  %v4423_v4 = vld [vmem:[%s12475_s5 + $0x8f8] sm:$0xff]  ;;  %v8640_v53 = vcombine.low %v4323_v52, %v4327_v54 }
 0x44f   :  { %v8737_v26 = vcombine.high %v4419_v50, %v4423_v4  ;;  %v4415_v57 = vld [vmem:[%s12475_s5 + $0x8b8] sm:$0xff]  ;;  %v8736_v62 = vcombine.low %v4419_v50, %v4423_v4 }
 0x450   :  { %7724 = vmatpush2.bf16.msra.mxu1 %v8934_v22  ;;  %v4307_v22 = vld [vmem:[%s12475_s5 + $0x558] sm:$0xff] }
 0x451   :  { %7771 = vmatpush2.bf16.msra.mxu0 %v8528_v44  ;;  %7725 = vmatprep.subr.bf16.mxu1 %v8927_v47  ;;  %v4311_v44 = vld [vmem:[%s12475_s5 + $0x578] sm:$0xff] }
 0x452   :  { %7772 = vmatprep.subr.bf16.mxu0 %v8521_v21  ;;  %v7451_v21 = vadd.f32 %v11936_v7, %v4665_v46  ;;  %v4303_v7 = vld [vmem:[%s12475_s5 + $0x538] sm:$0xff]  ;;  %v8624_v27 = vcombine.low %v4307_v22, %v4311_v44 }
 0x453   :  { %v4287_v52 = vld [vmem:[%s12475_s5 + $0x4b8] sm:$0xff] }
 0x454   :  { %7726 = vmatpush2.bf16.msra.mxu1 %v8926_v37  ;;  %v8625_v37 = vcombine.high %v4307_v22, %v4311_v44  ;;  %v4515_v54 = vld [vmem:[%s12475_s5 + $0xbd8] sm:$0xff] }
 0x455   :  { %7773 = vmatpush2.bf16.msra.mxu0 %v8520_v20  ;;  %7727 = vmatprep.subr.bf16.mxu1 %v8919_v18  ;;  %v8729_v18 = vcombine.high %v4411_v48, %v4415_v57  ;;  %v4279_v59 = vld [vmem:[%s12475_s5 + $0x478] sm:$0xff] }
 0x456   :  { %7824 = vmatprep.subr.bf16.mxu0 %v8769_v39  ;;  %v4299_v39 = vld [vmem:[%s12475_s5 + $0x518] sm:$0xff] }
 0x457   :  { %v4267_v46 = vld [vmem:[%s12475_s5 + $0x418] sm:$0xff] }
 0x458   :  { %v12140_v36 = vpop.f32.mrf.mxu0  ;;  %7728 = vmatpush2.bf16.msra.mxu1 %v8918_v41  ;;  %7775 = vmatmul.mubr.bf16.vlgmr.msra.gmra.mxu0 %v10993_v33  ;;  %v4427_v33 = vld [vmem:[%s12475_s5 + $0x918] sm:$0xff] }
 0x459   :  { %7825 = vmatpush1.bf16.msra.mxu0 %v8768_v5  ;;  %7856 = vmatprep.mubr.bf16.mxu0 %v11040_v15  ;;  %v4431_v15 = vld [vmem:[%s12475_s5 + $0x938] sm:$0xff] }
 0x45a   :  { %v7532_v51 = vpop.f32.mrf.mxu0  ;;  %7729 = vmatprep.subr.bf16.mxu1 %v8911_v31  ;;  %7826 = vmatprep.subr.bf16.mxu0 %v8761_v42  ;;  %v8745_v10 = vcombine.high %v4427_v33, %v4431_v15  ;;  %v8744_v9 = vcombine.low %v4427_v33, %v4431_v15  ;;  %v8728_v31 = vcombine.low %v4411_v48, %v4415_v57  ;;  %v4519_v33 = vld [vmem:[%s12475_s5 + $0xbf8] sm:$0xff] }
 0x45b   :  { %v8617_v42 = vcombine.high %v4299_v39, %v4303_v7  ;;  %v8608_v15 = vcombine.low %v4291_v2, %v4295_v34  ;;  %v8832_v6 = vcombine.low %v4515_v54, %v4519_v33  ;;  %v4391_v48 = vld [vmem:[%s12475_s5 + $0x7f8] sm:$0xff] }
 0x45c   :  { %v7534_v56 = vpop.f32.mrf.mxu0  ;;  %7730 = vmatpush2.bf16.msra.mxu1 %v8910_v8  ;;  %v8616_v8 = vcombine.low %v4299_v39, %v4303_v7  ;;  %v4491_v57 = vld [vmem:[%s12475_s5 + $0xb18] sm:$0xff] }
 0x45d   :  { %7827 = vmatpush1.bf16.msra.mxu0 %v8760_v38  ;;  %7731 = vmatprep.subr.bf16.mxu1 %v8903_v40  ;;  %v8720_v38 = vcombine.low %v4403_v25, %v4407_v13  ;;  %v8609_v40 = vcombine.high %v4291_v2, %v4295_v34  ;;  %v4487_v39 = vld [vmem:[%s12475_s5 + $0xaf8] sm:$0xff] }
 0x45e   :  { %v7535_v3 = vpop.f32.mrf.mxu0  ;;  %7828 = vmatprep.subr.bf16.mxu0 %v8753_v45  ;;  %v4283_v45 = vld [vmem:[%s12475_s5 + $0x498] sm:$0xff] }
 0x45f   :  { %v4507_v3 = vld [vmem:[%s12475_s5 + $0xb98] sm:$0xff]  ;;  %v8600_v49 = vcombine.low %v4283_v45, %v4287_v52 }
 0x460   :  { %7732 = vmatpush2.bf16.msra.mxu1 %v8902_v17  ;;  %v8601_v17 = vcombine.high %v4283_v45, %v4287_v52 }
 0x461   :  { %7829 = vmatpush1.bf16.msra.mxu0 %v8752_v29  ;;  %7783 = vmatprep.subr.bf16.mxu1 %v8641_v63  ;;  %v8833_v29 = vcombine.high %v4515_v54, %v4519_v33  ;;  %v4275_v63 = vld [vmem:[%s12475_s5 + $0x458] sm:$0xff] }
 0x462   :  { %7830 = vmatprep.subr.bf16.mxu0 %v8745_v10  ;;  %v4511_v10 = vld [vmem:[%s12475_s5 + $0xbb8] sm:$0xff]  ;;  %v8593_v50 = vcombine.high %v4275_v63, %v4279_v59 }
 0x463   :  { %v7489_v47 = vpop.f32.mrf.mxu1  ;;  %7734 = vmatmul.mubr.bf16.vlgmr.msra.gmra.mxu1 %v11349_v61  ;;  %v8825_v4 = vcombine.high %v4507_v3, %v4511_v10  ;;  %v4355_v33 = vld [vmem:[%s12475_s5 + $0x6d8] sm:$0xff] }
 0x464   :  { %v7490_v12 = vadd.f32 %v7489_v47, %v7449_v24  ;;  %7784 = vmatpush1.bf16.msra.mxu1 %v8640_v53  ;;  %7815 = vmatprep.mubr.bf16.mxu1 %v10797_v55  ;;  %v4271_v53 = vld [vmem:[%s12475_s5 + $0x438] sm:$0xff]  ;;  %v8592_v24 = vcombine.low %v4275_v63, %v4279_v59 }
 0x465   :  { %v7491_v19 = vpop.f32.mrf.mxu1  ;;  %7831 = vmatpush1.bf16.msra.mxu0 %v8744_v9  ;;  %7785 = vmatprep.subr.bf16.mxu1 %v8633_v11  ;;  %v4499_v9 = vld [vmem:[%s12475_s5 + $0xb58] sm:$0xff]  ;;  %v8585_v22 = vcombine.high %v4267_v46, %v4271_v53 }
 0x466   :  { %v7492_v20 = vadd.f32 %v7491_v19, %v7451_v21  ;;  %7832 = vmatprep.subr.bf16.mxu0 %v8737_v26  ;;  %v12200_v14 = vadd.f32 %v12140_v36, %v7490_v12  ;;  %v4399_v36 = vld [vmem:[%s12475_s5 + $0x838] sm:$0xff]  ;;  %v8824_v26 = vcombine.low %v4507_v3, %v4511_v10  ;;  %v8584_v12 = vcombine.low %v4267_v46, %v4271_v53 }
 0x467   :  { %v7493_v55 = vpop.f32.mrf.mxu1  ;;  %v8712_v56 = vcombine.low %v4395_v35, %v4399_v36  ;;  %v4503_v11 = vld [vmem:[%s12475_s5 + $0xb78] sm:$0xff] }
 0x468   :  { %7786 = vmatpush1.bf16.msra.mxu1 %v8632_v16  ;;  %v12208_v41 = vadd.f32 %v7532_v51, %v7492_v20  ;;  %v8713_v51 = vcombine.high %v4395_v35, %v4399_v36  ;;  %v8817_v44 = vcombine.high %v4499_v9, %v4503_v11  ;;  %v4387_v47 = vld [vmem:[%s12475_s5 + $0x7d8] sm:$0xff]  ;;  %v8816_v16 = vcombine.low %v4499_v9, %v4503_v11 }
 0x469   :  { %v7494_v5 = vpop.f32.mrf.mxu1  ;;  %7833 = vmatpush1.bf16.msra.mxu0 %v8736_v62  ;;  %7787 = vmatprep.subr.bf16.mxu1 %v8625_v37  ;;  %v4495_v21 = vld [vmem:[%s12475_s5 + $0xb38] sm:$0xff]  ;;  %v8705_v19 = vcombine.high %v4387_v47, %v4391_v48  ;;  %v8704_v7 = vcombine.low %v4387_v47, %v4391_v48 }
 0x46a   :  { %7834 = vmatprep.subr.bf16.mxu0 %v8729_v18  ;;  %v8809_v62 = vcombine.high %v4491_v57, %v4495_v21  ;;  %v4379_v37 = vld [vmem:[%s12475_s5 + $0x798] sm:$0xff]  ;;  %v8808_v55 = vcombine.low %v4491_v57, %v4495_v21 }
 0x46b   :  { %v4383_v20 = vld [vmem:[%s12475_s5 + $0x7b8] sm:$0xff] }
 0x46c   :  { %7788 = vmatpush1.bf16.msra.mxu1 %v8624_v27  ;;  %v4483_v18 = vld [vmem:[%s12475_s5 + $0xad8] sm:$0xff]  ;;  %v8697_v25 = vcombine.high %v4379_v37, %v4383_v20 }
 0x46d   :  { %7835 = vmatpush1.bf16.msra.mxu0 %v8728_v31  ;;  %7789 = vmatprep.subr.bf16.mxu1 %v8617_v42  ;;  %v8801_v13 = vcombine.high %v4483_v18, %v4487_v39  ;;  %v4371_v27 = vld [vmem:[%s12475_s5 + $0x758] sm:$0xff]  ;;  %v8800_v2 = vcombine.low %v4483_v18, %v4487_v39 }
 0x46e   :  { %7836 = vmatprep.subr.bf16.mxu0 %v8721_v23  ;;  %v4375_v5 = vld [vmem:[%s12475_s5 + $0x778] sm:$0xff]  ;;  %v8696_v23 = vcombine.low %v4379_v37, %v4383_v20 }
 0x46f   :  { %v4475_v31 = vld [vmem:[%s12475_s5 + $0xa98] sm:$0xff]  ;;  %v8689_v34 = vcombine.high %v4371_v27, %v4375_v5 }
 0x470   :  { %7790 = vmatpush1.bf16.msra.mxu1 %v8616_v8  ;;  %v4479_v42 = vld [vmem:[%s12475_s5 + $0xab8] sm:$0xff] }
 0x471   :  { %7837 = vmatpush1.bf16.msra.mxu0 %v8720_v38  ;;  %7791 = vmatprep.subr.bf16.mxu1 %v8609_v40  ;;  %v8793_v35 = vcombine.high %v4475_v31, %v4479_v42  ;;  %v4363_v36 = vld [vmem:[%s12475_s5 + $0x718] sm:$0xff]  ;;  %v8792_v45 = vcombine.low %v4475_v31, %v4479_v42 }
 0x472   :  { %7838 = vmatprep.subr.bf16.mxu0 %v8713_v51  ;;  %v4367_v8 = vld [vmem:[%s12475_s5 + $0x738] sm:$0xff]  ;;  %v8688_v51 = vcombine.low %v4371_v27, %v4375_v5 }
 0x473   :  { %v4467_v38 = vld [vmem:[%s12475_s5 + $0xa58] sm:$0xff]  ;;  %v8681_v52 = vcombine.high %v4363_v36, %v4367_v8 }
 0x474   :  { %7792 = vmatpush1.bf16.msra.mxu1 %v8608_v15  ;;  %v4471_v40 = vld [vmem:[%s12475_s5 + $0xa78] sm:$0xff] }
 0x475   :  { %7839 = vmatpush1.bf16.msra.mxu0 %v8712_v56  ;;  %7793 = vmatprep.subr.bf16.mxu1 %v8601_v17  ;;  %v8785_v54 = vcombine.high %v4467_v38, %v4471_v40  ;;  %v4359_v15 = vld [vmem:[%s12475_s5 + $0x6f8] sm:$0xff]  ;;  %v8784_v63 = vcombine.low %v4467_v38, %v4471_v40 }
 0x476   :  { %7840 = vmatprep.subr.bf16.mxu0 %v8833_v29  ;;  %v4459_v56 = vld [vmem:[%s12475_s5 + $0xa18] sm:$0xff]  ;;  %v8680_v29 = vcombine.low %v4363_v36, %v4367_v8  ;;  %v8673_v59 = vcombine.high %v4355_v33, %v4359_v15 }
 0x477   :  { %v4463_v17 = vld [vmem:[%s12475_s5 + $0xa38] sm:$0xff] }
 0x478   :  { %7794 = vmatpush1.bf16.msra.mxu1 %v8600_v49  ;;  %v8777_v3 = vcombine.high %v4459_v56, %v4463_v17  ;;  %v4347_v10 = vld [vmem:[%s12475_s5 + $0x698] sm:$0xff] }
 0x479   :  { %7841 = vmatpush2.bf16.msra.mxu0 %v8832_v6  ;;  %7795 = vmatprep.subr.bf16.mxu1 %v8593_v50  ;;  %v4351_v49 = vld [vmem:[%s12475_s5 + $0x6b8] sm:$0xff]  ;;  %v8672_v6 = vcombine.low %v4355_v33, %v4359_v15  ;;  %v8776_v50 = vcombine.low %v4459_v56, %v4463_v17 }
 0x47a   :  { %7842 = vmatprep.subr.bf16.mxu0 %v8825_v4  ;;  %v8665_v4 = vcombine.high %v4347_v10, %v4351_v49  ;;  %v4339_v46 = vld [vmem:[%s12475_s5 + $0x658] sm:$0xff]  ;;  %v8664_v9 = vcombine.low %v4347_v10, %v4351_v49 }
 0x47b   :  { %v4343_v53 = vld [vmem:[%s12475_s5 + $0x678] sm:$0xff] }
 0x47c   :  { %7796 = vmatpush1.bf16.msra.mxu1 %v8592_v24  ;;  %v8657_v11 = vcombine.high %v4339_v46, %v4343_v53  ;;  %v4331_v24 = vld [vmem:[%s12475_s5 + $0x618] sm:$0xff] }
 0x47d   :  { %7843 = vmatpush2.bf16.msra.mxu0 %v8824_v26  ;;  %7797 = vmatprep.subr.bf16.mxu1 %v8585_v22  ;;  %v4335_v26 = vld [vmem:[%s12475_s5 + $0x638] sm:$0xff] }
 0x47e   :  { %7844 = vmatprep.subr.bf16.mxu0 %v8817_v44  ;;  %v8656_v44 = vcombine.low %v4339_v46, %v4343_v53  ;;  %v8649_v47 = vcombine.high %v4331_v24, %v4335_v26  ;;  %v4579_v57 = vld [vmem:[%s12475_s5 + $0xdd8] sm:$0xff] }
 0x47f   :  { %v4583_v21 = vld [vmem:[%s12475_s5 + $0xdf8] sm:$0xff] }
 0x480   :  { %7798 = vmatpush1.bf16.msra.mxu1 %v8584_v12  ;;  %v4575_v37 = vld [vmem:[%s12475_s5 + $0xdb8] sm:$0xff]  ;;  %v8896_v20 = vcombine.low %v4579_v57, %v4583_v21 }
 0x481   :  { %7845 = vmatpush2.bf16.msra.mxu0 %v8816_v16  ;;  %7799 = vmatprep.subr.bf16.mxu1 %v8705_v19  ;;  %v8648_v16 = vcombine.low %v4331_v24, %v4335_v26  ;;  %v8897_v19 = vcombine.high %v4579_v57, %v4583_v21  ;;  %v4563_v39 = vld [vmem:[%s12475_s5 + $0xd58] sm:$0xff] }
 0x482   :  { %7846 = vmatprep.subr.bf16.mxu0 %v8809_v62  ;;  %v4555_v42 = vld [vmem:[%s12475_s5 + $0xd18] sm:$0xff] }
 0x483   :  { %v4539_v8 = vld [vmem:[%s12475_s5 + $0xc98] sm:$0xff] }
 0x484   :  { %7800 = vmatpush2.bf16.msra.mxu1 %v8704_v7  ;;  %v4567_v7 = vld [vmem:[%s12475_s5 + $0xd78] sm:$0xff] }
 0x485   :  { %7847 = vmatpush2.bf16.msra.mxu0 %v8808_v55  ;;  %7801 = vmatprep.subr.bf16.mxu1 %v8697_v25  ;;  %v8881_v5 = vcombine.high %v4563_v39, %v4567_v7  ;;  %v4543_v38 = vld [vmem:[%s12475_s5 + $0xcb8] sm:$0xff] }
 0x486   :  { %7848 = vmatprep.subr.bf16.mxu0 %v8801_v13  ;;  %v4523_v15 = vld [vmem:[%s12475_s5 + $0xc18] sm:$0xff] }
 0x487   :  { %v4527_v56 = vld [vmem:[%s12475_s5 + $0xc38] sm:$0xff] }
 0x488   :  { %7802 = vmatpush2.bf16.msra.mxu1 %v8696_v23  ;;  %v4635_v49 = vld [vmem:[%s12475_s5 + $0xf98] sm:$0xff] }
 0x489   :  { %7849 = vmatpush2.bf16.msra.mxu0 %v8800_v2  ;;  %7803 = vmatprep.subr.bf16.mxu1 %v8689_v34  ;;  %v4551_v34 = vld [vmem:[%s12475_s5 + $0xcf8] sm:$0xff] }
 0x48a   :  { %7850 = vmatprep.subr.bf16.mxu0 %v8793_v35  ;;  %v4627_v46 = vld [vmem:[%s12475_s5 + $0xf58] sm:$0xff] }
 0x48b   :  { %v4631_v53 = vld [vmem:[%s12475_s5 + $0xf78] sm:$0xff] }
 0x48c   :  { %7804 = vmatpush2.bf16.msra.mxu1 %v8688_v51  ;;  %v8857_v51 = vcombine.high %v4539_v8, %v4543_v38  ;;  %v4619_v24 = vld [vmem:[%s12475_s5 + $0xf18] sm:$0xff] }
 0x48d   :  { %7851 = vmatpush2.bf16.msra.mxu0 %v8792_v45  ;;  %7805 = vmatprep.subr.bf16.mxu1 %v8681_v52  ;;  %v4531_v45 = vld [vmem:[%s12475_s5 + $0xc58] sm:$0xff] }
 0x48e   :  { %7852 = vmatprep.subr.bf16.mxu0 %v8785_v54  ;;  %v4535_v52 = vld [vmem:[%s12475_s5 + $0xc78] sm:$0xff]  ;;  %v8856_v54 = vcombine.low %v4539_v8, %v4543_v38 }
 0x48f   :  { %v8849_v33 = vcombine.high %v4531_v45, %v4535_v52  ;;  %v8848_v17 = vcombine.low %v4531_v45, %v4535_v52  ;;  %v4623_v26 = vld [vmem:[%s12475_s5 + $0xf38] sm:$0xff] }
 0x490   :  { %7806 = vmatpush2.bf16.msra.mxu1 %v8680_v29  ;;  %v8841_v29 = vcombine.high %v4523_v15, %v4527_v56  ;;  %v4611_v57 = vld [vmem:[%s12475_s5 + $0xed8] sm:$0xff] }
 0x491   :  { %7853 = vmatpush2.bf16.msra.mxu0 %v8784_v63  ;;  %7807 = vmatprep.subr.bf16.mxu1 %v8673_v59  ;;  %v4643_v63 = vld [vmem:[%s12475_s5 + $0xfd8] sm:$0xff] }
 0x492   :  { %7854 = vmatprep.subr.bf16.mxu0 %v8777_v3  ;;  %v4647_v59 = vld [vmem:[%s12475_s5 + $0xff8] sm:$0xff]  ;;  %v8840_v3 = vcombine.low %v4523_v15, %v4527_v56 }
 0x493   :  { %v8961_v10 = vcombine.high %v4643_v63, %v4647_v59  ;;  %v4615_v21 = vld [vmem:[%s12475_s5 + $0xef8] sm:$0xff] }
 0x494   :  { %7808 = vmatpush2.bf16.msra.mxu1 %v8672_v6  ;;  %v4639_v6 = vld [vmem:[%s12475_s5 + $0xfb8] sm:$0xff] }
 0x495   :  { %7855 = vmatpush2.bf16.msra.mxu0 %v8776_v50  ;;  %7809 = vmatprep.subr.bf16.mxu1 %v8665_v4  ;;  %v8960_v50 = vcombine.low %v4643_v63, %v4647_v59  ;;  %v8953_v4 = vcombine.high %v4635_v49, %v4639_v6  ;;  %v4677_v59 = vrot.slane %v12159_v0, %v9498_v28 }
 0x498   :  { %v12336_v22 = vpop.f32.mrf.mxu0  ;;  %7810 = vmatpush2.bf16.msra.mxu1 %v8664_v9  ;;  %7857 = vmatmul.mubr.bf16.vlgmr.msra.gmra.mxu0 %v11204_v32  ;;  %v4571_v32 = vld [vmem:[%s12475_s5 + $0xd98] sm:$0xff]  ;;  %v8952_v9 = vcombine.low %v4635_v49, %v4639_v6 }
 0x499   :  { %7811 = vmatprep.subr.bf16.mxu1 %v8657_v11  ;;  %v8889_v18 = vcombine.high %v4571_v32, %v4575_v37  ;;  %v8888_v13 = vcombine.low %v4571_v32, %v4575_v37  ;;  %v8945_v11 = vcombine.high %v4627_v46, %v4631_v53  ;;  %v8928_v32 = vcombine.low %v4611_v57, %v4615_v21 }
 0x49a   :  { %v12339_v48 = vpop.f32.mrf.mxu0 }
 0x49c   :  { %v7616_v12 = vpop.f32.mrf.mxu0  ;;  %7812 = vmatpush2.bf16.msra.mxu1 %v8656_v44  ;;  %v8944_v44 = vcombine.low %v4627_v46, %v4631_v53 }
 0x49d   :  { %7813 = vmatprep.subr.bf16.mxu1 %v8649_v47  ;;  %v8937_v47 = vcombine.high %v4619_v24, %v4623_v26  ;;  %v8936_v12 = vcombine.low %v4619_v24, %v4623_v26 }
 0x49e   :  { %v7617_v62 = vpop.f32.mrf.mxu0 }
 0x49f   :  { %v4607_v62 = vld [vmem:[%s12475_s5 + $0xeb8] sm:$0xff] }
 0x4a0   :  { %7814 = vmatpush2.bf16.msra.mxu1 %v8648_v16  ;;  %v8929_v16 = vcombine.high %v4611_v57, %v4615_v21 }
 0x4a1   :  { %7865 = vmatprep.subr.bf16.mxu1 %v8897_v19  ;;  %v4603_v19 = vld [vmem:[%s12475_s5 + $0xe98] sm:$0xff] }
 0x4a2   :  { %v8921_v37 = vcombine.high %v4603_v19, %v4607_v62 }
 0x4a3   :  { %v7571_v55 = vpop.f32.mrf.mxu1  ;;  %7816 = vmatmul.mubr.bf16.vlgmr.msra.gmra.mxu1 %v10995_v43  ;;  %v4559_v43 = vld [vmem:[%s12475_s5 + $0xd38] sm:$0xff] }
 0x4a4   :  { %v7572_v25 = vadd.f32 %v7571_v55, %v12200_v14  ;;  %7866 = vmatpush1.bf16.msra.mxu1 %v8896_v20  ;;  %7897 = vmatprep.mubr.bf16.mxu1 %v11347_v58  ;;  %v8880_v58 = vcombine.low %v4563_v39, %v4567_v7  ;;  %v8873_v2 = vcombine.high %v4555_v42, %v4559_v43  ;;  %v4595_v20 = vld [vmem:[%s12475_s5 + $0xe58] sm:$0xff] }
 0x4a5   :  { %v7573_v27 = vpop.f32.mrf.mxu1  ;;  %7867 = vmatprep.subr.bf16.mxu1 %v8889_v18  ;;  %v8872_v35 = vcombine.low %v4555_v42, %v4559_v43  ;;  %v4599_v18 = vld [vmem:[%s12475_s5 + $0xe78] sm:$0xff]  ;;  %v8920_v39 = vcombine.low %v4603_v19, %v4607_v62 }
 0x4a6   :  { %7908 = vst [vmem:[%s12477_s7 + $0x10] sm:$0xff] %v7572_v25  ;;  %v7574_v31 = vadd.f32 %v7573_v27, %v12208_v41  ;;  %v4547_v41 = vld [vmem:[%s12475_s5 + $0xcd8] sm:$0xff]  ;;  %v8913_v7 = vcombine.high %v4595_v20, %v4599_v18  ;;  %v8912_v27 = vcombine.low %v4595_v20, %v4599_v18 }
 0x4a7   :  { %v7575_v14 = vpop.f32.mrf.mxu1  ;;  %v8865_v36 = vcombine.high %v4547_v41, %v4551_v34  ;;  %v8864_v40 = vcombine.low %v4547_v41, %v4551_v34  ;;  %v4587_v55 = vld [vmem:[%s12475_s5 + $0xe18] sm:$0xff] }
 0x4a8   :  { %7909 = vst [vmem:[%s12477_s7 + $0x18] sm:$0xff] %v7574_v31  ;;  %7868 = vmatpush1.bf16.msra.mxu1 %v8888_v13  ;;  %v4591_v25 = vld [vmem:[%s12475_s5 + $0xe38] sm:$0xff]  ;;  %v4669_v14 = vrot.slane %v12159_v0, %v9501_v30 }
 0x4a9   :  { %v7576_v23 = vpop.f32.mrf.mxu1  ;;  %7869 = vmatprep.subr.bf16.mxu1 %v8881_v5  ;;  %v8905_v5 = vcombine.high %v4587_v55, %v4591_v25  ;;  %v8904_v43 = vcombine.low %v4587_v55, %v4591_v25 }
 0x4aa   :  { %v4673_v23 = vrot.slane %v12159_v0, %v9310_v60 }
 0x4ac   :  { %7870 = vmatpush1.bf16.msra.mxu1 %v8880_v58  ;;  %v7615_v34 = vadd.f32 %v12339_v48, %v4673_v23 }
 0x4ad   :  { %7871 = vmatprep.subr.bf16.mxu1 %v8873_v2  ;;  %v7613_v2 = vadd.f32 %v12336_v22, %v4669_v14 }
 0x4b0   :  { %7872 = vmatpush1.bf16.msra.mxu1 %v8872_v35 }
 0x4b1   :  { %7873 = vmatprep.subr.bf16.mxu1 %v8865_v36 }
 0x4b4   :  { %7874 = vmatpush1.bf16.msra.mxu1 %v8864_v40 }
 0x4b5   :  { %7875 = vmatprep.subr.bf16.mxu1 %v8857_v51 }
 0x4b8   :  { %7876 = vmatpush1.bf16.msra.mxu1 %v8856_v54 }
 0x4b9   :  { %7877 = vmatprep.subr.bf16.mxu1 %v8849_v33 }
 0x4bc   :  { %7878 = vmatpush1.bf16.msra.mxu1 %v8848_v17 }
 0x4bd   :  { %7879 = vmatprep.subr.bf16.mxu1 %v8841_v29 }
 0x4c0   :  { %7880 = vmatpush1.bf16.msra.mxu1 %v8840_v3 }
 0x4c1   :  { %7881 = vmatprep.subr.bf16.mxu1 %v8961_v10  ;;  %v4681_v10 = vrot.slane %v12159_v0, %v9313_v1 }
 0x4c4   :  { %7882 = vmatpush2.bf16.msra.mxu1 %v8960_v50 }
 0x4c5   :  { %7883 = vmatprep.subr.bf16.mxu1 %v8953_v4 }
 0x4c8   :  { %7884 = vmatpush2.bf16.msra.mxu1 %v8952_v9 }
 0x4c9   :  { %7885 = vmatprep.subr.bf16.mxu1 %v8945_v11 }
 0x4cc   :  { %7886 = vmatpush2.bf16.msra.mxu1 %v8944_v44 }
 0x4cd   :  { %7887 = vmatprep.subr.bf16.mxu1 %v8937_v47 }
 0x4d0   :  { %7888 = vmatpush2.bf16.msra.mxu1 %v8936_v12 }
 0x4d1   :  { %7889 = vmatprep.subr.bf16.mxu1 %v8929_v16 }
 0x4d4   :  { %7890 = vmatpush2.bf16.msra.mxu1 %v8928_v32 }
 0x4d5   :  { %7891 = vmatprep.subr.bf16.mxu1 %v8921_v37 }
 0x4d8   :  { %v7694_v13 = vpop.f32.mrf.mxu0  ;;  %7892 = vmatpush2.bf16.msra.mxu1 %v8920_v39 }
 0x4d9   :  { %7893 = vmatprep.subr.bf16.mxu1 %v8913_v7 }
 0x4da   :  { %v7696_v31 = vpop.f32.mrf.mxu0 }
 0x4dc   :  { %v7698_v42 = vpop.f32.mrf.mxu0  ;;  %7894 = vmatpush2.bf16.msra.mxu1 %v8912_v27 }
 0x4dd   :  { %7895 = vmatprep.subr.bf16.mxu1 %v8905_v5 }
 0x4de   :  { %v7699_v58 = vpop.f32.mrf.mxu0 }
 0x4e0   :  { %7896 = vmatpush2.bf16.msra.mxu1 %v8904_v43 }
 0x4e3   :  { %v7653_v41 = vpop.f32.mrf.mxu1  ;;  %7898 = vmatmul.mubr.bf16.vlgmr.msra.gmra.mxu1 %v11349_v61 }
 0x4e4   :  { %v7654_v35 = vadd.f32 %v7653_v41, %v7613_v2 }
 0x4e5   :  { %v7655_v36 = vpop.f32.mrf.mxu1 }
 0x4e6   :  { %v7656_v8 = vadd.f32 %v7655_v36, %v7615_v34  ;;  %v7695_v38 = vadd.f32 %v7694_v13, %v7654_v35 }
 0x4e7   :  { %v7657_v40 = vpop.f32.mrf.mxu1 }
 0x4e8   :  { %v7697_v51 = vadd.f32 %v7696_v31, %v7656_v8 }
 0x4e9   :  { %v7658_v45 = vpop.f32.mrf.mxu1 }
 0x518   :  { %v7776_v30 = vpop.f32.mrf.mxu0 }
 0x519   :  { %v7777_v49 = vadd.f32 %v7776_v30, %v4677_v59 }
 0x51a   :  { %v7778_v52 = vpop.f32.mrf.mxu0 }
 0x51b   :  { %v7779_v50 = vadd.f32 %v7778_v52, %v4681_v10 }
 0x51c   :  { %v7780_v54 = vpop.f32.mrf.mxu0 }
 0x51e   :  { %v7781_v33 = vpop.f32.mrf.mxu0 }
 0x523   :  { %v7735_v60 = vpop.f32.mrf.mxu1 }
 0x524   :  { %v7736_v15 = vadd.f32 %v7735_v60, %v7695_v38 }
 0x525   :  { %v7737_v56 = vpop.f32.mrf.mxu1 }
 0x526   :  { %7910 = vst [vmem:[%s12477_s7 + $0x20] sm:$0xff] %v7736_v15  ;;  %v7738_v61 = vadd.f32 %v7737_v56, %v7697_v51 }
 0x527   :  { %v7739_v22 = vpop.f32.mrf.mxu1 }
 0x528   :  { %7911 = vst [vmem:[%s12477_s7 + $0x28] sm:$0xff] %v7738_v61 }
 0x529   :  { %v7740_v48 = vpop.f32.mrf.mxu1 }
 0x558   :  { %v7858_v17 = vpop.f32.mrf.mxu0 }
 0x55a   :  { %v7860_v29 = vpop.f32.mrf.mxu0 }
 0x55c   :  { %v7862_v63 = vpop.f32.mrf.mxu0 }
 0x55e   :  { %v7863_v3 = vpop.f32.mrf.mxu0 }
 0x563   :  { %v7817_v6 = vpop.f32.mrf.mxu1 }
 0x564   :  { %v7818_v4 = vadd.f32 %v7817_v6, %v7777_v49 }
 0x565   :  { %v7819_v46 = vpop.f32.mrf.mxu1 }
 0x566   :  { %v7820_v53 = vadd.f32 %v7819_v46, %v7779_v50  ;;  %v7859_v9 = vadd.f32 %v7858_v17, %v7818_v4 }
 0x567   :  { %v7821_v11 = vpop.f32.mrf.mxu1 }
 0x568   :  { %v7861_v24 = vadd.f32 %v7860_v29, %v7820_v53 }
 0x569   :  { %v7822_v26 = vpop.f32.mrf.mxu1 }
 0x5a3   :  { %v7899_v44 = vpop.f32.mrf.mxu1 }
 0x5a4   :  { %v7900_v47 = vadd.f32 %v7899_v44, %v7859_v9 }
 0x5a5   :  { %v7901_v57 = vpop.f32.mrf.mxu1 }
 0x5a6   :  { %7912 = vst [vmem:[%s12477_s7 + $0x30] sm:$0xff] %v7900_v47  ;;  %v7902_v28 = vadd.f32 %v7901_v57, %v7861_v24 }
 0x5a7   :  { %v7903_v21 = vpop.f32.mrf.mxu1 }
 0x5a8   :  { %7913 = vst [vmem:[%s12477_s7 + $0x38] sm:$0xff] %v7902_v28 }
 0x5a9   :  { %v7904_v1 = vpop.f32.mrf.mxu1 }

</bundles_post_ra>
